<compile_context>
chip_gen: v7x
topology: tpu7x:2x2x1
jax: 0.10.0
libtpu: 0.0.40
codegen_flags: <defaults>
</compile_context>

<pallas_src>
import jax
import jax.numpy as jnp
from jax import lax
from jax.experimental import pallas as pl
from jax.experimental.pallas import tpu as pltpu


# ----------------------------- Pallas kernel -------------------------------

def _bottleneck_kernel(x_ref, w1_ref, b1_ref, w2_ref, b2_ref, w3_ref, b3_ref,
                       o_ref, pad_ref):
    # x_ref block : (1, H*W, Cin) bf16, flattened spatial (NHWC order).
    # w1 : (Cin, P)    bf16 (BN1 scale folded)     b1 : (1, P)    f32
    # w2 : (9, P, P)   bf16 (BN2 scale folded,     b2 : (1, P)    f32
    #                   tap index = dy*3 + dx, layout [in, out])
    # w3 : (P, Cout)   bf16 (BN3 scale folded)     b3 : (1, Cout) f32
    # pad_ref : VMEM scratch (H+2, W+2, P) bf16 -- zero-bordered conv2 input.
    HW = x_ref.shape[1]
    P = w1_ref.shape[1]
    H = pad_ref.shape[0] - 2
    W = pad_ref.shape[1] - 2

    # ---- conv1 (1x1, BN1 folded) + bias + ReLU -----------------------------
    h1 = jnp.dot(x_ref[0], w1_ref[...], preferred_element_type=jnp.float32)
    h1 = jnp.maximum(h1 + b1_ref[...], 0.0)                 # (HW, P) f32

    # ---- conv2 (3x3, stride 1, pad 1, BN2 folded) + bias + ReLU ------------
    # Zero only the four 1-wide border strips; the interior is fully
    # overwritten below, so this is correct every step on every core.
    zrow = jnp.zeros((1, W + 2, P), dtype=pad_ref.dtype)
    zcol = jnp.zeros((H + 2, 1, P), dtype=pad_ref.dtype)
    pad_ref[pl.ds(0, 1)] = zrow
    pad_ref[pl.ds(H + 1, 1)] = zrow
    pad_ref[:, pl.ds(0, 1), :] = zcol
    pad_ref[:, pl.ds(W + 1, 1), :] = zcol
    # Single bf16 cast at (HW, P) granularity, then interior write.
    pad_ref[pl.ds(1, H), pl.ds(1, W), :] = (
        h1.astype(pad_ref.dtype).reshape(H, W, P))

    # 3 dx-shifted planes (only unaligned sublane reads); dy taps are free
    # leading-dim slices.  9 accumulated (HW,P)x(P,P) dots -> no (HW,9P) temp.
    h2 = jnp.zeros((HW, P), dtype=jnp.float32)
    for dx in range(3):
        plane = pad_ref[:, pl.ds(dx, W), :]                 # (H+2, W, P) bf16
        for dy in range(3):
            tap = plane[dy:dy + H].reshape(HW, P)           # (HW, P) bf16
            h2 = h2 + jnp.dot(tap, w2_ref[dy * 3 + dx],
                              preferred_element_type=jnp.float32)
    h2 = jnp.maximum(h2 + b2_ref[...], 0.0)                 # (HW, P) f32

    # ---- conv3 (1x1, BN3 folded) + bias + residual + ReLU ------------------
    h3 = jnp.dot(h2.astype(jnp.bfloat16), w3_ref[...],
                 preferred_element_type=jnp.float32)
    h3 = h3 + b3_ref[...]
    # Re-read the (resident) input block here instead of holding it live
    # across the whole kernel.
    out = jnp.maximum(h3 + x_ref[0].astype(jnp.float32), 0.0)
    o_ref[0] = out.astype(o_ref.dtype)


# ------------------------------- wrapper ------------------------------------

def _pick_vmem_limit():
    # Per-generation VMEM: v5e/v6e have 128 MiB/TC, v7x has 64 MiB/TC.
    try:
        cap = int(pltpu.get_tpu_info().vmem_capacity_bytes)
    except Exception:
        cap = 128 * 1024 * 1024
    return min((cap * 3) // 4, 100 * 1024 * 1024)


def bottleneck_forward(x_nchw, params):
    """x_nchw: (N, Cin, H, W) float32; returns (N, Cout, H, W) float32."""
    (w1, s1, b1, w2, s2, b2, w3, s3, b3) = params
    N, Cin, H, W = x_nchw.shape
    P = w1.shape[1]
    Cout = w3.shape[1]
    assert Cin == Cout, "downsample=None requires Cin == planes * expansion"

    # Fold BN scales into the conv weights (inference mode), cast to bf16.
    w1f = (w1 * s1).astype(jnp.bfloat16)                            # (Cin, P)
    w2f = (w2 * s2.reshape(1, 1, 1, P)).astype(jnp.bfloat16)
    w2f = w2f.reshape(9, P, P)                                      # tap blocks
    w3f = (w3 * s3).astype(jnp.bfloat16)                            # (P, Cout)
    b1f = b1.astype(jnp.float32)
    b2f = b2.astype(jnp.float32)
    b3f = b3.astype(jnp.float32)

    # NCHW -> NHWC -> flattened (N, H*W, C); bf16 activations for the MXU path.
    x = jnp.transpose(x_nchw, (0, 2, 3, 1)).reshape(N, H * W, Cin)
    x = x.astype(jnp.bfloat16)

    def const_spec(a):
        nd = a.ndim
        return pl.BlockSpec(a.shape, lambda n, _nd=nd: (0,) * _nd)

    out_flat = pl.pallas_call(
        _bottleneck_kernel,
        out_shape=jax.ShapeDtypeStruct((N, H * W, Cout), jnp.float32),
        grid=(N,),
        in_specs=[pl.BlockSpec((1, H * W, Cin), lambda n: (n, 0, 0))]
                 + [const_spec(a) for a in (w1f, b1f, w2f, b2f, w3f, b3f)],
        out_specs=pl.BlockSpec((1, H * W, Cout), lambda n: (n, 0, 0)),
        scratch_shapes=[pltpu.VMEM((H + 2, W + 2, P), jnp.bfloat16)],
        compiler_params=pltpu.CompilerParams(
            dimension_semantics=("parallel",),
            vmem_limit_bytes=_pick_vmem_limit()),
    )(x, w1f, b1f, w2f, b2f, w3f, b3f)

    out = out_flat.reshape(N, H, W, Cout)
    return jnp.transpose(out, (0, 3, 1, 2))                 # NHWC -> NCHW


# -------------------------- parameter construction --------------------------

def make_params(inplanes, planes, expansion=4, eps=1e-5):
    key = jax.random.PRNGKey(0)
    k1, k2, k3 = jax.random.split(key, 3)
    cout = planes * expansion
    # conv weights, stored in matmul-friendly layouts (f32 "master" copies):
    #   w1: (Cin, P)        <- PyTorch (P, Cin, 1, 1)
    #   w2: (3, 3, P, P)    <- PyTorch (P, P, 3, 3)   [kh, kw, in, out]
    #   w3: (P, 4P)         <- PyTorch (4P, P, 1, 1)
    w1 = 0.1 * jax.random.normal(k1, (inplanes, planes), jnp.float32)
    w2 = 0.1 * jax.random.normal(k2, (3, 3, planes, planes), jnp.float32)
    w3 = 0.1 * jax.random.normal(k3, (planes, cout), jnp.float32)

    def bn_fold(c):
        gamma = 1.0 + 0.1 * jnp.arange(c, dtype=jnp.float32)
        beta = 0.05 * jnp.arange(c, dtype=jnp.float32)
        rmean = 0.02 * jnp.arange(c, dtype=jnp.float32)
        rvar = 1.0 + 0.1 * jnp.arange(c, dtype=jnp.float32)
        scale = gamma / jnp.sqrt(rvar + eps)
        bias = beta - rmean * scale
        return scale.reshape(1, c), bias.reshape(1, c)

    s1, b1 = bn_fold(planes)
    s2, b2 = bn_fold(planes)
    s3, b3 = bn_fold(cout)
    return (w1, s1, b1, w2, s2, b2, w3, s3, b3)


# ----------------------------- pure-JAX reference ---------------------------

def reference_forward(x_nchw, params):
    (w1, s1, b1, w2, s2, b2, w3, s3, b3) = params

    def conv(x, w_oihw, padding):
        return lax.conv_general_dilated(
            x, w_oihw, window_strides=(1, 1), padding=padding,
            dimension_numbers=('NCHW', 'OIHW', 'NCHW'))

    def bn(x, s, b):
        s = s.reshape(1, -1, 1, 1)
        b = b.reshape(1, -1, 1, 1)
        return x * s + b

    w1_oihw = jnp.transpose(w1, (1, 0))[:, :, None, None]
    w2_oihw = jnp.transpose(w2, (3, 2, 0, 1))
    w3_oihw = jnp.transpose(w3, (1, 0))[:, :, None, None]

    out = jnp.maximum(bn(conv(x_nchw, w1_oihw, 'VALID'), s1, b1), 0.0)
    out = jnp.maximum(bn(conv(out, w2_oihw, ((1, 1), (1, 1))), s2, b2), 0.0)
    out = bn(conv(out, w3_oihw, 'VALID'), s3, b3)
    return jnp.maximum(out + x_nchw, 0.0)


# ---------------------------------- main -------------------------------------

if __name__ == "__main__":
    N, planes, expansion = 2, 4, 4
    inplanes = planes * expansion      # 16; downsample=None requires Cin == Cout
    H = W = 16

    key = jax.random.PRNGKey(0)
    x = jax.random.normal(key, (N, inplanes, H, W), jnp.float32)

    params = make_params(inplanes, planes, expansion)

    y = bottleneck_forward(x, params)
    y = jax.block_until_ready(y)

    y_ref = reference_forward(x, params)
    assert y.shape == (N, planes * expansion, H, W)
    max_err = jnp.max(jnp.abs(y - y_ref))
    assert jnp.allclose(y, y_ref, rtol=2e-2, atol=2e-2), \
        f"max abs diff = {max_err}"

    print("KERNEL_OK")
</pallas_src>

<mosaic_0001>
module attributes {stable_mosaic.version = 11 : i64} {
  func.func @_bottleneck_kernel(%arg0: i32, %arg1: memref<1x256x16xbf16, #tpu.memory_space<vmem>>, %arg2: memref<16x4xbf16, #tpu.memory_space<vmem>>, %arg3: memref<1x4xf32, #tpu.memory_space<vmem>>, %arg4: memref<9x4x4xbf16, #tpu.memory_space<vmem>>, %arg5: memref<1x4xf32, #tpu.memory_space<vmem>>, %arg6: memref<4x16xbf16, #tpu.memory_space<vmem>>, %arg7: memref<1x16xf32, #tpu.memory_space<vmem>>, %arg8: memref<1x256x16xf32, #tpu.memory_space<vmem>>, %arg9: memref<18x18x4xbf16, #tpu.memory_space<vmem>>) attributes {dimension_semantics = [#tpu.dimension_semantics<parallel>], iteration_bounds = array<i64: 2>, scalar_prefetch = 0 : i64, scratch_operands = 1 : i64, tpu.core_type = #tpu.core_type<tc>, window_params = [{transform_indices = @transform_0, window_bounds = array<i64: 1, 256, 16>}, {pipeline_mode = #tpu.pipeline_mode<synchronous>, transform_indices = @transform_1, window_bounds = array<i64: 16, 4>}, {pipeline_mode = #tpu.pipeline_mode<synchronous>, transform_indices = @transform_2, window_bounds = array<i64: 1, 4>}, {pipeline_mode = #tpu.pipeline_mode<synchronous>, transform_indices = @transform_3, window_bounds = array<i64: 9, 4, 4>}, {pipeline_mode = #tpu.pipeline_mode<synchronous>, transform_indices = @transform_4, window_bounds = array<i64: 1, 4>}, {pipeline_mode = #tpu.pipeline_mode<synchronous>, transform_indices = @transform_5, window_bounds = array<i64: 4, 16>}, {pipeline_mode = #tpu.pipeline_mode<synchronous>, transform_indices = @transform_6, window_bounds = array<i64: 1, 16>}, {transform_indices = @transform_7, window_bounds = array<i64: 1, 256, 16>}]} {
    %c0 = arith.constant 0 : index
    %c0_0 = arith.constant 0 : index
    %c0_1 = arith.constant 0 : index
    %0 = vector.load %arg1[%c0, %c0_0, %c0_1] : memref<1x256x16xbf16, #tpu.memory_space<vmem>>, vector<1x256x16xbf16>
    %1 = vector.shape_cast %0 : vector<1x256x16xbf16> to vector<256x16xbf16>
    %c0_2 = arith.constant 0 : index
    %c0_3 = arith.constant 0 : index
    %2 = vector.load %arg2[%c0_2, %c0_3] : memref<16x4xbf16, #tpu.memory_space<vmem>>, vector<16x4xbf16>
    %cst = arith.constant dense<0.000000e+00> : vector<256x4xf32>
    %3 = tpu.matmul %1, %2, %cst {dimension_numbers = #tpu.dot_dimension_numbers<[1], [0], [0], [1], [0, 0, 1, 1], [], []>} : vector<256x16xbf16>, vector<16x4xbf16>, vector<256x4xf32> -> vector<256x4xf32>
    %c0_4 = arith.constant 0 : index
    %c0_5 = arith.constant 0 : index
    %4 = vector.load %arg3[%c0_4, %c0_5] : memref<1x4xf32, #tpu.memory_space<vmem>>, vector<1x4xf32>
    %5 = vector.broadcast %4 : vector<1x4xf32> to vector<256x4xf32>
    %6 = arith.addf %3, %5 : vector<256x4xf32>
    %cst_6 = arith.constant 0.000000e+00 : f32
    %7 = vector.broadcast %cst_6 : f32 to vector<256x4xf32>
    %8 = arith.maximumf %6, %7 : vector<256x4xf32>
    %cst_7 = arith.constant 0.000000e+00 : bf16
    %9 = vector.broadcast %cst_7 : bf16 to vector<1x18x4xbf16>
    %cst_8 = arith.constant 0.000000e+00 : bf16
    %10 = vector.broadcast %cst_8 : bf16 to vector<18x1x4xbf16>
    %c0_9 = arith.constant 0 : index
    %c0_10 = arith.constant 0 : index
    %c0_11 = arith.constant 0 : index
    %11 = vector.load %arg9[%c0_9, %c0_10, %c0_11] : memref<18x18x4xbf16, #tpu.memory_space<vmem>>, vector<1x18x4xbf16>
    tpu.vector_store %arg9[%c0_9, %c0_10, %c0_11], %9 {strides = array<i32>} : memref<18x18x4xbf16, #tpu.memory_space<vmem>>, vector<1x18x4xbf16>,
    %c17 = arith.constant 17 : index
    %c0_12 = arith.constant 0 : index
    %c0_13 = arith.constant 0 : index
    %12 = vector.load %arg9[%c17, %c0_12, %c0_13] : memref<18x18x4xbf16, #tpu.memory_space<vmem>>, vector<1x18x4xbf16>
    tpu.vector_store %arg9[%c17, %c0_12, %c0_13], %9 {strides = array<i32>} : memref<18x18x4xbf16, #tpu.memory_space<vmem>>, vector<1x18x4xbf16>,
    %c0_14 = arith.constant 0 : index
    %c0_15 = arith.constant 0 : index
    %c0_16 = arith.constant 0 : index
    %13 = vector.load %arg9[%c0_14, %c0_15, %c0_16] : memref<18x18x4xbf16, #tpu.memory_space<vmem>>, vector<18x1x4xbf16>
    tpu.vector_store %arg9[%c0_14, %c0_15, %c0_16], %10 {strides = array<i32>} : memref<18x18x4xbf16, #tpu.memory_space<vmem>>, vector<18x1x4xbf16>,
    %c0_17 = arith.constant 0 : index
    %c17_18 = arith.constant 17 : index
    %c0_19 = arith.constant 0 : index
    %14 = vector.load %arg9[%c0_17, %c17_18, %c0_19] : memref<18x18x4xbf16, #tpu.memory_space<vmem>>, vector<18x1x4xbf16>
    tpu.vector_store %arg9[%c0_17, %c17_18, %c0_19], %10 {strides = array<i32>} : memref<18x18x4xbf16, #tpu.memory_space<vmem>>, vector<18x1x4xbf16>,
    %15 = arith.truncf %8 : vector<256x4xf32> to vector<256x4xbf16>
    %16 = vector.shape_cast %15 : vector<256x4xbf16> to vector<16x16x4xbf16>
    %c1 = arith.constant 1 : index
    %c1_20 = arith.constant 1 : index
    %c0_21 = arith.constant 0 : index
    %17 = vector.load %arg9[%c1, %c1_20, %c0_21] : memref<18x18x4xbf16, #tpu.memory_space<vmem>>, vector<16x16x4xbf16>
    tpu.vector_store %arg9[%c1, %c1_20, %c0_21], %16 {strides = array<i32>} : memref<18x18x4xbf16, #tpu.memory_space<vmem>>, vector<16x16x4xbf16>,
    %cst_22 = arith.constant 0.000000e+00 : f32
    %18 = vector.broadcast %cst_22 : f32 to vector<256x4xf32>
    %c0_23 = arith.constant 0 : index
    %c0_24 = arith.constant 0 : index
    %c0_25 = arith.constant 0 : index
    %19 = vector.load %arg9[%c0_23, %c0_24, %c0_25] : memref<18x18x4xbf16, #tpu.memory_space<vmem>>, vector<18x16x4xbf16>
    %20 = vector.extract_strided_slice %19 {offsets = [0, 0, 0], sizes = [16, 16, 4], strides = [1, 1, 1]} : vector<18x16x4xbf16> to vector<16x16x4xbf16>
    %21 = vector.shape_cast %20 : vector<16x16x4xbf16> to vector<256x4xbf16>
    %c0_26 = arith.constant 0 : index
    %c0_27 = arith.constant 0 : index
    %c0_28 = arith.constant 0 : index
    %22 = vector.load %arg4[%c0_26, %c0_27, %c0_28] : memref<9x4x4xbf16, #tpu.memory_space<vmem>>, vector<1x4x4xbf16>
    %23 = vector.shape_cast %22 : vector<1x4x4xbf16> to vector<4x4xbf16>
    %cst_29 = arith.constant dense<0.000000e+00> : vector<256x4xf32>
    %24 = tpu.matmul %21, %23, %cst_29 {dimension_numbers = #tpu.dot_dimension_numbers<[1], [0], [0], [1], [0, 0, 1, 1], [], []>} : vector<256x4xbf16>, vector<4x4xbf16>, vector<256x4xf32> -> vector<256x4xf32>
    %25 = arith.addf %18, %24 : vector<256x4xf32>
    %26 = vector.extract_strided_slice %19 {offsets = [1, 0, 0], sizes = [16, 16, 4], strides = [1, 1, 1]} : vector<18x16x4xbf16> to vector<16x16x4xbf16>
    %27 = vector.shape_cast %26 : vector<16x16x4xbf16> to vector<256x4xbf16>
    %c3 = arith.constant 3 : index
    %c0_30 = arith.constant 0 : index
    %c0_31 = arith.constant 0 : index
    %28 = vector.load %arg4[%c3, %c0_30, %c0_31] : memref<9x4x4xbf16, #tpu.memory_space<vmem>>, vector<1x4x4xbf16>
    %29 = vector.shape_cast %28 : vector<1x4x4xbf16> to vector<4x4xbf16>
    %cst_32 = arith.constant dense<0.000000e+00> : vector<256x4xf32>
    %30 = tpu.matmul %27, %29, %cst_32 {dimension_numbers = #tpu.dot_dimension_numbers<[1], [0], [0], [1], [0, 0, 1, 1], [], []>} : vector<256x4xbf16>, vector<4x4xbf16>, vector<256x4xf32> -> vector<256x4xf32>
    %31 = arith.addf %25, %30 : vector<256x4xf32>
    %32 = vector.extract_strided_slice %19 {offsets = [2, 0, 0], sizes = [16, 16, 4], strides = [1, 1, 1]} : vector<18x16x4xbf16> to vector<16x16x4xbf16>
    %33 = vector.shape_cast %32 : vector<16x16x4xbf16> to vector<256x4xbf16>
    %c6 = arith.constant 6 : index
    %c0_33 = arith.constant 0 : index
    %c0_34 = arith.constant 0 : index
    %34 = vector.load %arg4[%c6, %c0_33, %c0_34] : memref<9x4x4xbf16, #tpu.memory_space<vmem>>, vector<1x4x4xbf16>
    %35 = vector.shape_cast %34 : vector<1x4x4xbf16> to vector<4x4xbf16>
    %cst_35 = arith.constant dense<0.000000e+00> : vector<256x4xf32>
    %36 = tpu.matmul %33, %35, %cst_35 {dimension_numbers = #tpu.dot_dimension_numbers<[1], [0], [0], [1], [0, 0, 1, 1], [], []>} : vector<256x4xbf16>, vector<4x4xbf16>, vector<256x4xf32> -> vector<256x4xf32>
    %37 = arith.addf %31, %36 : vector<256x4xf32>
    %c0_36 = arith.constant 0 : index
    %c1_37 = arith.constant 1 : index
    %c0_38 = arith.constant 0 : index
    %38 = vector.load %arg9[%c0_36, %c1_37, %c0_38] : memref<18x18x4xbf16, #tpu.memory_space<vmem>>, vector<18x16x4xbf16>
    %39 = vector.extract_strided_slice %38 {offsets = [0, 0, 0], sizes = [16, 16, 4], strides = [1, 1, 1]} : vector<18x16x4xbf16> to vector<16x16x4xbf16>
    %40 = vector.shape_cast %39 : vector<16x16x4xbf16> to vector<256x4xbf16>
    %c1_39 = arith.constant 1 : index
    %c0_40 = arith.constant 0 : index
    %c0_41 = arith.constant 0 : index
    %41 = vector.load %arg4[%c1_39, %c0_40, %c0_41] : memref<9x4x4xbf16, #tpu.memory_space<vmem>>, vector<1x4x4xbf16>
    %42 = vector.shape_cast %41 : vector<1x4x4xbf16> to vector<4x4xbf16>
    %cst_42 = arith.constant dense<0.000000e+00> : vector<256x4xf32>
    %43 = tpu.matmul %40, %42, %cst_42 {dimension_numbers = #tpu.dot_dimension_numbers<[1], [0], [0], [1], [0, 0, 1, 1], [], []>} : vector<256x4xbf16>, vector<4x4xbf16>, vector<256x4xf32> -> vector<256x4xf32>
    %44 = arith.addf %37, %43 : vector<256x4xf32>
    %45 = vector.extract_strided_slice %38 {offsets = [1, 0, 0], sizes = [16, 16, 4], strides = [1, 1, 1]} : vector<18x16x4xbf16> to vector<16x16x4xbf16>
    %46 = vector.shape_cast %45 : vector<16x16x4xbf16> to vector<256x4xbf16>
    %c4 = arith.constant 4 : index
    %c0_43 = arith.constant 0 : index
    %c0_44 = arith.constant 0 : index
    %47 = vector.load %arg4[%c4, %c0_43, %c0_44] : memref<9x4x4xbf16, #tpu.memory_space<vmem>>, vector<1x4x4xbf16>
    %48 = vector.shape_cast %47 : vector<1x4x4xbf16> to vector<4x4xbf16>
    %cst_45 = arith.constant dense<0.000000e+00> : vector<256x4xf32>
    %49 = tpu.matmul %46, %48, %cst_45 {dimension_numbers = #tpu.dot_dimension_numbers<[1], [0], [0], [1], [0, 0, 1, 1], [], []>} : vector<256x4xbf16>, vector<4x4xbf16>, vector<256x4xf32> -> vector<256x4xf32>
    %50 = arith.addf %44, %49 : vector<256x4xf32>
    %51 = vector.extract_strided_slice %38 {offsets = [2, 0, 0], sizes = [16, 16, 4], strides = [1, 1, 1]} : vector<18x16x4xbf16> to vector<16x16x4xbf16>
    %52 = vector.shape_cast %51 : vector<16x16x4xbf16> to vector<256x4xbf16>
    %c7 = arith.constant 7 : index
    %c0_46 = arith.constant 0 : index
    %c0_47 = arith.constant 0 : index
    %53 = vector.load %arg4[%c7, %c0_46, %c0_47] : memref<9x4x4xbf16, #tpu.memory_space<vmem>>, vector<1x4x4xbf16>
    %54 = vector.shape_cast %53 : vector<1x4x4xbf16> to vector<4x4xbf16>
    %cst_48 = arith.constant dense<0.000000e+00> : vector<256x4xf32>
    %55 = tpu.matmul %52, %54, %cst_48 {dimension_numbers = #tpu.dot_dimension_numbers<[1], [0], [0], [1], [0, 0, 1, 1], [], []>} : vector<256x4xbf16>, vector<4x4xbf16>, vector<256x4xf32> -> vector<256x4xf32>
    %56 = arith.addf %50, %55 : vector<256x4xf32>
    %c0_49 = arith.constant 0 : index
    %c2 = arith.constant 2 : index
    %c0_50 = arith.constant 0 : index
    %57 = vector.load %arg9[%c0_49, %c2, %c0_50] : memref<18x18x4xbf16, #tpu.memory_space<vmem>>, vector<18x16x4xbf16>
    %58 = vector.extract_strided_slice %57 {offsets = [0, 0, 0], sizes = [16, 16, 4], strides = [1, 1, 1]} : vector<18x16x4xbf16> to vector<16x16x4xbf16>
    %59 = vector.shape_cast %58 : vector<16x16x4xbf16> to vector<256x4xbf16>
    %c2_51 = arith.constant 2 : index
    %c0_52 = arith.constant 0 : index
    %c0_53 = arith.constant 0 : index
    %60 = vector.load %arg4[%c2_51, %c0_52, %c0_53] : memref<9x4x4xbf16, #tpu.memory_space<vmem>>, vector<1x4x4xbf16>
    %61 = vector.shape_cast %60 : vector<1x4x4xbf16> to vector<4x4xbf16>
    %cst_54 = arith.constant dense<0.000000e+00> : vector<256x4xf32>
    %62 = tpu.matmul %59, %61, %cst_54 {dimension_numbers = #tpu.dot_dimension_numbers<[1], [0], [0], [1], [0, 0, 1, 1], [], []>} : vector<256x4xbf16>, vector<4x4xbf16>, vector<256x4xf32> -> vector<256x4xf32>
    %63 = arith.addf %56, %62 : vector<256x4xf32>
    %64 = vector.extract_strided_slice %57 {offsets = [1, 0, 0], sizes = [16, 16, 4], strides = [1, 1, 1]} : vector<18x16x4xbf16> to vector<16x16x4xbf16>
    %65 = vector.shape_cast %64 : vector<16x16x4xbf16> to vector<256x4xbf16>
    %c5 = arith.constant 5 : index
    %c0_55 = arith.constant 0 : index
    %c0_56 = arith.constant 0 : index
    %66 = vector.load %arg4[%c5, %c0_55, %c0_56] : memref<9x4x4xbf16, #tpu.memory_space<vmem>>, vector<1x4x4xbf16>
    %67 = vector.shape_cast %66 : vector<1x4x4xbf16> to vector<4x4xbf16>
    %cst_57 = arith.constant dense<0.000000e+00> : vector<256x4xf32>
    %68 = tpu.matmul %65, %67, %cst_57 {dimension_numbers = #tpu.dot_dimension_numbers<[1], [0], [0], [1], [0, 0, 1, 1], [], []>} : vector<256x4xbf16>, vector<4x4xbf16>, vector<256x4xf32> -> vector<256x4xf32>
    %69 = arith.addf %63, %68 : vector<256x4xf32>
    %70 = vector.extract_strided_slice %57 {offsets = [2, 0, 0], sizes = [16, 16, 4], strides = [1, 1, 1]} : vector<18x16x4xbf16> to vector<16x16x4xbf16>
    %71 = vector.shape_cast %70 : vector<16x16x4xbf16> to vector<256x4xbf16>
    %c8 = arith.constant 8 : index
    %c0_58 = arith.constant 0 : index
    %c0_59 = arith.constant 0 : index
    %72 = vector.load %arg4[%c8, %c0_58, %c0_59] : memref<9x4x4xbf16, #tpu.memory_space<vmem>>, vector<1x4x4xbf16>
    %73 = vector.shape_cast %72 : vector<1x4x4xbf16> to vector<4x4xbf16>
    %cst_60 = arith.constant dense<0.000000e+00> : vector<256x4xf32>
    %74 = tpu.matmul %71, %73, %cst_60 {dimension_numbers = #tpu.dot_dimension_numbers<[1], [0], [0], [1], [0, 0, 1, 1], [], []>} : vector<256x4xbf16>, vector<4x4xbf16>, vector<256x4xf32> -> vector<256x4xf32>
    %75 = arith.addf %69, %74 : vector<256x4xf32>
    %c0_61 = arith.constant 0 : index
    %c0_62 = arith.constant 0 : index
    %76 = vector.load %arg5[%c0_61, %c0_62] : memref<1x4xf32, #tpu.memory_space<vmem>>, vector<1x4xf32>
    %77 = vector.broadcast %76 : vector<1x4xf32> to vector<256x4xf32>
    %78 = arith.addf %75, %77 : vector<256x4xf32>
    %cst_63 = arith.constant 0.000000e+00 : f32
    %79 = vector.broadcast %cst_63 : f32 to vector<256x4xf32>
    %80 = arith.maximumf %78, %79 : vector<256x4xf32>
    %81 = arith.truncf %80 : vector<256x4xf32> to vector<256x4xbf16>
    %c0_64 = arith.constant 0 : index
    %c0_65 = arith.constant 0 : index
    %82 = vector.load %arg6[%c0_64, %c0_65] : memref<4x16xbf16, #tpu.memory_space<vmem>>, vector<4x16xbf16>
    %cst_66 = arith.constant dense<0.000000e+00> : vector<256x16xf32>
    %83 = tpu.matmul %81, %82, %cst_66 {dimension_numbers = #tpu.dot_dimension_numbers<[1], [0], [0], [1], [0, 0, 1, 1], [], []>} : vector<256x4xbf16>, vector<4x16xbf16>, vector<256x16xf32> -> vector<256x16xf32>
    %c0_67 = arith.constant 0 : index
    %c0_68 = arith.constant 0 : index
    %84 = vector.load %arg7[%c0_67, %c0_68] : memref<1x16xf32, #tpu.memory_space<vmem>>, vector<1x16xf32>
    %85 = vector.broadcast %84 : vector<1x16xf32> to vector<256x16xf32>
    %86 = arith.addf %83, %85 : vector<256x16xf32>
    %c0_69 = arith.constant 0 : index
    %c0_70 = arith.constant 0 : index
    %c0_71 = arith.constant 0 : index
    %87 = vector.load %arg1[%c0_69, %c0_70, %c0_71] : memref<1x256x16xbf16, #tpu.memory_space<vmem>>, vector<1x256x16xbf16>
    %88 = vector.shape_cast %87 : vector<1x256x16xbf16> to vector<256x16xbf16>
    %89 = arith.extf %88 : vector<256x16xbf16> to vector<256x16xf32>
    %90 = arith.addf %86, %89 : vector<256x16xf32>
    %cst_72 = arith.constant 0.000000e+00 : f32
    %91 = vector.broadcast %cst_72 : f32 to vector<256x16xf32>
    %92 = arith.maximumf %90, %91 : vector<256x16xf32>
    %c0_73 = arith.constant 0 : index
    %c0_74 = arith.constant 0 : index
    %c0_75 = arith.constant 0 : index
    %93 = vector.load %arg8[%c0_73, %c0_74, %c0_75] : memref<1x256x16xf32, #tpu.memory_space<vmem>>, vector<1x256x16xf32>
    %94 = vector.shape_cast %93 : vector<1x256x16xf32> to vector<256x16xf32>
    %95 = vector.shape_cast %92 : vector<256x16xf32> to vector<1x256x16xf32>
    tpu.vector_store %arg8[%c0_73, %c0_74, %c0_75], %95 {strides = array<i32>} : memref<1x256x16xf32, #tpu.memory_space<vmem>>, vector<1x256x16xf32>,
    return
  }
  func.func @transform_0(%arg0: i32) -> (i32, i32, i32) {
    %c0_i32 = arith.constant 0 : i32
    %c0_i32_0 = arith.constant 0 : i32
    %c0_i32_1 = arith.constant 0 : i32
    return %arg0, %c0_i32, %c0_i32_0 : i32, i32, i32
  }
  func.func @transform_1(%arg0: i32) -> (i32, i32) {
    %c0_i32 = arith.constant 0 : i32
    %c0_i32_0 = arith.constant 0 : i32
    %c0_i32_1 = arith.constant 0 : i32
    return %c0_i32, %c0_i32_0 : i32, i32
  }
  func.func @transform_2(%arg0: i32) -> (i32, i32) {
    %c0_i32 = arith.constant 0 : i32
    %c0_i32_0 = arith.constant 0 : i32
    %c0_i32_1 = arith.constant 0 : i32
    return %c0_i32, %c0_i32_0 : i32, i32
  }
  func.func @transform_3(%arg0: i32) -> (i32, i32, i32) {
    %c0_i32 = arith.constant 0 : i32
    %c0_i32_0 = arith.constant 0 : i32
    %c0_i32_1 = arith.constant 0 : i32
    %c0_i32_2 = arith.constant 0 : i32
    return %c0_i32, %c0_i32_0, %c0_i32_1 : i32, i32, i32
  }
  func.func @transform_4(%arg0: i32) -> (i32, i32) {
    %c0_i32 = arith.constant 0 : i32
    %c0_i32_0 = arith.constant 0 : i32
    %c0_i32_1 = arith.constant 0 : i32
    return %c0_i32, %c0_i32_0 : i32, i32
  }
  func.func @transform_5(%arg0: i32) -> (i32, i32) {
    %c0_i32 = arith.constant 0 : i32
    %c0_i32_0 = arith.constant 0 : i32
    %c0_i32_1 = arith.constant 0 : i32
    return %c0_i32, %c0_i32_0 : i32, i32
  }
  func.func @transform_6(%arg0: i32) -> (i32, i32) {
    %c0_i32 = arith.constant 0 : i32
    %c0_i32_0 = arith.constant 0 : i32
    %c0_i32_1 = arith.constant 0 : i32
    return %c0_i32, %c0_i32_0 : i32, i32
  }
  func.func @transform_7(%arg0: i32) -> (i32, i32, i32) {
    %c0_i32 = arith.constant 0 : i32
    %c0_i32_0 = arith.constant 0 : i32
    %c0_i32_1 = arith.constant 0 : i32
    return %arg0, %c0_i32, %c0_i32_0 : i32, i32, i32
  }
}

</mosaic_0001>

<bundles_post_ra>
// kernel: tpu_custom_call.1
= control target key start
LH: loop header
LB: loop body
LE: loop exit
PB: predicated region body
PF: predicated region fallthrough
CT: control target
= control target key end

     0   :  { %12 = vsyncpa [#allocation4], 0  ;;  %s8142_s0 = inlined_call_operand.hbm [shape: bf16[2,256,16], index: 0, kind: input, shape index: {}]   ;;  %s8143_s1 = inlined_call_operand.hbm [shape: bf16[16,4], index: 1, kind: input, shape index: {}]   ;;  %s8144_s2 = inlined_call_operand.hbm [shape: f32[1,4], index: 2, kind: input, shape index: {}]   ;;  %s8145_s3 = inlined_call_operand.hbm [shape: bf16[9,4,4], index: 3, kind: input, shape index: {}]   ;;  %s8146_s4 = inlined_call_operand.hbm [shape: f32[1,4], index: 4, kind: input, shape index: {}]   ;;  %s8147_s5 = inlined_call_operand.hbm [shape: bf16[4,16], index: 5, kind: input, shape index: {}]   ;;  %s8148_s6 = inlined_call_operand.hbm [shape: f32[1,16], index: 6, kind: input, shape index: {}]   ;;  %s8149_s7 = inlined_call_operand.hbm [shape: f32[2,256,16], index: 7, kind: output, shape index: {}]  }
   0x1   :  { %14 = vsyncpa [#allocation4 + $0x1], 0 }
   0x2   :  { %15 = vsyncpa [#allocation7], 0 }
   0x3   :  { %16 = vsyncpa [#allocation10], 0 }
   0x4   :  { %17 = vsyncpa [#allocation13], 0 }
   0x5   :  { %18 = vsyncpa [#allocation5], 0 }
   0x6   :  { %20 = vsyncpa [#allocation5 + $0x1], 0  ;;  %s6589_s24 = smov 0   ;;  %s6591_s25 = smov 0  }
   0x7   :  { %s6593_s26 = smov 0   ;;  %s6595_s27 = smov 0  }
   0x8 LB: > { %s6534_s28 = smov [#allocation6]   ;;  %s6610_s30 = sadd.s32 4294967295, %s6532_s27   ;;  %s6532_s27 = sphi %s6595_s27, %s8198_s27   ;;  %s6528_s26 = sphi %s6593_s26, %s8197_s26   ;;  %s6524_s25 = sphi %s6591_s25, %s8196_s25   ;;  %s6520_s24 = sphi %s6589_s24, %s8195_s24  }
   0x9   : > { %s221_s29 = sshll.u32 %s6534_s28, 4  ;;  %p4818_p0 = scmp.ge.s32.totalorder %s6532_s27, 1  ;;  %s6615_s29 = int_to_ptr.vmem [resolvable:$true] %s221_s29 }
   0xa   : > { %p8150_p1 = scmp.eq.s32.totalorder %s6610_s30, 0  ;;  %p209_p2 = scmp.lt.s32.totalorder %s6532_s27, 3 }
   0xb   : > { %s6535_s9 = smov [#allocation9]   ;;  %s6536_s12 = smov [#allocation12]  }
   0xc   : > { %p6617_p3 = pnand %p4818_p0, %p209_p2  ;;  %s245_s10 = sshll.u32 %s6535_s9, 4  ;;  %s6630_s10 = int_to_ptr.vmem [resolvable:$true] %s245_s10 }
   0xd   : > { %s6632_s13 = sshll.u32 %s6536_s12, 4  ;;  %s6256_s16 = scalar_lea.hbm %s8143_s1, 128  ;;  %s271_s13 = int_to_ptr.vmem [resolvable:$true] %s6632_s13 }
   0xe   : > { %s8157_s8 = scalar_select %p6617_p3, 1, 0 }
   0xf   : > { %p6114_p5 = pneg %p6617_p3  ;;  %p6257_p7 = scmp.ne.s32.totalorder %s8143_s1, %s6256_s16 }
  0x10   : > { %p6263_p11 = scmp.lt.u32.totalorder %s6256_s16, %s8143_s1 }
  0x11   : > { %p6626_p6 = pnand %p6114_p5, %p8150_p1 }
  0x13   : > { %p6642_p8 = pneg %p6626_p6 }
  0x15   : > { %p6259_p9 = pnand %p6642_p8, %p6257_p7 }
  0x17   : > { %p6260_p10 = pneg %p6259_p9 }
  0x19   : > { %p6265_p12 = pnand %p6263_p11, %p6260_p10 }
  0x1b   : > { %6268 = shalt.err (!%p6265_p12)
}
  0x1c   : > { %s6269_s22 = scalar_lea.vmem %s6615_s29, 128  ;;  %p6277_p5 = scmp.lt.s32.totalorder %s6615_s29, %s6615_s29 }
  0x1d   : > { %p6270_p13 = scmp.ne.s32.totalorder %s6615_s29, %s6269_s22  ;;  %p6278_p4 = scmp.lt.s32.totalorder %s6269_s22, %s6269_s22 }
  0x1f   : > { %p6272_p0 = pnand %p6270_p13, %p6642_p8  ;;  %p6279_p7 = por %p6278_p4, %p6277_p5 }
  0x21   : > { %p6273_p2 = pneg %p6272_p0 }
  0x23   : > { %p6280_p9 = pnand %p6279_p7, %p6273_p2 }
  0x25   : > { %6283 = shalt.err (!%p6280_p9)
}
  0x26   : > { %s8152_s23 = smov 64   ;;  %s6538_s28 = smov 4  }
  0x27   : > { %6117 = dma.hbm_to_vmem [thread:$0]  (!%p6626_p6), %s8143_s1, 128, %s6615_s29, [#allocation7], %s8152_s23, %s8152_s23, %s6538_s28  }
  0x28   : > { %s6284_s16 = scalar_lea.hbm %s8145_s3, 288 }
  0x29   : > { %p6285_p4 = scmp.ne.s32.totalorder %s8145_s3, %s6284_s16  ;;  %p6291_p12 = scmp.lt.u32.totalorder %s6284_s16, %s8145_s3 }
  0x2b   : > { %p6287_p10 = pnand %p6285_p4, %p6642_p8 }
  0x2d   : > { %p6288_p11 = pneg %p6287_p10 }
  0x2f   : > { %p6293_p13 = pnand %p6291_p12, %p6288_p11 }
  0x31   : > { %6296 = shalt.err (!%p6293_p13)
}
  0x32   : > { %s6297_s29 = scalar_lea.vmem %s6630_s10, 288  ;;  %p6305_p7 = scmp.lt.s32.totalorder %s6630_s10, %s6630_s10 }
  0x33   : > { %p6298_p0 = scmp.ne.s32.totalorder %s6630_s10, %s6297_s29  ;;  %p6306_p9 = scmp.lt.s32.totalorder %s6297_s29, %s6297_s29 }
  0x35   : > { %p6300_p2 = pnand %p6298_p0, %p6642_p8  ;;  %p6307_p4 = por %p6306_p9, %p6305_p7 }
  0x37   : > { %p6301_p5 = pneg %p6300_p2 }
  0x39   : > { %p6308_p10 = pnand %p6307_p4, %p6301_p5 }
  0x3b   : > { %6311 = shalt.err (!%p6308_p10)
}
  0x3c   : > { %s6539_s22 = smov 32   ;;  %s6540_s9 = smov 2  }
  0x3d   : > { %6123 = dma.hbm_to_vmem [thread:$0]  (!%p6626_p6), %s8145_s3, 288, %s6630_s10, [#allocation10], %s6539_s22, %s6539_s22, %s6540_s9  }
  0x3e   : > { %s6312_s17 = scalar_lea.hbm %s8147_s5, 32 }
  0x3f   : > { %p6313_p11 = scmp.ne.s32.totalorder %s8147_s5, %s6312_s17  ;;  %p6319_p0 = scmp.lt.u32.totalorder %s6312_s17, %s8147_s5 }
  0x41   : > { %p6315_p12 = pnand %p6313_p11, %p6642_p8 }
  0x43   : > { %p6316_p13 = pneg %p6315_p12 }
  0x45   : > { %p6321_p2 = pnand %p6319_p0, %p6316_p13 }
  0x47   : > { %6324 = shalt.err (!%p6321_p2)
}
  0x48   : > { %s6325_s12 = scalar_lea.vmem %s271_s13, 32  ;;  %p6333_p4 = scmp.lt.s32.totalorder %s271_s13, %s271_s13 }
  0x49   : > { %p6326_p5 = scmp.ne.s32.totalorder %s271_s13, %s6325_s12  ;;  %p6334_p10 = scmp.lt.s32.totalorder %s6325_s12, %s6325_s12 }
  0x4b   : > { %p6328_p7 = pnand %p6326_p5, %p6642_p8  ;;  %p6335_p1 = por %p6334_p10, %p6333_p4 }
  0x4d   : > { %p6329_p9 = pneg %p6328_p7 }
  0x4f   : > { %p6336_p3 = pnand %p6335_p1, %p6329_p9 }
  0x51   : > { %6339 = shalt.err (!%p6336_p3)
}
  0x52   : > { %6129 = dma.hbm_to_vmem [thread:$0]  (!%p6626_p6), %s8147_s5, 32, %s271_s13, [#allocation13]  }
  0x53   : > { %s6541_s9 = smov [#allocation8]   ;;  %s6542_s15 = smov [#allocation11]  }
  0x54   : > { %s235_s14 = sshll.u32 %s6541_s9, 4  ;;  %s259_s16 = sshll.u32 %s6542_s15, 4  ;;  %s236_s14 = int_to_ptr.vmem [resolvable:$true] %s235_s14  ;;  %s260_s16 = int_to_ptr.vmem [resolvable:$true] %s259_s16 }
  0x55   : > { %s6340_s20 = scalar_lea.hbm %s8144_s2, 16 }
  0x56   : > { %p6341_p1 = scmp.ne.s32.totalorder %s8144_s2, %s6340_s20  ;;  %p6347_p12 = scmp.lt.u32.totalorder %s6340_s20, %s8144_s2 }
  0x58   : > { %p6343_p3 = pnand %p6341_p1, %p6642_p8 }
  0x5a   : > { %p6344_p11 = pneg %p6343_p3 }
  0x5c   : > { %p6349_p13 = pnand %p6347_p12, %p6344_p11 }
  0x5e   : > { %6352 = shalt.err (!%p6349_p13)
}
  0x5f   : > { %s6353_s13 = scalar_lea.vmem %s236_s14, 16  ;;  %s6360_s22 = scalar_lea.vmem %s236_s14, 32 }
  0x60   : > { %p6354_p0 = scmp.ne.s32.totalorder %s236_s14, %s6353_s13  ;;  %p6361_p7 = scmp.lt.s32.totalorder %s236_s14, %s236_s14 }
  0x61   : > { %p6362_p9 = scmp.lt.s32.totalorder %s6360_s22, %s6353_s13 }
  0x62   : > { %p6356_p2 = pnand %p6354_p0, %p6642_p8 }
  0x63   : > { %p6363_p4 = por %p6362_p9, %p6361_p7 }
  0x64   : > { %p6357_p5 = pneg %p6356_p2 }
  0x66   : > { %p6364_p10 = pnand %p6363_p4, %p6357_p5 }
  0x68   : > { %6367 = shalt.err (!%p6364_p10)
}
  0x69   : > { %6120 = dma.hbm_to_vmem [thread:$0]  (!%p6626_p6), %s8144_s2, 16, %s236_s14, [#allocation7]  }
  0x6a   : > { %s6368_s20 = scalar_lea.hbm %s8146_s4, 16 }
  0x6b   : > { %p6369_p1 = scmp.ne.s32.totalorder %s8146_s4, %s6368_s20  ;;  %p6375_p12 = scmp.lt.u32.totalorder %s6368_s20, %s8146_s4 }
  0x6d   : > { %p6371_p3 = pnand %p6369_p1, %p6642_p8 }
  0x6f   : > { %p6372_p11 = pneg %p6371_p3 }
  0x71   : > { %p6377_p13 = pnand %p6375_p12, %p6372_p11 }
  0x73   : > { %6380 = shalt.err (!%p6377_p13)
}
  0x74   : > { %s6381_s13 = scalar_lea.vmem %s260_s16, 16  ;;  %s6388_s14 = scalar_lea.vmem %s260_s16, 32 }
  0x75   : > { %p6382_p0 = scmp.ne.s32.totalorder %s260_s16, %s6381_s13  ;;  %p6389_p7 = scmp.lt.s32.totalorder %s260_s16, %s260_s16 }
  0x76   : > { %p6390_p9 = scmp.lt.s32.totalorder %s6388_s14, %s6381_s13 }
  0x77   : > { %p6384_p2 = pnand %p6382_p0, %p6642_p8 }
  0x78   : > { %p6391_p4 = por %p6390_p9, %p6389_p7 }
  0x79   : > { %p6385_p5 = pneg %p6384_p2 }
  0x7b   : > { %p6392_p10 = pnand %p6391_p4, %p6385_p5 }
  0x7d   : > { %6395 = shalt.err (!%p6392_p10)
}
  0x7e   : > { %6126 = dma.hbm_to_vmem [thread:$0]  (!%p6626_p6), %s8146_s4, 16, %s260_s16, [#allocation10]  }
  0x7f   : > { %s6543_s15 = smov [#allocation14]   ;;  %s6396_s21 = scalar_lea.hbm %s8148_s6, 16 }
  0x80   : > { %s281_s17 = sshll.u32 %s6543_s15, 4  ;;  %p6397_p1 = scmp.ne.s32.totalorder %s8148_s6, %s6396_s21  ;;  %s282_s17 = int_to_ptr.vmem [resolvable:$true] %s281_s17 }
  0x81   : > { %p6403_p12 = scmp.lt.u32.totalorder %s6396_s21, %s8148_s6 }
  0x82   : > { %p6399_p3 = pnand %p6397_p1, %p6642_p8 }
  0x84   : > { %p6400_p11 = pneg %p6399_p3 }
  0x86   : > { %p6405_p13 = pnand %p6403_p12, %p6400_p11 }
  0x88   : > { %6408 = shalt.err (!%p6405_p13)
}
  0x89   : > { %s6409_s16 = scalar_lea.vmem %s282_s17, 16  ;;  %s6416_s14 = scalar_lea.vmem %s282_s17, 32 }
  0x8a   : > { %p6410_p0 = scmp.ne.s32.totalorder %s282_s17, %s6409_s16  ;;  %p6417_p7 = scmp.lt.s32.totalorder %s282_s17, %s282_s17 }
  0x8b   : > { %p6418_p9 = scmp.lt.s32.totalorder %s6416_s14, %s6409_s16 }
  0x8c   : > { %p6412_p2 = pnand %p6410_p0, %p6642_p8 }
  0x8d   : > { %p6419_p4 = por %p6418_p9, %p6417_p7 }
  0x8e   : > { %p6413_p5 = pneg %p6412_p2 }
  0x90   : > { %p6420_p10 = pnand %p6419_p4, %p6413_p5 }
  0x92   : > { %6423 = shalt.err (!%p6420_p10)
}
  0x93   : > { %6132 = dma.hbm_to_vmem [thread:$0]  (!%p6626_p6), %s8148_s6, 16, %s282_s17, [#allocation13]  }
  0x94   : > { %s4817_s19 = sadd.s32 4294967294, %s6532_s27   ;;  %s6764_s11 = sadd.s32 1, %s6532_s27  }
  0x95   : > { %s30_s15 = ssub.s32 %s6532_s27, %s6764_s11  ;;  %s33_s18 = sadd.s32 1, %s6528_s26 }
  0x96   : > { %p31_p8 = scmp.eq.s32.totalorder %s30_s15, 0  ;;  %p40_p1 = scmp.ne.s32.totalorder %s6528_s26, %s6524_s25 }
  0x97   : > { %p41_p3 = scmp.eq.s32.totalorder %s6532_s27, 0  ;;  %p46_p11 = scmp.ne.s32.totalorder %s6524_s25, %s6520_s24 }
  0x98   : > { %s6775_s20 = scalar_select %p31_p8, %s6528_s26, %s33_s18  }
  0x99   : > { %p6777_p12 = por %p41_p3, %p40_p1  ;;  %p8161_p13 = scmp.eq.s32.totalorder %s6610_s30, 0 }
  0x9a   : > { %p196_p0 = scmp.eq.s32.totalorder %s6610_s30, 1  ;;  %p202_p2 = scmp.eq.s32.totalorder %s4817_s19, 1 }
  0x9b   : > { %p6783_p6 = por %p8161_p13, %p46_p11  ;;  %p6147_p5 = scmp.lt.s32.totalorder %s6532_s27, 2 }
  0x9c   : > { %s292_s29 = sand.u32 1, %s6528_s26   ;;  %p6790_p7 = por %p196_p0, %p40_p1 }
  0x9d   : > { %p6794_p9 = por %p202_p2, %p46_p11  ;;  %s4826_s13 = sshll.u32 %s292_s29, 7 }
  0x9e   : > { %s8163_s12 = scalar_select %p6790_p7, 1, 0 }
  0x9f   : > { %s8164_s10 = scalar_select %p6794_p9, 1, 0 }
  0xa0   : > { %s5143_s16 = sshll.u32 %s6532_s27, 11  ;;  %s296_s19 = scalar_lea.vmem [#allocation3], %s4826_s13 }
  0xa1   : > { %s6802_s9 = scalar_lea.hbm %s8142_s0, %s5143_s16  ;;  %s303_s15 = sshll.u32 %s296_s19, 4  ;;  %s6804_s15 = int_to_ptr.vmem [resolvable:$true] %s303_s15 }
  0xa2   : > { %p6808_p4 = pnand %p6147_p5, %p6777_p12  ;;  %s6812_s23 = scalar_lea.sflag [#allocation4], %s292_s29 }
  0xa3   : > { %s6424_s14 = scalar_lea.hbm %s6802_s9, 2048  ;;  %s6429_s21 = scalar_lea.hbm %s8142_s0, 4096 }
  0xa4   : > { %p6425_p10 = scmp.ne.s32.totalorder %s6802_s9, %s6424_s14  ;;  %p6426_p8 = pneg %p6808_p4 }
  0xa5   : > { %p6430_p11 = scmp.lt.u32.totalorder %s6802_s9, %s8142_s0  ;;  %p6431_p12 = scmp.lt.u32.totalorder %s6429_s21, %s6424_s14 }
  0xa6   : > { %p6427_p1 = pnand %p6426_p8, %p6425_p10  ;;  %p6433_p0 = scmp.lt.u32.totalorder %s6424_s14, %s6802_s9 }
  0xa7   : > { %p6432_p13 = por %p6431_p12, %p6430_p11 }
  0xa8   : > { %p6428_p3 = pneg %p6427_p1 }
  0xa9   : > { %p6434_p2 = por %p6433_p0, %p6432_p13 }
  0xab   : > { %p6435_p5 = pnand %p6434_p2, %p6428_p3 }
  0xad   : > { %6438 = shalt.err (!%p6435_p5)
}
  0xae   : > { %s6439_s29 = scalar_lea.vmem %s6804_s15, 2048  ;;  %s6544_s13 = smov [#allocation3]  }
  0xaf   : > { %p6440_p10 = scmp.ne.s32.totalorder %s6804_s15, %s6439_s29  ;;  %s6444_s16 = sshll.u32 %s6544_s13, 4  ;;  %s6445_s16 = int_to_ptr.vmem [resolvable:$false] %s6444_s16 }
  0xb0   : > { %s6446_s22 = scalar_lea.vmem %s6445_s16, 4096  ;;  %p6447_p7 = scmp.lt.s32.totalorder %s6804_s15, %s6445_s16 }
  0xb1   : > { %p6442_p1 = pnand %p6440_p10, %p6426_p8  ;;  %p6448_p11 = scmp.lt.s32.totalorder %s6446_s22, %s6439_s29 }
  0xb3   : > { %p6443_p9 = pneg %p6442_p1  ;;  %p6449_p12 = por %p6448_p11, %p6447_p7 }
  0xb5   : > { %p6450_p13 = pnand %p6449_p12, %p6443_p9 }
  0xb7   : > { %6453 = shalt.err (!%p6450_p13)
}
  0xb8   : > { %s8166_s14 = smov 64   ;;  %p8167_p8 = scmp.ne.s32.totalorder %s8157_s8, 0 }
  0xb9   : > { %6136 = dma.hbm_to_vmem [thread:$0]  (!%p6808_p4), %s6802_s9, 2048, %s6804_s15, %s6812_s23, %s8166_s14, %s8166_s14, %s6538_s28  }
  0xba   : > { %315 = sbr.rel (%p8167_p8) target bundleno = 1328 (0x530), region = 48 }
  0xc1   : > { %s6846_s21 = sand.u32 1, %s6524_s25  }
  0xc2   : > { %s4830_s19 = sshll.u32 %s6846_s21, 7  ;;  %s318_s29 = scalar_lea.sflag [#allocation4], %s6846_s21 }
  0xc3   : > { %s6850_s13 = scalar_lea.vmem [#allocation3], %s4830_s19 }
  0xc4   : > { %6499 = dma.done.wait (%p6783_p6), %s318_s29, 2048  }
  0xc5   : > { %6501 = vsyncadd (%p6783_p6), %s318_s29, 4294965248  ;;  %p8168_p7 = scmp.eq.s32.totalorder %s6610_s30, 0 }
  0xc7   : > { %6503 = dma.done.wait (%p8168_p7), [#allocation7], 144   ;;  %p8169_p9 = pmov %p8168_p7 }
  0xc8   : > { %p8170_p4 = pmov %p8168_p7 }
  0xc9   : > { %6505 = vsyncadd (%p8169_p9), [#allocation7], 4294967152 }
  0xca   : > { %6507 = dma.done.wait (%p8170_p4), [#allocation10], 304   ;;  %p8171_p3 = pmov %p8170_p4 }
  0xcc   : > { %6509 = vsyncadd (%p8171_p3), [#allocation10], 4294966992  ;;  %p8172_p0 = pmov %p8171_p3 }
  0xce   : > { %6511 = dma.done.wait (%p8172_p0), [#allocation13], 48   ;;  %p8173_p2 = pmov %p8172_p0 }
  0xcf   : > { %v6200_v0 = vld [vmem:[#allocation6] sm:$0xff]   ;;  %vm504_vm0 = vcmask 130048   ;;  %v6202_v2 = vld [vmem:[%s6850_s13 + $0x8] sm:$0xff]   ;;  %v6203_v3 = vld [vmem:[%s6850_s13 + $0x10] sm:$0xff]   ;;  %vm749_vm1 = vcmask 24576   ;;  %vm1569_vm6 = vcmask 1041408  }
  0xd0   : > { %6513 = vsyncadd (%p8173_p2), [#allocation13], 4294967248  ;;  %v6201_v1 = vld [vmem:[%s6850_s13] sm:$0xff]   ;;  %5443 = vmatprep.subr.bf16.mxu0 %v6200_v0  ;;  %v6204_v4 = vld [vmem:[%s6850_s13 + $0x18] sm:$0xff]   ;;  %vm756_vm2 = vsmask.f32 256 }
  0xd1   : > { %5444 = vmatpush3.bf16.msra.mxu0 %v6200_v0  ;;  %5445 = vmatprep.mubr.msk.bf16.mxu0 %vm504_vm0, %v6201_v1  ;;  %v6205_v5 = vld [vmem:[%s6850_s13 + $0x20] sm:$0xff]   ;;  %v6206_v6 = vld [vmem:[%s6850_s13 + $0x28] sm:$0xff]   ;;  %v6207_v7 = vld [vmem:[%s6850_s13 + $0x30] sm:$0xff]   ;;  %vm812_vm4 = vsmask.f32 7938  ;;  %vm746_vm7 = vcmask 27648  }
  0xd2   : > { %v6208_v8 = vld [vmem:[%s6850_s13 + $0x38] sm:$0xff]   ;;  %v6209_v9 = vld [vmem:[%s6850_s13 + $0x40] sm:$0xff]   ;;  %v6210_v10 = vld [vmem:[%s6850_s13 + $0x48] sm:$0xff]   ;;  %vm964_vm8 = vsmask.f32 4368  ;;  %vm1520_vm11 = vcmask 31744  }
  0xd3   : > { %v6211_v11 = vld [vmem:[%s6850_s13 + $0x50] sm:$0xff]   ;;  %v6212_v12 = vld [vmem:[%s6850_s13 + $0x58] sm:$0xff]   ;;  %v6213_v13 = vld [vmem:[%s6850_s13 + $0x60] sm:$0xff]   ;;  %vm2166_vm12 = vsmask.f32 3328  ;;  %vm3369_vm15 = vcmask 1042432  }
  0xd4   : > { %5446 = vmatmul.mubr.msk.bf16.vlgmr.msra.gmra.mrb[0].mxu0 %vm504_vm0, %v6202_v2  ;;  %v6214_v14 = vld [vmem:[%s6850_s13 + $0x68] sm:$0xff]   ;;  %v6215_v15 = vld [vmem:[%s6850_s13 + $0x70] sm:$0xff]   ;;  %v6216_v16 = vld [vmem:[%s6850_s13 + $0x78] sm:$0xff]   ;;  %vm2167_vm13 = vsmask.f32 7440  ;;  %s4837_s8 = sshll.u32 %s6846_s21, 8 }
  0xd5   : > { %5449 = vmatprep.mubr.msk.bf16.mxu0 %vm504_vm0, %v6203_v3  ;;  %vm6902_vm3 = vmand %vm749_vm1, %vm756_vm2  ;;  %v764_v18 = vld [vmem:[#allocation2 + $0x18] sm:$0x1]  ;;  %v761_v21 = vld [vmem:[#allocation2 + $0xc] sm:$0x1]  ;;  %s7985_s23 = scalar_lea.vmem [#allocation15], %s4837_s8  ;;  %s5176_s28 = sshll.u32 %s6610_s30, 12 }
  0xd6   : > { %v765_v19 = vsel %vm6902_vm3, 0, %v764_v18  ;;  %vm6910_vm5 = vmand %vm749_vm1, %vm812_vm4  ;;  %v762_v22 = vsel %vm6902_vm3, 0, %v761_v21  ;;  %v820_v23 = vld [vmem:[#allocation2 + $0x20] sm:$0x1]  ;;  %v817_v25 = vld [vmem:[#allocation2 + $0x14] sm:$0x1]  ;;  %s8090_s18 = scalar_lea.hbm %s8149_s7, %s5176_s28 }
  0xd7   : > { %766 = vst [vmem:[#allocation2 + $0x18] sm:$0x1] %v765_v19  ;;  %763 = vst [vmem:[#allocation2 + $0xc] sm:$0x1] %v762_v22  ;;  %v821_v24 = vsel %vm6910_vm5, 0, %v820_v23  ;;  %v818_v26 = vsel %vm6910_vm5, 0, %v817_v25 }
  0xd8   : > { %822 = vst [vmem:[#allocation2 + $0x20] sm:$0x1] %v821_v24  ;;  %819 = vst [vmem:[#allocation2 + $0x14] sm:$0x1] %v818_v26  ;;  %v770_v27 = vld [vmem:[#allocation2 + $0x30] sm:$0x1] }
  0xd9   : > { %v771_v28 = vsel %vm6902_vm3, 0, %v770_v27  ;;  %v767_v29 = vld [vmem:[#allocation2 + $0x24] sm:$0x1]  ;;  %v826_v31 = vld [vmem:[#allocation2 + $0x38] sm:$0x1]  ;;  %v6545_v26 = vmov 0   ;;  %vm7008_vm9 = vmand %vm746_vm7, %vm812_vm4 }
  0xda   : > { %772 = vst [vmem:[#allocation2 + $0x30] sm:$0x1] %v771_v28  ;;  %v768_v30 = vsel %vm6902_vm3, 0, %v767_v29  ;;  %v827_v32 = vsel %vm6910_vm5, 0, %v826_v31  ;;  %v823_v33 = vld [vmem:[#allocation2 + $0x2c] sm:$0x1]  ;;  %vm7015_vm10 = vmor %vm756_vm2, %vm964_vm8 }
  0xdb   : > { %769 = vst [vmem:[#allocation2 + $0x24] sm:$0x1] %v768_v30  ;;  %828 = vst [vmem:[#allocation2 + $0x38] sm:$0x1] %v827_v32  ;;  %v824_v34 = vsel %vm6910_vm5, 0, %v823_v33  ;;  %s4687_s17 = sshll.u32 %s7985_s23, 4  ;;  %s8092_s17 = int_to_ptr.vmem [resolvable:$true] %s4687_s17 }
  0xdc   : > { %5450 = vmatmul.mubr.msk.bf16.gmra.mrb[4].mxu0 %vm504_vm0, %v6204_v4  ;;  %825 = vst [vmem:[#allocation2 + $0x2c] sm:$0x1] %v824_v34  ;;  %v776_v35 = vld [vmem:[#allocation2 + $0x48] sm:$0x1]  ;;  %v773_v37 = vld [vmem:[#allocation2 + $0x3c] sm:$0x1]  ;;  %vm7244_vm14 = vmor %vm2166_vm12, %vm2167_vm13 }
  0xdd   : > { %5453 = vmatprep.mubr.msk.bf16.mxu0 %vm504_vm0, %v6205_v5  ;;  %v777_v36 = vsel %vm6902_vm3, 0, %v776_v35  ;;  %v774_v38 = vsel %vm6902_vm3, 0, %v773_v37  ;;  %v832_v39 = vld [vmem:[#allocation2 + $0x50] sm:$0x1]  ;;  %v829_v41 = vld [vmem:[#allocation2 + $0x44] sm:$0x1] }
  0xde   : > { %778 = vst [vmem:[#allocation2 + $0x48] sm:$0x1] %v777_v36  ;;  %775 = vst [vmem:[#allocation2 + $0x3c] sm:$0x1] %v774_v38  ;;  %v833_v40 = vsel %vm6910_vm5, 0, %v832_v39  ;;  %v830_v43 = vsel %vm6910_vm5, 0, %v829_v41 }
  0xdf   : > { %834 = vst [vmem:[#allocation2 + $0x50] sm:$0x1] %v833_v40  ;;  %v1439_v42 = vld [vmem:[#allocation9 + $0x6] sm:$0x3]  ;;  %831 = vst [vmem:[#allocation2 + $0x44] sm:$0x1] %v830_v43 }
  0xe0   : > { %6075 = vmatprep.subr.msk.bf16.mxu0 %vm1569_vm6, %v1439_v42  ;;  %v1571_v44 = vsel %vm1569_vm6, %v1439_v42, 0  ;;  %v782_v45 = vld [vmem:[#allocation2 + $0x60] sm:$0x1]  ;;  %v779_v47 = vld [vmem:[#allocation2 + $0x54] sm:$0x1]  ;;  %s4674_s30 = scalar_lea.sflag [#allocation5], %s6846_s21 }
  0xe1   : > { %5478 = vmatpush3.bf16.msra.mxu0 %v1571_v44  ;;  %v783_v46 = vsel %vm6902_vm3, 0, %v782_v45  ;;  %v780_v48 = vsel %vm6902_vm3, 0, %v779_v47  ;;  %v838_v49 = vld [vmem:[#allocation2 + $0x68] sm:$0x1]  ;;  %v835_v51 = vld [vmem:[#allocation2 + $0x5c] sm:$0x1] }
  0xe2   : > { %784 = vst [vmem:[#allocation2 + $0x60] sm:$0x1] %v783_v46  ;;  %781 = vst [vmem:[#allocation2 + $0x54] sm:$0x1] %v780_v48  ;;  %v839_v50 = vsel %vm6910_vm5, 0, %v838_v49  ;;  %v836_v52 = vsel %vm6910_vm5, 0, %v835_v51 }
  0xe3   : > { %840 = vst [vmem:[#allocation2 + $0x68] sm:$0x1] %v839_v50  ;;  %837 = vst [vmem:[#allocation2 + $0x5c] sm:$0x1] %v836_v52  ;;  %v788_v53 = vld [vmem:[#allocation2 + $0x78] sm:$0x1] }
  0xe4   : > { %5454 = vmatmul.mubr.msk.bf16.gmra.mrb[8].mxu0 %vm504_vm0, %v6206_v6  ;;  %v789_v54 = vsel %vm6902_vm3, 0, %v788_v53  ;;  %v785_v55 = vld [vmem:[#allocation2 + $0x6c] sm:$0x1]  ;;  %v844_v57 = vld [vmem:[#allocation2 + $0x80] sm:$0x1]  ;;  %s6454_s16 = scalar_lea.vmem %s8092_s17, 4096 }
  0xe5   : > { %5457 = vmatprep.mubr.msk.bf16.mxu0 %vm504_vm0, %v6207_v7  ;;  %790 = vst [vmem:[#allocation2 + $0x78] sm:$0x1] %v789_v54  ;;  %v786_v56 = vsel %vm6902_vm3, 0, %v785_v55  ;;  %v845_v58 = vsel %vm6910_vm5, 0, %v844_v57  ;;  %v841_v59 = vld [vmem:[#allocation2 + $0x74] sm:$0x1]  ;;  %p6455_p6 = scmp.ne.s32.totalorder %s8092_s17, %s6454_s16 }
  0xe6   : > { %787 = vst [vmem:[#allocation2 + $0x6c] sm:$0x1] %v786_v56  ;;  %846 = vst [vmem:[#allocation2 + $0x80] sm:$0x1] %v845_v58  ;;  %v842_v60 = vsel %vm6910_vm5, 0, %v841_v59  ;;  %p8192_p5 = scmp.ne.s32.totalorder %s8163_s12, 0 }
  0xe7   : > { %843 = vst [vmem:[#allocation2 + $0x74] sm:$0x1] %v842_v60  ;;  %v794_v61 = vld [vmem:[#allocation2 + $0x90] sm:$0x1]  ;;  %v791_v63 = vld [vmem:[#allocation2 + $0x84] sm:$0x1] }
  0xe8   : > { %v795_v62 = vsel %vm6902_vm3, 0, %v794_v61  ;;  %v792_v0 = vsel %vm6902_vm3, 0, %v791_v63  ;;  %v850_v1 = vld [vmem:[#allocation2 + $0x98] sm:$0x1]  ;;  %v847_v3 = vld [vmem:[#allocation2 + $0x8c] sm:$0x1]  ;;  %p6456_p10 = pnand %p6455_p6, %p8192_p5 }
  0xe9   : > { %796 = vst [vmem:[#allocation2 + $0x90] sm:$0x1] %v795_v62  ;;  %793 = vst [vmem:[#allocation2 + $0x84] sm:$0x1] %v792_v0  ;;  %v851_v2 = vsel %vm6910_vm5, 0, %v850_v1  ;;  %v848_v4 = vsel %vm6910_vm5, 0, %v847_v3 }
  0xea   : > { %852 = vst [vmem:[#allocation2 + $0x98] sm:$0x1] %v851_v2  ;;  %849 = vst [vmem:[#allocation2 + $0x8c] sm:$0x1] %v848_v4  ;;  %v800_v5 = vld [vmem:[#allocation2 + $0xa8] sm:$0x1]  ;;  %p6457_p1 = pneg %p6456_p10 }
  0xeb   : > { %v801_v6 = vsel %vm6902_vm3, 0, %v800_v5  ;;  %v797_v7 = vld [vmem:[#allocation2 + $0x9c] sm:$0x1]  ;;  %v862_v18 = vld [vmem:[#allocation2 + $0xc8] sm:$0x1]  ;;  %s6546_s22 = smov [#allocation15]  }
  0xec   : > { %5458 = vmatmul.mubr.msk.bf16.gmra.mrb[12].mxu0 %vm504_vm0, %v6208_v8  ;;  %802 = vst [vmem:[#allocation2 + $0xa8] sm:$0x1] %v801_v6  ;;  %v798_v8 = vsel %vm6902_vm3, 0, %v797_v7  ;;  %v863_v19 = vsel %vm6910_vm5, 0, %v862_v18  ;;  %v859_v21 = vld [vmem:[#allocation2 + $0xbc] sm:$0x1] }
  0xed   : > { %5461 = vmatprep.mubr.msk.bf16.mxu0 %vm504_vm0, %v6209_v9  ;;  %v856_v9 = vld [vmem:[#allocation2 + $0xb0] sm:$0x1]  ;;  %799 = vst [vmem:[#allocation2 + $0x9c] sm:$0x1] %v798_v8  ;;  %864 = vst [vmem:[#allocation2 + $0xc8] sm:$0x1] %v863_v19 }
  0xee   : > { %v860_v22 = vsel %vm6910_vm5, 0, %v859_v21  ;;  %v2554_v23 = vld [vmem:[#allocation9 + $0x2] sm:$0x3]  ;;  %v6978_v24 = vld [vmem:[#allocation9 + $0x8] sm:$0x3]  ;;  %s6458_s14 = sshll.u32 %s6546_s22, 4  ;;  %s6459_s14 = int_to_ptr.vmem [resolvable:$false] %s6458_s14 }
  0xef   : > { %861 = vst [vmem:[#allocation2 + $0xbc] sm:$0x1] %v860_v22  ;;  %6079 = vmatprep.subr.msk.bf16.mxu1 %vm1569_vm6, %v2554_v23  ;;  %v6982_v25 = vsel %vm1569_vm6, %v2554_v23, 0  ;;  %747 = vst.msk [vmem:[#allocation2] sm:$0xf] %vm746_vm7, %v6545_v26  ;;  %s6460_s19 = scalar_lea.vmem %s6459_s14, 8192  ;;  %p6461_p11 = scmp.lt.s32.totalorder %s8092_s17, %s6459_s14 }
  0xf0   : > { %5818 = vmatpush3.bf16.msra.mxu1 %v6982_v25  ;;  %748 = vst.msk [vmem:[#allocation2 + $0x4] sm:$0xf] %vm746_vm7, %v6545_v26  ;;  %752 = vst.msk [vmem:[#allocation2 + $0xcc] sm:$0xf] %vm746_vm7, %v6545_v26  ;;  %v6995_v29 = vld [vmem:[#allocation9] sm:$0x3]  ;;  %p6462_p12 = scmp.lt.s32.totalorder %s6460_s19, %s6454_s16 }
  0xf1   : > { %6080 = vmatprep.subr.msk.bf16.mxu1 %vm1569_vm6, %v6978_v24  ;;  %750 = vst.msk [vmem:[#allocation2 + $0x8] sm:$0x1] %vm749_vm1, %v6545_v26  ;;  %754 = vst.msk [vmem:[#allocation2 + $0xd4] sm:$0x1] %vm749_vm1, %v6545_v26  ;;  %6076 = vmatprep.subr.msk.bf16.mxu0 %vm1569_vm6, %v6995_v29  ;;  %v6999_v30 = vld [vmem:[#allocation8] ss:$0 sm:$0xff] }
  0xf2   : > { %753 = vst.msk [vmem:[#allocation2 + $0xd0] sm:$0xf] %vm746_vm7, %v6545_v26  ;;  %v1296_v58 = vld [vmem:[#allocation2 + $0x18] sm:$0xf]  ;;  %v1289_v2 = vld [vmem:[#allocation2 + $0xc] sm:$0xf]  ;;  %p6463_p13 = por %p6462_p12, %p6461_p11 }
  0xf3   : > { %vm3370_vm1 = vcmask 1046532  }
  0xf4   : > { %5462 = vmatmul.mubr.msk.bf16.gmra.mrb[16].mxu0 %vm504_vm0, %v6210_v10  ;;  %v857_v10 = vsel %vm6910_vm5, 0, %v856_v9  ;;  %v1300_v9 = vld [vmem:[#allocation2 + $0x20] sm:$0x1]  ;;  %vm7522_vm2 = vmor %vm3369_vm15, %vm3370_vm1  ;;  %p6464_p8 = pnand %p6463_p13, %p6457_p1 }
  0xf5   : > { %5465 = vmatprep.mubr.msk.bf16.mxu0 %vm504_vm0, %v6211_v11  ;;  %v853_v11 = vld [vmem:[#allocation2 + $0xa4] sm:$0x1]  ;;  %858 = vst [vmem:[#allocation2 + $0xb0] sm:$0x1] %v857_v10 }
  0xf6   : > { %v758_v27 = vld [vmem:[#allocation2] sm:$0x1] }
  0xf7   : > { %v759_v28 = vsel %vm6902_vm3, 0, %v758_v27 }
  0xf8   : > { %760 = vst [vmem:[#allocation2] sm:$0x1] %v759_v28 }
  0xfc   : > { %5466 = vmatmul.mubr.msk.bf16.gmra.mrb[20].mxu0 %vm504_vm0, %v6212_v12  ;;  %v854_v12 = vsel %vm6910_vm5, 0, %v853_v11 }
  0xfd   : > { %5469 = vmatprep.mubr.msk.bf16.mxu0 %vm504_vm0, %v6213_v13  ;;  %855 = vst [vmem:[#allocation2 + $0xa4] sm:$0x1] %v854_v12  ;;  %v806_v13 = vld [vmem:[#allocation2 + $0xc0] sm:$0x1] }
 0x104   : > { %5470 = vmatmul.mubr.msk.bf16.gmra.mrb[24].mxu0 %vm504_vm0, %v6214_v14  ;;  %v807_v14 = vsel %vm6902_vm3, 0, %v806_v13 }
 0x105   : > { %5473 = vmatprep.mubr.msk.bf16.mxu0 %vm504_vm0, %v6215_v15  ;;  %v803_v15 = vld [vmem:[#allocation2 + $0xb4] sm:$0x1]  ;;  %808 = vst [vmem:[#allocation2 + $0xc0] sm:$0x1] %v807_v14 }
 0x10c   : > { %5474 = vmatmul.mubr.msk.bf16.gmra.mrb[28].mxu0 %vm504_vm0, %v6216_v16  ;;  %v804_v16 = vsel %vm6902_vm3, 0, %v803_v15  ;;  %v1293_v15 = vld [vmem:[#allocation2 + $0x14] sm:$0x1] }
 0x10d   : > { %805 = vst [vmem:[#allocation2 + $0xb4] sm:$0x1] %v804_v16 }
 0x1a7   : > { %v5447_v31 = vpop.f32.mrb[0].mxu0 }
 0x1a8   : > { %v596_v32 = vadd.f32 %v5447_v31, %v6999_v30  ;;  %v587_v33 = vpop.f32.mrb[1].mxu0 }
 0x1a9   : > { %v588_v34 = vadd.f32 %v6999_v30, %v587_v33  ;;  %v5448_v35 = vpop.f32.mrb[2].mxu0 }
 0x1aa   : > { %v716_v36 = vmax.f32 %v596_v32, 0.0  ;;  %v599_v37 = vadd.f32 %v5448_v35, %v6999_v30  ;;  %v590_v38 = vpop.f32.mrb[3].mxu0 }
 0x1ab   : > { %v714_v39 = vmax.f32 %v588_v34, 0.0  ;;  %v591_v40 = vadd.f32 %v6999_v30, %v590_v38 }
 0x1ac   : > { %v5146_v41 = vpack.c.bf16 %v716_v36, %v716_v36  ;;  %v717_v42 = vmax.f32 %v599_v37, 0.0 }
 0x1ad   : > { %v5144_v43 = vpack.c.bf16 %v714_v39, %v714_v39  ;;  %v715_v44 = vmax.f32 %v591_v40, 0.0  ;;  %v1310_v40 = vld [vmem:[#allocation2 + $0x30] sm:$0xf] }
 0x1ae   : > { %v984_v45 = vshrl.u32 %v5146_v41, 16  ;;  %v5147_v46 = vpack.c.bf16 %v717_v42, %v717_v42  ;;  %v987_v47 = vshll.u32 %v5146_v41, 16 }
 0x1af   : > { %v967_v48 = vshrl.u32 %v5144_v43, 16  ;;  %v970_v49 = vshll.u32 %v5144_v43, 16  ;;  %v5145_v50 = vpack.c.bf16 %v715_v44, %v715_v44  ;;  %v5451_v51 = vpop.f32.mrb[4].mxu0 }
 0x1b0   : > { %v986_v52 = vrot.slane %v984_v45, 7  ;;  %v992_v53 = vshrl.u32 %v5147_v46, 16  ;;  %v995_v54 = vshll.u32 %v5147_v46, 16  ;;  %v612_v55 = vadd.f32 %v5451_v51, %v6999_v30  ;;  %v603_v56 = vpop.f32.mrb[5].mxu0 }
 0x1b1   : > { %v969_v59 = vrot.slane %v967_v48, 7  ;;  %v975_v60 = vshrl.u32 %v5145_v50, 16  ;;  %v978_v61 = vshll.u32 %v5145_v50, 16  ;;  %v604_v62 = vadd.f32 %v6999_v30, %v603_v56  ;;  %v5452_v63 = vpop.f32.mrb[6].mxu0  ;;  %v1303_v48 = vld [vmem:[#allocation2 + $0x24] sm:$0xf] }
 0x1b2   : > { %v989_v0 = vor.u32 %v987_v47, %v986_v52  ;;  %v990_v1 = vrot.slane %v986_v52, 4  ;;  %v994_v3 = vrot.slane %v992_v53, 7  ;;  %v720_v4 = vmax.f32 %v612_v55, 0.0  ;;  %v606_v5 = vpop.f32.mrb[7].mxu0 }
 0x1b3   : > { %v972_v6 = vor.u32 %v970_v49, %v969_v59  ;;  %v973_v7 = vrot.slane %v969_v59, 4  ;;  %v977_v10 = vrot.slane %v975_v60, 7  ;;  %v718_v11 = vmax.f32 %v604_v62, 0.0 }
 0x1b4   : > { %v1297_v12 = vsel %vm7008_vm9, %v989_v0, %v1296_v58  ;;  %v997_v13 = vor.u32 %v995_v54, %v994_v3  ;;  %v999_v14 = vrot.slane %v994_v3, 4  ;;  %v5150_v16 = vpack.c.bf16 %v720_v4, %v720_v4  ;;  %v1314_v4 = vld [vmem:[#allocation2 + $0x38] sm:$0x1] }
 0x1b5   : > { %1298 = vst [vmem:[#allocation2 + $0x18] sm:$0xf] %v1297_v12  ;;  %v1290_v18 = vsel %vm7008_vm9, %v972_v6, %v1289_v2  ;;  %v980_v19 = vor.u32 %v978_v61, %v977_v10  ;;  %v982_v21 = vrot.slane %v977_v10, 4  ;;  %v5148_v22 = vpack.c.bf16 %v718_v11, %v718_v11 }
 0x1b6   : > { %1291 = vst [vmem:[#allocation2 + $0xc] sm:$0xf] %v1290_v18  ;;  %v998_v23 = vsel %vm7015_vm10, %v990_v1, %v997_v13  ;;  %v1301_v26 = vsel %vm6902_vm3, %v999_v14, %v1300_v9  ;;  %v1018_v27 = vshrl.u32 %v5150_v16, 16  ;;  %v1021_v32 = vshll.u32 %v5150_v16, 16 }
 0x1b7   : > { %1299 = vst.msk [vmem:[#allocation2 + $0x1c] sm:$0xf] %vm746_vm7, %v998_v23  ;;  %1302 = vst [vmem:[#allocation2 + $0x20] sm:$0x1] %v1301_v26  ;;  %v981_v28 = vsel %vm7015_vm10, %v973_v7, %v980_v19  ;;  %v1294_v31 = vsel %vm6902_vm3, %v982_v21, %v1293_v15  ;;  %v1001_v33 = vshrl.u32 %v5148_v22, 16  ;;  %v5455_v34 = vpop.f32.mrb[8].mxu0  ;;  %v615_v36 = vadd.f32 %v5452_v63, %v6999_v30 }
 0x1b8   : > { %1292 = vst.msk [vmem:[#allocation2 + $0x10] sm:$0xf] %vm746_vm7, %v981_v28  ;;  %1295 = vst [vmem:[#allocation2 + $0x14] sm:$0x1] %v1294_v31  ;;  %v7033_v35 = vrot.slane %v1018_v27, 7  ;;  %v607_v37 = vadd.f32 %v6999_v30, %v606_v5  ;;  %v628_v38 = vadd.f32 %v5455_v34, %v6999_v30  ;;  %v619_v39 = vpop.f32.mrb[9].mxu0 }
 0x1b9   : > { %v7038_v41 = vrot.slane %v1001_v33, 7  ;;  %v1004_v42 = vshll.u32 %v5148_v22, 16  ;;  %v620_v43 = vadd.f32 %v6999_v30, %v619_v39  ;;  %v5456_v44 = vpop.f32.mrb[10].mxu0  ;;  %v1743_v45 = vsel %vm1569_vm6, %v6995_v29, 0  ;;  %v1307_v5 = vld [vmem:[#allocation2 + $0x2c] sm:$0x1] }
 0x1ba   : > { %v1023_v46 = vor.u32 %v1021_v32, %v7033_v35  ;;  %v1024_v47 = vrot.slane %v7033_v35, 4  ;;  %v721_v49 = vmax.f32 %v615_v36, 0.0  ;;  %v719_v50 = vmax.f32 %v607_v37, 0.0  ;;  %v622_v51 = vpop.f32.mrb[11].mxu0  ;;  %v1324_v15 = vld [vmem:[#allocation2 + $0x48] sm:$0xf] }
 0x1bb   : > { %v1006_v52 = vor.u32 %v1004_v42, %v7038_v41  ;;  %v1007_v53 = vrot.slane %v7038_v41, 4  ;;  %v724_v54 = vmax.f32 %v628_v38, 0.0  ;;  %v722_v55 = vmax.f32 %v620_v43, 0.0  ;;  %v1317_v35 = vld [vmem:[#allocation2 + $0x3c] sm:$0xf] }
 0x1bc   : > { %v1311_v56 = vsel %vm7008_vm9, %v1023_v46, %v1310_v40  ;;  %v5151_v58 = vpack.c.bf16 %v721_v49, %v721_v49  ;;  %v5149_v59 = vpack.c.bf16 %v719_v50, %v719_v50  ;;  %v631_v29 = vadd.f32 %v5456_v44, %v6999_v30 }
 0x1bd   : > { %1312 = vst [vmem:[#allocation2 + $0x30] sm:$0xf] %v1311_v56  ;;  %v1304_v60 = vsel %vm7008_vm9, %v1006_v52, %v1303_v48  ;;  %v5154_v61 = vpack.c.bf16 %v724_v54, %v724_v54  ;;  %v5152_v62 = vpack.c.bf16 %v722_v55, %v722_v55  ;;  %v623_v63 = vadd.f32 %v6999_v30, %v622_v51  ;;  %v3304_v17 = vld [vmem:[#allocation2 + $0xc] sm:$0xe] }
 0x1be   : > { %1305 = vst [vmem:[#allocation2 + $0x24] sm:$0xf] %v1304_v60  ;;  %v1026_v0 = vshrl.u32 %v5151_v58, 16  ;;  %v1029_v1 = vshll.u32 %v5151_v58, 16  ;;  %v1009_v2 = vshrl.u32 %v5149_v59, 16  ;;  %v1012_v3 = vshll.u32 %v5149_v59, 16 }
 0x1bf   : > { %v1052_v6 = vshrl.u32 %v5154_v61, 16  ;;  %v1055_v7 = vshll.u32 %v5154_v61, 16  ;;  %v1035_v9 = vshrl.u32 %v5152_v62, 16  ;;  %v1038_v10 = vshll.u32 %v5152_v62, 16  ;;  %v5459_v11 = vpop.f32.mrb[12].mxu0  ;;  %v7053_v12 = vld [vmem:[#allocation2 + $0xc] sm:$0xff]  }
 0x1c0   : > { %v1028_v13 = vrot.slane %v1026_v0, 7  ;;  %v1011_v14 = vrot.slane %v1009_v2, 7  ;;  %v725_v16 = vmax.f32 %v631_v29, 0.0  ;;  %v723_v18 = vmax.f32 %v623_v63, 0.0  ;;  %v635_v19 = vpop.f32.mrb[13].mxu0  ;;  %v7055_v21 = vld [vmem:[#allocation2 + $0x18] sm:$0xff]   ;;  %5479 = vmatprep.mubr.msk.bf16.mxu0 %vm1520_vm11, %v7053_v12 }
 0x1c1   : > { %v7057_v22 = vrot.slane %v1052_v6, 7  ;;  %v7059_v23 = vrot.slane %v1035_v9, 7  ;;  %v644_v26 = vadd.f32 %v5459_v11, %v6999_v30  ;;  %v636_v27 = vadd.f32 %v6999_v30, %v635_v19  ;;  %v5460_v28 = vpop.f32.mrb[14].mxu0  ;;  %5480 = vmatmul.mubr.msk.bf16.vlgmr.msra.gmra.mrb[32].mxu0 %vm1520_vm11, %v7055_v21  ;;  %v1328_v59 = vld [vmem:[#allocation2 + $0x50] sm:$0x1] }
 0x1c2   : > { %v1031_v31 = vor.u32 %v1029_v1, %v1028_v13  ;;  %v1033_v32 = vrot.slane %v1028_v13, 4  ;;  %v1014_v33 = vor.u32 %v1012_v3, %v1011_v14  ;;  %v1016_v34 = vrot.slane %v1011_v14, 4  ;;  %v638_v36 = vpop.f32.mrb[15].mxu0  ;;  %5512 = vmatpush3.bf16.msra.mxu0 %v1743_v45  ;;  %v1321_v2 = vld [vmem:[#allocation2 + $0x44] sm:$0x1] }
 0x1c3   : > { %v1057_v37 = vor.u32 %v1055_v7, %v7057_v22  ;;  %v1058_v38 = vrot.slane %v7057_v22, 4  ;;  %v1040_v39 = vor.u32 %v1038_v10, %v7059_v23  ;;  %v1041_v40 = vrot.slane %v7059_v23, 4  ;;  %v1331_v19 = vld [vmem:[#allocation2 + $0x54] sm:$0xf] }
 0x1c4   : > { %v1032_v41 = vsel %vm7015_vm10, %v1024_v47, %v1031_v31  ;;  %v1315_v42 = vsel %vm6902_vm3, %v1033_v32, %v1314_v4  ;;  %v1015_v43 = vsel %vm7015_vm10, %v1007_v53, %v1014_v33  ;;  %v1308_v44 = vsel %vm6902_vm3, %v1016_v34, %v1307_v5 }
 0x1c5   : > { %1313 = vst.msk [vmem:[#allocation2 + $0x34] sm:$0xf] %vm746_vm7, %v1032_v41  ;;  %1316 = vst [vmem:[#allocation2 + $0x38] sm:$0x1] %v1315_v42  ;;  %v1325_v45 = vsel %vm7008_vm9, %v1057_v37, %v1324_v15  ;;  %v1318_v46 = vsel %vm7008_vm9, %v1040_v39, %v1317_v35  ;;  %v5155_v47 = vpack.c.bf16 %v725_v16, %v725_v16  ;;  %v728_v49 = vmax.f32 %v644_v26, 0.0 }
 0x1c6   : > { %1306 = vst.msk [vmem:[#allocation2 + $0x28] sm:$0xf] %vm746_vm7, %v1015_v43  ;;  %1309 = vst [vmem:[#allocation2 + $0x2c] sm:$0x1] %v1308_v44  ;;  %v5153_v48 = vpack.c.bf16 %v723_v18, %v723_v18  ;;  %v726_v50 = vmax.f32 %v636_v27, 0.0  ;;  %v647_v51 = vadd.f32 %v5460_v28, %v6999_v30  ;;  %v639_v52 = vadd.f32 %v6999_v30, %v638_v36 }
 0x1c7   : > { %1326 = vst [vmem:[#allocation2 + $0x48] sm:$0xf] %v1325_v45  ;;  %1319 = vst [vmem:[#allocation2 + $0x3c] sm:$0xf] %v1318_v46  ;;  %v1060_v53 = vshrl.u32 %v5155_v47, 16  ;;  %v1063_v54 = vshll.u32 %v5155_v47, 16  ;;  %v5158_v29 = vpack.c.bf16 %v728_v49, %v728_v49 }
 0x1c8   : > { %v1043_v55 = vshrl.u32 %v5153_v48, 16  ;;  %v1046_v56 = vshll.u32 %v5153_v48, 16  ;;  %v5463_v58 = vpop.f32.mrb[16].mxu0  ;;  %v5156_v60 = vpack.c.bf16 %v726_v50, %v726_v50  ;;  %v729_v61 = vmax.f32 %v647_v51, 0.0  ;;  %v1338_v18 = vld [vmem:[#allocation2 + $0x60] sm:$0xf] }
 0x1c9   : > { %v727_v62 = vmax.f32 %v639_v52, 0.0  ;;  %v651_v63 = vpop.f32.mrb[17].mxu0  ;;  %v1062_v0 = vrot.slane %v1060_v53, 7  ;;  %v660_v3 = vadd.f32 %v5463_v58, %v6999_v30  ;;  %v1086_v6 = vshrl.u32 %v5158_v29, 16 }
 0x1ca   : > { %v1045_v1 = vrot.slane %v1043_v55, 7  ;;  %v652_v4 = vadd.f32 %v6999_v30, %v651_v63  ;;  %v5464_v5 = vpop.f32.mrb[18].mxu0  ;;  %v1089_v7 = vshll.u32 %v5158_v29, 16  ;;  %v1069_v9 = vshrl.u32 %v5156_v60, 16  ;;  %v1342_v55 = vld [vmem:[#allocation2 + $0x68] sm:$0x1] }
 0x1cb   : > { %v1072_v10 = vshll.u32 %v5156_v60, 16  ;;  %v654_v11 = vpop.f32.mrb[19].mxu0  ;;  %v1065_v13 = vor.u32 %v1063_v54, %v1062_v0  ;;  %v1067_v14 = vrot.slane %v1062_v0, 4  ;;  %v1088_v22 = vrot.slane %v1086_v6, 7 }
 0x1cc   : > { %v1048_v15 = vor.u32 %v1046_v56, %v1045_v1  ;;  %v1050_v16 = vrot.slane %v1045_v1, 4  ;;  %v1071_v23 = vrot.slane %v1069_v9, 7  ;;  %v5159_v26 = vpack.c.bf16 %v729_v61, %v729_v61  ;;  %v7091_v31 = vld [vmem:[#allocation2 + $0x30] sm:$0xff]   ;;  %v1335_v56 = vld [vmem:[#allocation2 + $0x5c] sm:$0x1] }
 0x1cd   : > { %v5157_v27 = vpack.c.bf16 %v727_v62, %v727_v62  ;;  %v7089_v28 = vld [vmem:[#allocation2 + $0x24] sm:$0xff]   ;;  %v1066_v32 = vsel %vm7015_vm10, %v1058_v38, %v1065_v13  ;;  %v1329_v33 = vsel %vm6902_vm3, %v1067_v14, %v1328_v59  ;;  %v1091_v36 = vor.u32 %v1089_v7, %v1088_v22 }
 0x1ce   : > { %v1049_v34 = vsel %vm7015_vm10, %v1041_v40, %v1048_v15  ;;  %v1322_v35 = vsel %vm6902_vm3, %v1050_v16, %v1321_v2  ;;  %1327 = vst.msk [vmem:[#allocation2 + $0x4c] sm:$0xf] %vm746_vm7, %v1066_v32  ;;  %1330 = vst [vmem:[#allocation2 + $0x50] sm:$0x1] %v1329_v33  ;;  %v1092_v37 = vrot.slane %v1088_v22, 4  ;;  %v1074_v39 = vor.u32 %v1072_v10, %v1071_v23 }
 0x1cf   : > { %1320 = vst.msk [vmem:[#allocation2 + $0x40] sm:$0xf] %vm746_vm7, %v1049_v34  ;;  %1323 = vst [vmem:[#allocation2 + $0x44] sm:$0x1] %v1322_v35  ;;  %v1075_v41 = vrot.slane %v1071_v23, 4  ;;  %5483 = vmatprep.mubr.msk.bf16.mxu0 %vm1520_vm11, %v7089_v28  ;;  %v1094_v38 = vshrl.u32 %v5159_v26, 16  ;;  %v1339_v45 = vsel %vm7008_vm9, %v1091_v36, %v1338_v18  ;;  %v663_v52 = vadd.f32 %v5464_v5, %v6999_v30 }
 0x1d0   : > { %v1097_v42 = vshll.u32 %v5159_v26, 16  ;;  %v1077_v43 = vshrl.u32 %v5157_v27, 16  ;;  %v1080_v40 = vshll.u32 %v5157_v27, 16  ;;  %5484 = vmatmul.mubr.msk.bf16.gmra.mrb[36].mxu0 %vm1520_vm11, %v7091_v31  ;;  %v5467_v44 = vpop.f32.mrb[20].mxu0  ;;  %v1332_v46 = vsel %vm7008_vm9, %v1074_v39, %v1331_v19  ;;  %1340 = vst [vmem:[#allocation2 + $0x60] sm:$0xf] %v1339_v45 }
 0x1d1   : > { %v732_v47 = vmax.f32 %v660_v3, 0.0  ;;  %v730_v48 = vmax.f32 %v652_v4, 0.0  ;;  %v667_v49 = vpop.f32.mrb[21].mxu0  ;;  %1333 = vst [vmem:[#allocation2 + $0x54] sm:$0xf] %v1332_v46  ;;  %v1096_v50 = vrot.slane %v1094_v38, 7  ;;  %v655_v53 = vadd.f32 %v6999_v30, %v654_v11 }
 0x1d2   : > { %v1079_v51 = vrot.slane %v1077_v43, 7  ;;  %v5468_v54 = vpop.f32.mrb[22].mxu0  ;;  %v676_v29 = vadd.f32 %v5467_v44, %v6999_v30  ;;  %v668_v60 = vadd.f32 %v6999_v30, %v667_v49  ;;  %v1352_v11 = vld [vmem:[#allocation2 + $0x78] sm:$0xf]  ;;  %v733_v16 = vmax.f32 %v663_v52, 0.0 }
 0x1d3   : > { %v5162_v58 = vpack.c.bf16 %v732_v47, %v732_v47  ;;  %v5160_v59 = vpack.c.bf16 %v730_v48, %v730_v48  ;;  %v670_v61 = vpop.f32.mrb[23].mxu0  ;;  %v1099_v62 = vor.u32 %v1097_v42, %v1096_v50  ;;  %v1101_v63 = vrot.slane %v1096_v50, 4  ;;  %v1345_v22 = vld [vmem:[#allocation2 + $0x6c] sm:$0xf] }
 0x1d4   : > { %v1082_v0 = vor.u32 %v1080_v40, %v1079_v51  ;;  %v1084_v1 = vrot.slane %v1079_v51, 4  ;;  %v731_v18 = vmax.f32 %v655_v53, 0.0  ;;  %v736_v23 = vmax.f32 %v676_v29, 0.0  ;;  %v1356_v53 = vld [vmem:[#allocation2 + $0x80] sm:$0x1] }
 0x1d5   : > { %v1120_v2 = vshrl.u32 %v5162_v58, 16  ;;  %v1123_v3 = vshll.u32 %v5162_v58, 16  ;;  %v1103_v4 = vshrl.u32 %v5160_v59, 16  ;;  %v1106_v5 = vshll.u32 %v5160_v59, 16  ;;  %v7131_v19 = vld [vmem:[#allocation2 + $0x48] sm:$0xff]  }
 0x1d6   : > { %v1100_v6 = vsel %vm7015_vm10, %v1092_v37, %v1099_v62  ;;  %v1343_v7 = vsel %vm6902_vm3, %v1101_v63, %v1342_v55  ;;  %v1083_v9 = vsel %vm7015_vm10, %v1075_v41, %v1082_v0  ;;  %v1336_v10 = vsel %vm6902_vm3, %v1084_v1, %v1335_v56  ;;  %v7123_v13 = vld [vmem:[#allocation2 + $0x3c] sm:$0xff]  }
 0x1d7   : > { %1341 = vst.msk [vmem:[#allocation2 + $0x64] sm:$0xf] %vm746_vm7, %v1100_v6  ;;  %1344 = vst [vmem:[#allocation2 + $0x68] sm:$0x1] %v1343_v7  ;;  %v7127_v14 = vrot.slane %v1120_v2, 7  ;;  %v7129_v15 = vrot.slane %v1103_v4, 7  ;;  %v679_v27 = vadd.f32 %v5468_v54, %v6999_v30  ;;  %v671_v32 = vadd.f32 %v6999_v30, %v670_v61  ;;  %5487 = vmatprep.mubr.msk.bf16.mxu0 %vm1520_vm11, %v7123_v13 }
 0x1d8   : > { %1334 = vst.msk [vmem:[#allocation2 + $0x58] sm:$0xf] %vm746_vm7, %v1083_v9  ;;  %1337 = vst [vmem:[#allocation2 + $0x5c] sm:$0x1] %v1336_v10  ;;  %v734_v26 = vmax.f32 %v668_v60, 0.0  ;;  %v5471_v33 = vpop.f32.mrb[24].mxu0  ;;  %5488 = vmatmul.mubr.msk.bf16.gmra.mrb[40].mxu0 %vm1520_vm11, %v7131_v19  ;;  %v5163_v41 = vpack.c.bf16 %v733_v16, %v733_v16  ;;  %v5161_v38 = vpack.c.bf16 %v731_v18, %v731_v18 }
 0x1d9   : > { %v1125_v34 = vor.u32 %v1123_v3, %v7127_v14  ;;  %v1126_v35 = vrot.slane %v7127_v14, 4  ;;  %v1108_v36 = vor.u32 %v1106_v5, %v7129_v15  ;;  %v1109_v37 = vrot.slane %v7129_v15, 4  ;;  %v683_v39 = vpop.f32.mrb[25].mxu0  ;;  %v1349_v54 = vld [vmem:[#allocation2 + $0x74] sm:$0x1] }
 0x1da   : > { %v5166_v42 = vpack.c.bf16 %v736_v23, %v736_v23  ;;  %v5164_v43 = vpack.c.bf16 %v734_v26, %v734_v26  ;;  %v7143_v40 = vpop.f32.mrb[26].mxu0  ;;  %v737_v46 = vmax.f32 %v679_v27, 0.0  ;;  %v735_v47 = vmax.f32 %v671_v32, 0.0  ;;  %v1366_v61 = vld [vmem:[#allocation2 + $0x90] sm:$0xf] }
 0x1db   : > { %v1353_v44 = vsel %vm7008_vm9, %v1125_v34, %v1352_v11  ;;  %v1346_v45 = vsel %vm7008_vm9, %v1108_v36, %v1345_v22  ;;  %v686_v48 = vpop.f32.mrb[27].mxu0  ;;  %v1128_v49 = vshrl.u32 %v5163_v41, 16  ;;  %v1131_v50 = vshll.u32 %v5163_v41, 16  ;;  %v1359_v11 = vld [vmem:[#allocation2 + $0x84] sm:$0xf] }
 0x1dc   : > { %1354 = vst [vmem:[#allocation2 + $0x78] sm:$0xf] %v1353_v44  ;;  %1347 = vst [vmem:[#allocation2 + $0x6c] sm:$0xf] %v1346_v45  ;;  %v1111_v51 = vshrl.u32 %v5161_v38, 16  ;;  %v1114_v52 = vshll.u32 %v5161_v38, 16  ;;  %v5167_v62 = vpack.c.bf16 %v737_v46, %v737_v46  ;;  %v5165_v63 = vpack.c.bf16 %v735_v47, %v735_v47 }
 0x1dd   : > { %v1154_v55 = vshrl.u32 %v5166_v42, 16  ;;  %v1157_v56 = vshll.u32 %v5166_v42, 16  ;;  %v1137_v58 = vshrl.u32 %v5164_v43, 16  ;;  %v1140_v59 = vshll.u32 %v5164_v43, 16 }
 0x1de   : > { %v1130_v29 = vrot.slane %v1128_v49, 7  ;;  %v1113_v60 = vrot.slane %v1111_v51, 7  ;;  %v692_v3 = vadd.f32 %v5471_v33, %v6999_v30  ;;  %v684_v4 = vadd.f32 %v6999_v30, %v683_v39  ;;  %v7155_v5 = vld [vmem:[#allocation2 + $0x60] sm:$0xff]  }
 0x1df   : > { %v7149_v0 = vld [vmem:[#allocation2 + $0x54] sm:$0xff]   ;;  %v1156_v1 = vrot.slane %v1154_v55, 7  ;;  %v7151_v2 = vrot.slane %v1137_v58, 7  ;;  %v5475_v14 = vpop.f32.mrb[28].mxu0  ;;  %v1162_v39 = vshrl.u32 %v5167_v62, 16  ;;  %v1165_v41 = vshll.u32 %v5167_v62, 16 }
 0x1e0   : > { %v1133_v6 = vor.u32 %v1131_v50, %v1130_v29  ;;  %v1135_v7 = vrot.slane %v1130_v29, 4  ;;  %v1116_v9 = vor.u32 %v1114_v52, %v1113_v60  ;;  %v1118_v10 = vrot.slane %v1113_v60, 4  ;;  %5491 = vmatprep.mubr.msk.bf16.mxu0 %vm1520_vm11, %v7149_v0  ;;  %v699_v23 = vpop.f32.mrb[29].mxu0  ;;  %v1370_v50 = vld [vmem:[#allocation2 + $0x98] sm:$0x1] }
 0x1e1   : > { %v1159_v15 = vor.u32 %v1157_v56, %v1156_v1  ;;  %v1160_v16 = vrot.slane %v1156_v1, 4  ;;  %v1142_v18 = vor.u32 %v1140_v59, %v7151_v2  ;;  %v1143_v22 = vrot.slane %v7151_v2, 4  ;;  %5492 = vmatmul.mubr.msk.bf16.gmra.mrb[44].mxu0 %vm1520_vm11, %v7155_v5  ;;  %v7171_v34 = vpop.f32.mrb[30].mxu0  ;;  %v7186_v55 = vld [vmem:[#allocation9 + $0xc] sm:$0x3] }
 0x1e2   : > { %v1134_v26 = vsel %vm7015_vm10, %v1126_v35, %v1133_v6  ;;  %v1357_v27 = vsel %vm6902_vm3, %v1135_v7, %v1356_v53  ;;  %v1117_v32 = vsel %vm7015_vm10, %v1109_v37, %v1116_v9  ;;  %v1350_v33 = vsel %vm6902_vm3, %v1118_v10, %v1349_v54  ;;  %v7179_v37 = vpop.f32.mrb[31].mxu0  ;;  %v1363_v59 = vld [vmem:[#allocation2 + $0x8c] sm:$0x1]  ;;  %6077 = vmatprep.subr.msk.bf16.mxu0 %vm1569_vm6, %v7186_v55  ;;  %v1380_v2 = vld [vmem:[#allocation2 + $0xa8] sm:$0xf] }
 0x1e3   : > { %1355 = vst.msk [vmem:[#allocation2 + $0x7c] sm:$0xf] %vm746_vm7, %v1134_v26  ;;  %1358 = vst [vmem:[#allocation2 + $0x80] sm:$0x1] %v1357_v27  ;;  %v1367_v35 = vsel %vm7008_vm9, %v1159_v15, %v1366_v61  ;;  %v1360_v36 = vsel %vm7008_vm9, %v1142_v18, %v1359_v11  ;;  %v1145_v38 = vshrl.u32 %v5165_v63, 16  ;;  %v1148_v42 = vshll.u32 %v5165_v63, 16 }
 0x1e4   : > { %1348 = vst.msk [vmem:[#allocation2 + $0x70] sm:$0xf] %vm746_vm7, %v1117_v32  ;;  %1351 = vst [vmem:[#allocation2 + $0x74] sm:$0x1] %v1350_v33  ;;  %v740_v43 = vmax.f32 %v692_v3, 0.0  ;;  %v738_v44 = vmax.f32 %v684_v4, 0.0  ;;  %v695_v46 = vadd.f32 %v7143_v40, %v6999_v30  ;;  %v687_v47 = vadd.f32 %v6999_v30, %v686_v48 }
 0x1e5   : > { %1368 = vst [vmem:[#allocation2 + $0x90] sm:$0xf] %v1367_v35  ;;  %1361 = vst [vmem:[#allocation2 + $0x84] sm:$0xf] %v1360_v36  ;;  %v1164_v45 = vrot.slane %v1162_v39, 7  ;;  %v708_v49 = vadd.f32 %v5475_v14, %v6999_v30  ;;  %v1147_v51 = vrot.slane %v1145_v38, 7  ;;  %v700_v54 = vadd.f32 %v6999_v30, %v699_v23 }
 0x1e6   : > { %v5170_v52 = vpack.c.bf16 %v740_v43, %v740_v43  ;;  %v5168_v53 = vpack.c.bf16 %v738_v44, %v738_v44  ;;  %v741_v29 = vmax.f32 %v695_v46, 0.0  ;;  %v739_v60 = vmax.f32 %v687_v47, 0.0  ;;  %v1373_v10 = vld [vmem:[#allocation2 + $0x9c] sm:$0xf]  ;;  %v1384_v46 = vld [vmem:[#allocation2 + $0xb0] sm:$0x1] }
 0x1e7   : > { %v1167_v56 = vor.u32 %v1165_v41, %v1164_v45  ;;  %v1169_v58 = vrot.slane %v1164_v45, 4  ;;  %v1150_v40 = vor.u32 %v1148_v42, %v1147_v51  ;;  %v1152_v48 = vrot.slane %v1147_v51, 4 }
 0x1e8   : > { %v1188_v61 = vshrl.u32 %v5170_v52, 16  ;;  %v1191_v62 = vshll.u32 %v5170_v52, 16  ;;  %v1171_v3 = vshrl.u32 %v5168_v53, 16  ;;  %v1174_v4 = vshll.u32 %v5168_v53, 16 }
 0x1e9   : > { %v1168_v63 = vsel %vm7015_vm10, %v1160_v16, %v1167_v56  ;;  %v1371_v1 = vsel %vm6902_vm3, %v1169_v58, %v1370_v50  ;;  %v1151_v6 = vsel %vm7015_vm10, %v1143_v22, %v1150_v40  ;;  %v1364_v7 = vsel %vm6902_vm3, %v1152_v48, %v1363_v59  ;;  %v2136_v58 = vld [vmem:[#allocation2 + $0x60] sm:$0xf] }
 0x1ea   : > { %1369 = vst.msk [vmem:[#allocation2 + $0x94] sm:$0xf] %vm746_vm7, %v1168_v63  ;;  %1372 = vst [vmem:[#allocation2 + $0x98] sm:$0x1] %v1371_v1  ;;  %v1190_v9 = vrot.slane %v1188_v61, 7  ;;  %v5171_v11 = vpack.c.bf16 %v741_v29, %v741_v29  ;;  %v1173_v15 = vrot.slane %v1171_v3, 7  ;;  %v5169_v16 = vpack.c.bf16 %v739_v60, %v739_v60 }
 0x1eb   : > { %v7199_v14 = vld [vmem:[#allocation2 + $0x6c] sm:$0xff]   ;;  %1362 = vst.msk [vmem:[#allocation2 + $0x88] sm:$0xf] %vm746_vm7, %v1151_v6  ;;  %1365 = vst [vmem:[#allocation2 + $0x8c] sm:$0x1] %v1364_v7  ;;  %v744_v18 = vmax.f32 %v708_v49, 0.0  ;;  %v711_v50 = vadd.f32 %v7171_v34, %v6999_v30  ;;  %v703_v51 = vadd.f32 %v6999_v30, %v7179_v37 }
 0x1ec   : > { %v742_v23 = vmax.f32 %v700_v54, 0.0  ;;  %v7202_v26 = vld [vmem:[#allocation2 + $0x78] sm:$0xff]   ;;  %v1193_v27 = vor.u32 %v1191_v62, %v1190_v9  ;;  %v1194_v32 = vrot.slane %v1190_v9, 4  ;;  %v1196_v22 = vshrl.u32 %v5171_v11, 16  ;;  %5495 = vmatprep.mubr.msk.bf16.mxu0 %vm1520_vm11, %v7199_v14  ;;  %v1377_v49 = vld [vmem:[#allocation2 + $0xa4] sm:$0x1] }
 0x1ed   : > { %v1199_v33 = vshll.u32 %v5171_v11, 16  ;;  %v1176_v35 = vor.u32 %v1174_v4, %v1173_v15  ;;  %v1177_v36 = vrot.slane %v1173_v15, 4  ;;  %v1179_v39 = vshrl.u32 %v5169_v16, 16  ;;  %5496 = vmatmul.mubr.msk.bf16.gmra.mrb[48].mxu0 %vm1520_vm11, %v7202_v26  ;;  %v1394_v1 = vld [vmem:[#allocation2 + $0xc0] sm:$0xf] }
 0x1ee   : > { %v1182_v41 = vshll.u32 %v5169_v16, 16  ;;  %v1381_v38 = vsel %vm7008_vm9, %v1193_v27, %v1380_v2  ;;  %v1198_v42 = vrot.slane %v1196_v22, 7  ;;  %v5174_v43 = vpack.c.bf16 %v744_v18, %v744_v18  ;;  %v1387_v7 = vld [vmem:[#allocation2 + $0xb4] sm:$0xf]  ;;  %v2138_v27 = vld [vmem:[#allocation2 + $0x68] sm:$0x1] }
 0x1ef   : > { %v5172_v44 = vpack.c.bf16 %v742_v23, %v742_v23  ;;  %1382 = vst [vmem:[#allocation2 + $0xa8] sm:$0xf] %v1381_v38  ;;  %v1374_v45 = vsel %vm7008_vm9, %v1176_v35, %v1373_v10  ;;  %v1181_v47 = vrot.slane %v1179_v39, 7  ;;  %v745_v30 = vmax.f32 %v711_v50, 0.0  ;;  %v2137_v10 = vld [vmem:[#allocation2 + $0x64] sm:$0xf] }
 0x1f0   : > { %1375 = vst [vmem:[#allocation2 + $0x9c] sm:$0xf] %v1374_v45  ;;  %v1201_v52 = vor.u32 %v1199_v33, %v1198_v42  ;;  %v1203_v53 = vrot.slane %v1198_v42, 4  ;;  %v1222_v54 = vshrl.u32 %v5174_v43, 16  ;;  %v1225_v56 = vshll.u32 %v5174_v43, 16 }
 0x1f1   : > { %v1184_v59 = vor.u32 %v1182_v41, %v1181_v47  ;;  %v1186_v29 = vrot.slane %v1181_v47, 4  ;;  %v1205_v60 = vshrl.u32 %v5172_v44, 16  ;;  %v1208_v40 = vshll.u32 %v5172_v44, 16  ;;  %v7227_v4 = vld [vmem:[#allocation2 + $0x90] sm:$0xff]   ;;  %v2139_v22 = vld [vmem:[#allocation2 + $0x6c] sm:$0xf] }
 0x1f2   : > { %v1202_v48 = vsel %vm7015_vm10, %v1194_v32, %v1201_v52  ;;  %v1385_v34 = vsel %vm6902_vm3, %v1203_v53, %v1384_v46  ;;  %v1224_v61 = vrot.slane %v1222_v54, 7  ;;  %v7220_v37 = vld [vmem:[#allocation2 + $0x84] sm:$0xff]   ;;  %v743_v3 = vmax.f32 %v703_v51, 0.0  ;;  %v1391_v45 = vld [vmem:[#allocation2 + $0xbc] sm:$0x1] }
 0x1f3   : > { %1383 = vst.msk [vmem:[#allocation2 + $0xac] sm:$0xf] %vm746_vm7, %v1202_v48  ;;  %1386 = vst [vmem:[#allocation2 + $0xb0] sm:$0x1] %v1385_v34  ;;  %v1185_v62 = vsel %vm7015_vm10, %v1177_v36, %v1184_v59  ;;  %v1378_v63 = vsel %vm6902_vm3, %v1186_v29, %v1377_v49  ;;  %v1207_v2 = vrot.slane %v1205_v60, 7  ;;  %v5175_v9 = vpack.c.bf16 %v745_v30, %v745_v30 }
 0x1f4   : > { %1376 = vst.msk [vmem:[#allocation2 + $0xa0] sm:$0xf] %vm746_vm7, %v1185_v62  ;;  %1379 = vst [vmem:[#allocation2 + $0xa4] sm:$0x1] %v1378_v63  ;;  %v1227_v6 = vor.u32 %v1225_v56, %v1224_v61  ;;  %v2362_v11 = vshrl.u32 %v2136_v58, 16  ;;  %5499 = vmatprep.mubr.msk.bf16.mxu0 %vm1520_vm11, %v7220_v37  ;;  %v7234_v15 = vsel %vm1569_vm6, %v6978_v24, 0  ;;  %v5173_v23 = vpack.c.bf16 %v743_v3, %v743_v3 }
 0x1f5   : > { %v1228_v16 = vrot.slane %v1224_v61, 4  ;;  %v1210_v18 = vor.u32 %v1208_v40, %v1207_v2  ;;  %v2365_v32 = vshll.u32 %v2136_v58, 16  ;;  %5500 = vmatmul.mubr.msk.bf16.gmra.mrb[52].mxu0 %vm1520_vm11, %v7227_v4  ;;  %v1211_v35 = vrot.slane %v1207_v2, 4  ;;  %v1398_v38 = vld [vmem:[#allocation2 + $0xc8] sm:$0x1] }
 0x1f6   : > { %v1395_v33 = vsel %vm7008_vm9, %v1227_v6, %v1394_v1  ;;  %v1230_v36 = vshrl.u32 %v5175_v9, 16  ;;  %v2364_v39 = vrot.slane %v2362_v11, 4  ;;  %v1233_v41 = vshll.u32 %v5175_v9, 16  ;;  %v2140_v53 = vld [vmem:[#allocation2 + $0x70] sm:$0xf] }
 0x1f7   : > { %1396 = vst [vmem:[#allocation2 + $0xc0] sm:$0xf] %v1395_v33  ;;  %v1388_v24 = vsel %vm7008_vm9, %v1210_v18, %v1387_v7  ;;  %v1213_v42 = vshrl.u32 %v5173_v23, 16  ;;  %v2367_v43 = vrot.slane %v2365_v32, 5  ;;  %v2371_v46 = vshll.u32 %v2137_v10, 16 }
 0x1f8   : > { %1389 = vst [vmem:[#allocation2 + $0xb4] sm:$0xf] %v1388_v24  ;;  %v1232_v44 = vrot.slane %v1230_v36, 7  ;;  %v2375_v47 = vshrl.u32 %v2137_v10, 16  ;;  %v2381_v49 = vshll.u32 %v2138_v27, 16  ;;  %v1216_v51 = vshll.u32 %v5173_v23, 16 }
 0x1f9   : > { %v1215_v50 = vrot.slane %v1213_v42, 7  ;;  %v2368_v52 = vor.u32 %v2367_v43, %v2364_v39  ;;  %v2141_v54 = vld [vmem:[#allocation2 + $0x74] sm:$0x1]  ;;  %v2386_v56 = vshrl.u32 %v2139_v22, 16  ;;  %v2373_v57 = vrot.slane %v2371_v46, 5 }
 0x1fa   : > { %v1235_v58 = vor.u32 %v1233_v41, %v1232_v44  ;;  %v1237_v59 = vrot.slane %v1232_v44, 4  ;;  %v2377_v29 = vrot.slane %v2375_v47, 4  ;;  %v2383_v61 = vrot.slane %v2381_v49, 5  ;;  %v2142_v3 = vld [vmem:[#allocation2 + $0x78] sm:$0xf]  ;;  %v7254_v7 = vld [vmem:[#allocation2 + $0xa8] sm:$0xff]  }
 0x1fb   : > { %v1218_v60 = vor.u32 %v1216_v51, %v1215_v50  ;;  %v1220_v40 = vrot.slane %v1215_v50, 4  ;;  %v2369_v34 = vrot.slane %v2368_v52, 4  ;;  %v7248_v30 = vld [vmem:[#allocation2 + $0x9c] sm:$0xff]   ;;  %v2388_v2 = vrot.slane %v2386_v56, 4  ;;  %v2145_v42 = vld [vmem:[#allocation2 + $0x84] sm:$0xf] }
 0x1fc   : > { %v1236_v62 = vsel %vm7015_vm10, %v1228_v16, %v1235_v58  ;;  %v1399_v63 = vsel %vm6902_vm3, %v1237_v59, %v1398_v38  ;;  %v2378_v1 = vor.u32 %v2377_v29, %v2373_v57  ;;  %v2143_v6 = vld [vmem:[#allocation2 + $0x7c] sm:$0xf]  ;;  %v2389_v16 = vshll.u32 %v2139_v22, 16  ;;  %v2144_v18 = vld [vmem:[#allocation2 + $0x80] sm:$0x1]  ;;  %5503 = vmatprep.mubr.msk.bf16.mxu0 %vm1520_vm11, %v7248_v30 }
 0x1fd   : > { %1397 = vst.msk [vmem:[#allocation2 + $0xc4] sm:$0xf] %vm746_vm7, %v1236_v62  ;;  %1400 = vst [vmem:[#allocation2 + $0xc8] sm:$0x1] %v1399_v63  ;;  %v1219_v9 = vsel %vm7015_vm10, %v1211_v35, %v1218_v60  ;;  %v1392_v10 = vsel %vm6902_vm3, %v1220_v40, %v1391_v45  ;;  %v2374_v11 = vsel %vm7244_vm14, %v2369_v34, %v2373_v57  ;;  %v2395_v27 = vshll.u32 %v2140_v53, 16  ;;  %v6233_v29 = vld [vmem:[#allocation2] sm:$0xff]  }
 0x1fe   : > { %1390 = vst.msk [vmem:[#allocation2 + $0xb8] sm:$0xf] %vm746_vm7, %v1219_v9  ;;  %1393 = vst [vmem:[#allocation2 + $0xbc] sm:$0x1] %v1392_v10  ;;  %v2379_v23 = vrot.slane %v2378_v1, 4  ;;  %v2399_v32 = vshrl.u32 %v2140_v53, 16  ;;  %5504 = vmatmul.mubr.msk.bf16.gmra.mrb[56].mxu0 %vm1520_vm11, %v7254_v7 }
 0x1ff   : > { %v2405_v33 = vshll.u32 %v2141_v54, 16  ;;  %v2391_v8 = vrot.slane %v2389_v16, 5  ;;  %v2410_v35 = vshrl.u32 %v2142_v3, 16  ;;  %v2413_v36 = vshll.u32 %v2142_v3, 16  ;;  %v2146_v47 = vld [vmem:[#allocation2 + $0x88] sm:$0xf] }
 0x200   : > { %v2419_v39 = vshll.u32 %v2143_v6, 16  ;;  %v2384_v22 = vsel %vm7244_vm14, %v2379_v23, %v2383_v61  ;;  %v2397_v24 = vrot.slane %v2395_v27, 5  ;;  %v2401_v41 = vrot.slane %v2399_v32, 4  ;;  %v2147_v56 = vld [vmem:[#allocation2 + $0x8c] sm:$0x1] }
 0x201   : > { %v2407_v38 = vrot.slane %v2405_v33, 5  ;;  %v7270_v43 = vcombine.low %v2374_v11, %v2384_v22  ;;  %v2392_v44 = vor.u32 %v2391_v8, %v2388_v2  ;;  %v2412_v45 = vrot.slane %v2410_v35, 4  ;;  %v2148_v57 = vld [vmem:[#allocation2 + $0x90] sm:$0xf]  ;;  %v7280_v16 = vld [vmem:[#allocation2 + $0x94] sm:$0xf] }
 0x202   : > { %v2415_v46 = vrot.slane %v2413_v36, 5  ;;  %v2402_v49 = vor.u32 %v2401_v41, %v2397_v24  ;;  %v2421_v50 = vrot.slane %v2419_v39, 5  ;;  %v2423_v51 = vshrl.u32 %v2143_v6, 16  ;;  %v7290_v8 = vld [vmem:[#allocation9 + $0xe] sm:$0x3] }
 0x203   : > { %v2429_v52 = vshll.u32 %v2144_v18, 16  ;;  %5597 = vmatprep.mubr.msk.bf16.mxu1 %vm1520_vm11, %v7270_v43  ;;  %v2393_v53 = vrot.slane %v2392_v44, 4  ;;  %v2434_v58 = vshrl.u32 %v2145_v42, 16  ;;  %v2437_v59 = vshll.u32 %v2145_v42, 16  ;;  %v2150_v39 = vld [vmem:[#allocation2 + $0x98] sm:$0x1] }
 0x204   : > { %v2416_v54 = vor.u32 %v2415_v46, %v2412_v45  ;;  %v2403_v60 = vrot.slane %v2402_v49, 4  ;;  %v2425_v40 = vrot.slane %v2423_v51, 4  ;;  %v2443_v61 = vshll.u32 %v2146_v47, 16  ;;  %v7282_v18 = vld [vmem:[#allocation2 + $0xc0] sm:$0xff]   ;;  %v2151_v45 = vld [vmem:[#allocation2 + $0x9c] sm:$0xf] }
 0x205   : > { %v2431_v34 = vrot.slane %v2429_v52, 5  ;;  %v2398_v62 = vsel %vm7244_vm14, %v2393_v53, %v2397_v24  ;;  %v2436_v1 = vrot.slane %v2434_v58, 4  ;;  %v2439_v2 = vrot.slane %v2437_v59, 5  ;;  %v7276_v3 = vld [vmem:[#allocation2 + $0xb4] sm:$0xff]   ;;  %v7302_v51 = vld [vmem:[#allocation2 + $0xa0] sm:$0xf] }
 0x206   : > { %v2417_v63 = vrot.slane %v2416_v54, 4  ;;  %v2408_v6 = vsel %vm7244_vm14, %v2403_v60, %v2407_v38  ;;  %v2426_v9 = vor.u32 %v2425_v40, %v2421_v50  ;;  %v2445_v10 = vrot.slane %v2443_v61, 5  ;;  %5507 = vmatprep.mubr.msk.bf16.mxu0 %vm1520_vm11, %v7276_v3  ;;  %v7312_v40 = vld [vmem:[#allocation2 + $0xa4] sm:$0x1] }
 0x207   : > { %v2447_v11 = vshrl.u32 %v2146_v47, 16  ;;  %v7284_v23 = vcombine.low %v2398_v62, %v2408_v6  ;;  %v2440_v32 = vor.u32 %v2439_v2, %v2436_v1  ;;  %v2453_v33 = vshll.u32 %v2147_v56, 16  ;;  %5508 = vmatmul.mubr.msk.bf16.gmra.mrb[60].mxu0 %vm1520_vm11, %v7282_v18 }
 0x208   : > { %v2422_v27 = vsel %vm7244_vm14, %v2417_v63, %v2421_v50  ;;  %v2427_v35 = vrot.slane %v2426_v9, 4  ;;  %v2458_v22 = vshrl.u32 %v2148_v57, 16  ;;  %v2461_v24 = vshll.u32 %v2148_v57, 16  ;;  %5513 = vmatprep.mubr.msk.bf16.mxu0 %vm1520_vm11, %v6233_v29  ;;  %v2154_v29 = vld [vmem:[#allocation2 + $0xa8] sm:$0xf] }
 0x209   : > { %v2449_v36 = vrot.slane %v2447_v11, 4  ;;  %5598 = vmatmul.mubr.msk.bf16.vlgmr.msra.gmra.mrb[0].mxu1 %vm1520_vm11, %v7284_v23  ;;  %v2441_v41 = vrot.slane %v2440_v32, 4  ;;  %v2455_v38 = vrot.slane %v2453_v33, 5  ;;  %v2467_v42 = vshll.u32 %v7280_v16, 16  ;;  %v7318_v9 = vld [vmem:[#allocation2 + $0xac] sm:$0xf] }
 0x20a   : > { %v2471_v44 = vshrl.u32 %v7280_v16, 16  ;;  %5614 = vmatpush3.bf16.msra.mxu1 %v7234_v15  ;;  %v2432_v46 = vsel %vm7244_vm14, %v2427_v35, %v2431_v34  ;;  %v2460_v49 = vrot.slane %v2458_v22, 4  ;;  %v2463_v50 = vrot.slane %v2461_v24, 5 }
 0x20b   : > { %v2450_v47 = vor.u32 %v2449_v36, %v2445_v10  ;;  %v7304_v52 = vcombine.low %v2422_v27, %v2432_v46  ;;  %v2446_v53 = vsel %vm7244_vm14, %v2441_v41, %v2445_v10  ;;  %v2469_v54 = vrot.slane %v2467_v42, 5  ;;  %6081 = vmatprep.subr.msk.bf16.mxu1 %vm1569_vm6, %v7290_v8  ;;  %v7331_v41 = vld [vmem:[#allocation2 + $0xb0] sm:$0x1] }
 0x20c   : > { %v2473_v56 = vrot.slane %v2471_v44, 4  ;;  %v2464_v15 = vor.u32 %v2463_v50, %v2460_v49  ;;  %v2477_v59 = vshll.u32 %v2150_v39, 16  ;;  %v2482_v57 = vshrl.u32 %v2151_v45, 16  ;;  %8184 = vst [vmem:[#allocation21_spill] sm:$0xff] %v7331_v41  ;;  %v2157_v44 = vld [vmem:[#allocation2 + $0xb4] sm:$0xf] }
 0x20d   : > { %v2451_v58 = vrot.slane %v2450_v47, 4  ;;  %5601 = vmatprep.mubr.msk.bf16.mxu1 %vm1520_vm11, %v7304_v52  ;;  %v2485_v34 = vshll.u32 %v2151_v45, 16  ;;  %v2491_v61 = vshll.u32 %v7302_v51, 16  ;;  %v2495_v62 = vshrl.u32 %v7302_v51, 16  ;;  %v7338_v49 = vld [vmem:[#allocation2 + $0xb8] sm:$0xf] }
 0x20e   : > { %v2474_v60 = vor.u32 %v2473_v56, %v2469_v54  ;;  %v2465_v1 = vrot.slane %v2464_v15, 4  ;;  %v2479_v2 = vrot.slane %v2477_v59, 5  ;;  %v2484_v6 = vrot.slane %v2482_v57, 4  ;;  %8185 = vst [vmem:[#allocation22_spill] sm:$0xff] %v7338_v49 }
 0x20f   : > { %v2456_v63 = vsel %vm7244_vm14, %v2451_v58, %v2455_v38  ;;  %v2487_v27 = vrot.slane %v2485_v34, 5  ;;  %v2493_v32 = vrot.slane %v2491_v61, 5  ;;  %v2497_v35 = vrot.slane %v2495_v62, 4  ;;  %5514 = vmatmul.mubr.msk.bf16.vlgmr.msra.gmra.mrb[32].mxu0 %vm1520_vm11, %v7053_v12  ;;  %v2115_v34 = vld [vmem:[#allocation2 + $0xc] sm:$0xf] }
 0x210   : > { %v7320_v10 = vcombine.low %v2446_v53, %v2456_v63  ;;  %v2475_v11 = vrot.slane %v2474_v60, 4  ;;  %v2470_v33 = vsel %vm7244_vm14, %v2465_v1, %v2469_v54  ;;  %v2501_v36 = vshll.u32 %v7312_v40, 16  ;;  %5517 = vmatprep.mubr.msk.bf16.mxu0 %vm1520_vm11, %v7055_v21  ;;  %v7349_v63 = vld [vmem:[#allocation2 + $0xbc] sm:$0x1] }
 0x211   : > { %v2506_v39 = vshrl.u32 %v2154_v29, 16  ;;  %v2488_v24 = vor.u32 %v2487_v27, %v2484_v6  ;;  %v2509_v38 = vshll.u32 %v2154_v29, 16  ;;  %v2515_v42 = vshll.u32 %v7318_v9, 16  ;;  %8186 = vst [vmem:[#allocation23_spill] sm:$0xff] %v7349_v63  ;;  %v7351_v6 = vld [vmem:[#allocation2 + $0x10] sm:$0xf] }
 0x212   : > { %5602 = vmatmul.mubr.msk.bf16.gmra.mrb[4].mxu1 %vm1520_vm11, %v7320_v10  ;;  %v2480_v22 = vsel %vm7244_vm14, %v2475_v11, %v2479_v2  ;;  %v2498_v46 = vor.u32 %v2497_v35, %v2493_v32  ;;  %v2503_v12 = vrot.slane %v2501_v36, 5  ;;  %v2519_v56 = vshrl.u32 %v7318_v9, 16 }
 0x213   : > { %v7336_v45 = vcombine.low %v2470_v33, %v2480_v22  ;;  %v2508_v47 = vrot.slane %v2506_v39, 4  ;;  %v2489_v50 = vrot.slane %v2488_v24, 4  ;;  %v2511_v53 = vrot.slane %v2509_v38, 5 }
 0x214   : > { %v2517_v54 = vrot.slane %v2515_v42, 5  ;;  %v2499_v58 = vrot.slane %v2498_v46, 4  ;;  %v2525_v15 = vshll.u32 %v7331_v41, 16  ;;  %v2530_v59 = vshrl.u32 %v2157_v44, 16  ;;  %v7361_v42 = vld [vmem:[#allocation2 + $0x14] sm:$0x1] }
 0x215   : > { %5605 = vmatprep.mubr.msk.bf16.mxu1 %vm1520_vm11, %v7336_v45  ;;  %v2533_v21 = vshll.u32 %v2157_v44, 16  ;;  %v2512_v57 = vor.u32 %v2511_v53, %v2508_v47  ;;  %v2521_v29 = vrot.slane %v2519_v56, 4  ;;  %v2539_v60 = vshll.u32 %v7338_v49, 16 }
 0x216   : > { %v2494_v61 = vsel %vm7244_vm14, %v2489_v50, %v2493_v32  ;;  %v2504_v62 = vsel %vm7244_vm14, %v2499_v58, %v2503_v12  ;;  %v2532_v1 = vrot.slane %v2530_v59, 4  ;;  %v2527_v35 = vrot.slane %v2525_v15, 5  ;;  %v2118_v59 = vld [vmem:[#allocation2 + $0x18] sm:$0xf] }
 0x217   : > { %v2535_v2 = vrot.slane %v2533_v21, 5  ;;  %v7353_v11 = vcombine.low %v2494_v61, %v2504_v62  ;;  %v2513_v27 = vrot.slane %v2512_v57, 4  ;;  %v2522_v33 = vor.u32 %v2521_v29, %v2517_v54  ;;  %5518 = vmatmul.mubr.msk.bf16.gmra.mrb[36].mxu0 %vm1520_vm11, %v7089_v28 }
 0x218   : > { %v2541_v39 = vrot.slane %v2539_v60, 5  ;;  %v2543_v22 = vshrl.u32 %v7338_v49, 16  ;;  %v2194_v24 = vshrl.u32 %v2115_v34, 16  ;;  %v2549_v38 = vshll.u32 %v7349_v63, 16  ;;  %5521 = vmatprep.mubr.msk.bf16.mxu0 %vm1520_vm11, %v7091_v31  ;;  %v7374_v31 = vld [vmem:[#allocation2 + $0x1c] sm:$0xf] }
 0x219   : > { %v2536_v36 = vor.u32 %v2535_v2, %v2532_v1  ;;  %v2523_v32 = vrot.slane %v2522_v33, 4  ;;  %v2197_v44 = vshll.u32 %v2115_v34, 16  ;;  %v2203_v46 = vshll.u32 %v7351_v6, 16  ;;  %v7384_v2 = vld [vmem:[#allocation2 + $0x20] sm:$0x1] }
 0x21a   : > { %5606 = vmatmul.mubr.msk.bf16.gmra.mrb[8].mxu1 %vm1520_vm11, %v7353_v11  ;;  %v2518_v12 = vsel %vm7244_vm14, %v2513_v27, %v2517_v54  ;;  %v2545_v50 = vrot.slane %v2543_v22, 4  ;;  %v2196_v28 = vrot.slane %v2194_v24, 4  ;;  %v2207_v15 = vshrl.u32 %v7351_v6, 16 }
 0x21b   : > { %v2537_v47 = vrot.slane %v2536_v36, 4  ;;  %v2528_v53 = vsel %vm7244_vm14, %v2523_v32, %v2527_v35  ;;  %v2199_v56 = vrot.slane %v2197_v44, 5  ;;  %v2205_v58 = vrot.slane %v2203_v46, 5  ;;  %v2121_v32 = vld [vmem:[#allocation2 + $0x24] sm:$0xf] }
 0x21c   : > { %v7371_v21 = vcombine.low %v2518_v12, %v2528_v53  ;;  %v2546_v57 = vor.u32 %v2545_v50, %v2541_v39  ;;  %v2213_v29 = vshll.u32 %v7361_v42, 16  ;;  %v2551_v60 = vrot.slane %v2549_v38, 5  ;;  %v7390_v12 = vld [vmem:[#allocation2 + $0x28] sm:$0xf] }
 0x21d   : > { %v2200_v54 = vor.u32 %v2199_v56, %v2196_v28  ;;  %v2209_v34 = vrot.slane %v2207_v15, 4  ;;  %v7378_v61 = vsel %vm1569_vm6, %v7290_v8, 0  ;;  %v2542_v62 = vsel %vm7244_vm14, %v2537_v47, %v2541_v39 }
 0x21e   : > { %5609 = vmatprep.mubr.msk.bf16.mxu1 %vm1520_vm11, %v7371_v21  ;;  %v2547_v1 = vrot.slane %v2546_v57, 4  ;;  %v2218_v27 = vshrl.u32 %v2118_v59, 16  ;;  %v2221_v33 = vshll.u32 %v2118_v59, 16  ;;  %v2215_v22 = vrot.slane %v2213_v29, 5  ;;  %v2124_v57 = vld [vmem:[#allocation2 + $0x30] sm:$0xf] }
 0x21f   : > { %v2201_v35 = vrot.slane %v2200_v54, 4  ;;  %v2210_v36 = vor.u32 %v2209_v34, %v2205_v58  ;;  %v2227_v24 = vshll.u32 %v7374_v31, 16  ;;  %v2231_v46 = vshrl.u32 %v7374_v31, 16  ;;  %5522 = vmatmul.mubr.msk.bf16.gmra.mrb[40].mxu0 %vm1520_vm11, %v7123_v13  ;;  %v7405_v29 = vld [vmem:[#allocation2 + $0x2c] sm:$0x1] }
 0x220   : > { %v2552_v8 = vsel %vm7244_vm14, %v2547_v1, %v2551_v60  ;;  %v2220_v38 = vrot.slane %v2218_v27, 4  ;;  %v2223_v44 = vrot.slane %v2221_v33, 5  ;;  %5525 = vmatprep.mubr.msk.bf16.mxu0 %vm1520_vm11, %v7131_v19  ;;  %v2237_v15 = vshll.u32 %v7384_v2, 16  ;;  %v7411_v27 = vld [vmem:[#allocation2 + $0x34] sm:$0xf] }
 0x221   : > { %v7394_v39 = vcombine.low %v2542_v62, %v2552_v8  ;;  %v2206_v47 = vsel %vm7244_vm14, %v2201_v35, %v2205_v58  ;;  %v2211_v50 = vrot.slane %v2210_v36, 4  ;;  %v2229_v28 = vrot.slane %v2227_v24, 5 }
 0x222   : > { %v2224_v53 = vor.u32 %v2223_v44, %v2220_v38  ;;  %v2233_v56 = vrot.slane %v2231_v46, 4  ;;  %v2242_v59 = vshrl.u32 %v2121_v32, 16  ;;  %v2245_v58 = vshll.u32 %v2121_v32, 16 }
 0x223   : > { %5610 = vmatmul.mubr.msk.bf16.gmra.mrb[12].mxu1 %vm1520_vm11, %v7394_v39  ;;  %v2216_v13 = vsel %vm7244_vm14, %v2211_v50, %v2215_v22  ;;  %v2251_v60 = vshll.u32 %v7390_v12, 16  ;;  %v2255_v54 = vshrl.u32 %v7390_v12, 16  ;;  %v2239_v1 = vrot.slane %v2237_v15, 5 }
 0x224   : > { %v7409_v19 = vcombine.low %v2206_v47, %v2216_v13  ;;  %v2225_v34 = vrot.slane %v2224_v53, 4  ;;  %v2234_v62 = vor.u32 %v2233_v56, %v2229_v28  ;;  %v2244_v33 = vrot.slane %v2242_v59, 4  ;;  %v7418_v47 = vld [vmem:[#allocation2 + $0x38] sm:$0x1]  ;;  %v2127_v56 = vld [vmem:[#allocation2 + $0x3c] sm:$0xf] }
 0x225   : > { %v2247_v35 = vrot.slane %v2245_v58, 5  ;;  %v2253_v36 = vrot.slane %v2251_v60, 5  ;;  %v2257_v24 = vrot.slane %v2255_v54, 4  ;;  %v2261_v8 = vshll.u32 %v7405_v29, 16 }
 0x226   : > { %5615 = vmatprep.mubr.msk.bf16.mxu1 %vm1520_vm11, %v7409_v19  ;;  %v2230_v22 = vsel %vm7244_vm14, %v2225_v34, %v2229_v28  ;;  %v2235_v32 = vrot.slane %v2234_v62, 4  ;;  %v2266_v38 = vshrl.u32 %v2124_v57, 16  ;;  %v2269_v50 = vshll.u32 %v2124_v57, 16  ;;  %v7428_v62 = vld [vmem:[#allocation2 + $0x40] sm:$0xf] }
 0x227   : > { %v2248_v44 = vor.u32 %v2247_v35, %v2244_v33  ;;  %v2258_v46 = vor.u32 %v2257_v24, %v2253_v36  ;;  %v2275_v53 = vshll.u32 %v7411_v27, 16  ;;  %v2263_v59 = vrot.slane %v2261_v8, 5  ;;  %5526 = vmatmul.mubr.msk.bf16.gmra.mrb[44].mxu0 %vm1520_vm11, %v7149_v0  ;;  %v7433_v24 = vld [vmem:[#allocation9 + $0x4] sm:$0x3] }
 0x228   : > { %v2240_v15 = vsel %vm7244_vm14, %v2235_v32, %v2239_v1  ;;  %v2268_v13 = vrot.slane %v2266_v38, 4  ;;  %v2279_v58 = vshrl.u32 %v7411_v27, 16  ;;  %v2271_v34 = vrot.slane %v2269_v50, 5  ;;  %5529 = vmatprep.mubr.msk.bf16.mxu0 %vm1520_vm11, %v7155_v5  ;;  %v2130_v38 = vld [vmem:[#allocation2 + $0x48] sm:$0xf] }
 0x229   : > { %v7426_v28 = vcombine.low %v2230_v22, %v2240_v15  ;;  %v2249_v60 = vrot.slane %v2248_v44, 4  ;;  %v2259_v54 = vrot.slane %v2258_v46, 4  ;;  %v2277_v57 = vrot.slane %v2275_v53, 5  ;;  %v7444_v46 = vld [vmem:[#allocation2 + $0x44] sm:$0x1] }
 0x22a   : > { %v2281_v33 = vrot.slane %v2279_v58, 4  ;;  %v2285_v1 = vshll.u32 %v7418_v47, 16  ;;  %v2290_v35 = vshrl.u32 %v2127_v56, 16  ;;  %v2272_v32 = vor.u32 %v2271_v34, %v2268_v13 }
 0x22b   : > { %5616 = vmatmul.mubr.msk.bf16.vlgmr.msra.gmra.mrb[16].mxu1 %vm1520_vm11, %v7426_v28  ;;  %v2254_v0 = vsel %vm7244_vm14, %v2249_v60, %v2253_v36  ;;  %v2264_v22 = vsel %vm7244_vm14, %v2259_v54, %v2263_v59  ;;  %v2293_v8 = vshll.u32 %v2127_v56, 16  ;;  %v2299_v58 = vshll.u32 %v7428_v62, 16  ;;  %v7452_v59 = vld [vmem:[#allocation2 + $0x4c] sm:$0xf] }
 0x22c   : > { %5648 = vmatpush3.bf16.msra.mxu1 %v7378_v61  ;;  %v7442_v5 = vcombine.low %v2254_v0, %v2264_v22  ;;  %v2282_v44 = vor.u32 %v2281_v33, %v2277_v57  ;;  %v2292_v50 = vrot.slane %v2290_v35, 4  ;;  %v2273_v53 = vrot.slane %v2272_v32, 4  ;;  %v2133_v0 = vld [vmem:[#allocation2 + $0x54] sm:$0xf] }
 0x22d   : > { %v2295_v15 = vrot.slane %v2293_v8, 5  ;;  %v2303_v36 = vshrl.u32 %v7428_v62, 16  ;;  %6082 = vmatprep.subr.msk.bf16.mxu1 %vm1569_vm6, %v7433_v24  ;;  %v2287_v61 = vrot.slane %v2285_v1, 5  ;;  %v2314_v13 = vshrl.u32 %v2130_v38, 16 }
 0x22e   : > { %5619 = vmatprep.mubr.msk.bf16.mxu1 %vm1520_vm11, %v7442_v5  ;;  %v2283_v56 = vrot.slane %v2282_v44, 4  ;;  %v2317_v60 = vshll.u32 %v2130_v38, 16  ;;  %v2301_v34 = vrot.slane %v2299_v58, 5  ;;  %v2309_v35 = vshll.u32 %v7444_v46, 16  ;;  %v7469_v58 = vld [vmem:[#allocation2 + $0x58] sm:$0xf] }
 0x22f   : > { %v2296_v54 = vor.u32 %v2295_v15, %v2292_v50  ;;  %v2305_v33 = vrot.slane %v2303_v36, 4  ;;  %v2278_v22 = vsel %vm7244_vm14, %v2273_v53, %v2277_v57  ;;  %v2316_v8 = vrot.slane %v2314_v13, 4  ;;  %5530 = vmatmul.mubr.msk.bf16.gmra.mrb[48].mxu0 %vm1520_vm11, %v7199_v14  ;;  %v7463_v50 = vld [vmem:[#allocation2 + $0x50] sm:$0x1]  ;;  %v7473_v13 = vld [vmem:[#allocation2 + $0x5c] sm:$0x1] }
 0x230   : > { %v2288_v32 = vsel %vm7244_vm14, %v2283_v56, %v2287_v61  ;;  %v2319_v63 = vrot.slane %v2317_v60, 5  ;;  %v2323_v15 = vshll.u32 %v7452_v59, 16  ;;  %5533 = vmatprep.mubr.msk.bf16.mxu0 %vm1520_vm11, %v7202_v26  ;;  %v2327_v53 = vshrl.u32 %v7452_v59, 16 }
 0x231   : > { %v7461_v1 = vcombine.low %v2278_v22, %v2288_v32  ;;  %v2297_v38 = vrot.slane %v2296_v54, 4  ;;  %v2306_v44 = vor.u32 %v2305_v33, %v2301_v34  ;;  %v2338_v36 = vshrl.u32 %v2133_v0, 16 }
 0x232   : > { %v2320_v57 = vor.u32 %v2319_v63, %v2316_v8  ;;  %v2311_v56 = vrot.slane %v2309_v35, 5  ;;  %v2325_v61 = vrot.slane %v2323_v15, 5  ;;  %v2341_v60 = vshll.u32 %v2133_v0, 16 }
 0x233   : > { %5620 = vmatmul.mubr.msk.bf16.gmra.mrb[20].mxu1 %vm1520_vm11, %v7461_v1  ;;  %v2307_v14 = vrot.slane %v2306_v44, 4  ;;  %v2302_v54 = vsel %vm7244_vm14, %v2297_v38, %v2301_v34  ;;  %v2329_v33 = vrot.slane %v2327_v53, 4  ;;  %v2333_v26 = vshll.u32 %v7463_v50, 16 }
 0x234   : > { %v2340_v63 = vrot.slane %v2338_v36, 4  ;;  %v2343_v32 = vrot.slane %v2341_v60, 5  ;;  %v2347_v8 = vshll.u32 %v7469_v58, 16  ;;  %v2351_v44 = vshrl.u32 %v7469_v58, 16 }
 0x235   : > { %v2312_v22 = vsel %vm7244_vm14, %v2307_v14, %v2311_v56  ;;  %v2321_v15 = vrot.slane %v2320_v57, 4  ;;  %v2330_v49 = vor.u32 %v2329_v33, %v2325_v61  ;;  %v2357_v0 = vshll.u32 %v7473_v13, 16  ;;  %v6235_v33 = vld [vmem:[#allocation9 + $0x2] sm:$0x3] }
 0x236   : > { %v7482_v35 = vcombine.low %v2302_v54, %v2312_v22  ;;  %v2344_v41 = vor.u32 %v2343_v32, %v2340_v63  ;;  %v2349_v34 = vrot.slane %v2347_v8, 5  ;;  %v2353_v38 = vrot.slane %v2351_v44, 4  ;;  %v809_v54 = vld [vmem:[#allocation2 + $0xcc] sm:$0x1]  ;;  %v865_v22 = vld [vmem:[#allocation2 + $0xd4] sm:$0x1] }
 0x237   : > { %v1917_v53 = vsel %vm1569_vm6, %v7186_v55, 0  ;;  %v2331_v36 = vrot.slane %v2330_v49, 4  ;;  %v2335_v14 = vrot.slane %v2333_v26, 5  ;;  %5534 = vmatmul.mubr.msk.bf16.gmra.mrb[52].mxu0 %vm1520_vm11, %v7220_v37  ;;  %v2326_v57 = vsel %vm7244_vm14, %v2321_v15, %v2325_v61  ;;  %v814_v49 = vld [vmem:[#allocation2 + $0x8] sm:$0x1] }
 0x238   : > { %5623 = vmatprep.mubr.msk.bf16.mxu1 %vm1520_vm11, %v7482_v35  ;;  %v2345_v56 = vrot.slane %v2344_v41, 4  ;;  %v2354_v60 = vor.u32 %v2353_v38, %v2349_v34  ;;  %5537 = vmatprep.mubr.msk.bf16.mxu0 %vm1520_vm11, %v7227_v4  ;;  %v2359_v41 = vrot.slane %v2357_v0, 5  ;;  %v3381_v63 = vrot.slane %v7351_v6, 5 }
 0x239   : > { %5546 = vmatpush3.bf16.msra.mxu0 %v1917_v53  ;;  %v2336_v55 = vsel %vm7244_vm14, %v2331_v36, %v2335_v14  ;;  %v810_v32 = vsel %vm6902_vm3, 0, %v809_v54  ;;  %v815_v8 = vsel %vm6910_vm5, 0, %v814_v49  ;;  %v866_v6 = vsel %vm6910_vm5, 0, %v865_v22  ;;  %v6236_v14 = vld [vmem:[#allocation2 + $0x18] sm:$0xff]  }
 0x23a   : > { %6078 = vmatprep.subr.msk.bf16.mxu0 %vm1569_vm6, %v6235_v33  ;;  %v7498_v26 = vcombine.low %v2326_v57, %v2336_v55  ;;  %v2355_v37 = vrot.slane %v2354_v60, 4  ;;  %v2350_v4 = vsel %vm7244_vm14, %v2345_v56, %v2349_v34  ;;  %811 = vst [vmem:[#allocation2 + $0xcc] sm:$0x1] %v810_v32  ;;  %816 = vst [vmem:[#allocation2 + $0x8] sm:$0x1] %v815_v8  ;;  %v3383_v15 = vrot.slane %v3381_v63, 4 }
 0x23b   : > { %867 = vst [vmem:[#allocation2 + $0xd4] sm:$0x1] %v866_v6  ;;  %v3384_v0 = vrot.slane %v7361_v42, 5  ;;  %v5037_v20 = vrot.slane %v3304_v17, 9  ;;  %v3305_v42 = vld [vmem:[#allocation2 + $0x18] sm:$0xe] }
 0x23c   : > { %5624 = vmatmul.mubr.msk.bf16.gmra.mrb[24].mxu1 %vm1520_vm11, %v7498_v26  ;;  %v2360_v61 = vsel %vm7244_vm14, %v2355_v37, %v2359_v41  ;;  %v2160_v56 = vld [vmem:[#allocation2 + $0xc0] sm:$0xf]  ;;  %v7539_v60 = vld [vmem:[#allocation2 + $0xc4] sm:$0xf]  ;;  %v3388_v57 = vrot.slane %v7374_v31, 5  ;;  %v5038_v54 = vrot.slane %v3305_v42, 9 }
 0x23d   : > { %v7511_v44 = vcombine.low %v2350_v4, %v2360_v61  ;;  %v3385_v38 = vsel %vm7522_vm2, %v3383_v15, %v3384_v0  ;;  %v3382_v53 = vsel %vm7522_vm2, %v5037_v20, %v3381_v63  ;;  %v3306_v55 = vld [vmem:[#allocation2 + $0x24] sm:$0xe]  ;;  %v3391_v49 = vrot.slane %v7384_v2, 5  ;;  %v3307_v37 = vld [vmem:[#allocation2 + $0x30] sm:$0xe] }
 0x23e   : > { %v7534_v36 = vcombine.low %v3382_v53, %v3385_v38  ;;  %v3390_v33 = vrot.slane %v3388_v57, 4  ;;  %v2848_v41 = vshrl.u32 %v2160_v56, 16  ;;  %v2857_v63 = vshll.u32 %v7539_v60, 16  ;;  %v3308_v8 = vld [vmem:[#allocation2 + $0x3c] sm:$0xe]  ;;  %v6237_v53 = vld [vmem:[#allocation2 + $0x24] sm:$0xff]  }
 0x23f   : > { %5627 = vmatprep.mubr.msk.bf16.mxu1 %vm1520_vm11, %v7511_v44  ;;  %5538 = vmatmul.mubr.msk.bf16.gmra.mrb[56].mxu0 %vm1520_vm11, %v7248_v30  ;;  %v3395_v22 = vrot.slane %v7390_v12, 5  ;;  %v3389_v4 = vsel %vm7522_vm2, %v5038_v54, %v3388_v57  ;;  %v5039_v61 = vrot.slane %v3306_v55, 9  ;;  %v3402_v32 = vrot.slane %v7411_v27, 5  ;;  %v6238_v57 = vld [vmem:[#allocation2 + $0x30] sm:$0xff]  }
 0x240   : > { %5541 = vmatprep.mubr.msk.bf16.mxu0 %vm1520_vm11, %v7254_v7  ;;  %v3392_v31 = vsel %vm7522_vm2, %v3390_v33, %v3391_v49  ;;  %v3398_v12 = vrot.slane %v7405_v29, 5  ;;  %v5040_v15 = vrot.slane %v3307_v37, 9  ;;  %v2861_v17 = vshrl.u32 %v7539_v60, 16  ;;  %v3309_v33 = vld [vmem:[#allocation2 + $0x48] sm:$0xe] }
 0x241   : > { %v7554_v2 = vcombine.low %v3389_v4, %v3392_v31  ;;  %v3397_v6 = vrot.slane %v3395_v22, 4  ;;  %v3404_v0 = vrot.slane %v3402_v32, 4  ;;  %v3405_v20 = vrot.slane %v7418_v47, 5  ;;  %v3310_v31 = vld [vmem:[#allocation2 + $0x54] sm:$0xe] }
 0x242   : > { %v3409_v38 = vrot.slane %v7428_v62, 5  ;;  %v3396_v27 = vsel %vm7522_vm2, %v5039_v61, %v3395_v22  ;;  %v3403_v29 = vsel %vm7522_vm2, %v5040_v15, %v3402_v32  ;;  %v3412_v54 = vrot.slane %v7444_v46, 5 }
 0x243   : > { %v3399_v42 = vsel %vm7522_vm2, %v3397_v6, %v3398_v12  ;;  %v3406_v62 = vsel %vm7522_vm2, %v3404_v0, %v3405_v20  ;;  %v2851_v49 = vshll.u32 %v2160_v56, 16  ;;  %v2859_v37 = vrot.slane %v2857_v63, 5 }
 0x244   : > { %5628 = vmatmul.mubr.msk.bf16.gmra.mrb[28].mxu1 %vm1520_vm11, %v7270_v43  ;;  %v7569_v47 = vcombine.low %v3396_v27, %v3399_v42  ;;  %v3411_v55 = vrot.slane %v3409_v38, 4  ;;  %v7574_v22 = vcombine.low %v3403_v29, %v3406_v62  ;;  %v3416_v4 = vrot.slane %v7452_v59, 5  ;;  %v6239_v42 = vld [vmem:[#allocation2 + $0x3c] sm:$0xff]   ;;  %v6240_v29 = vld [vmem:[#allocation2 + $0x48] sm:$0xff]  }
 0x245   : > { %5631 = vmatprep.mubr.msk.bf16.mxu1 %vm1520_vm11, %v7284_v23  ;;  %v2863_v61 = vrot.slane %v2861_v17, 4  ;;  %v5042_v46 = vrot.slane %v3309_v33, 9  ;;  %v3419_v56 = vrot.slane %v7463_v50, 5  ;;  %v5043_v59 = vrot.slane %v3310_v31, 9  ;;  %v3319_v31 = vld [vmem:[#allocation2 + $0xc0] sm:$0xe] }
 0x246   : > { %v3413_v32 = vsel %vm7522_vm2, %v3411_v55, %v3412_v54  ;;  %v3418_v12 = vrot.slane %v3416_v4, 4  ;;  %v3426_v15 = vrot.slane %v7473_v13, 5  ;;  %v2850_v17 = vrot.slane %v2848_v41, 4 }
 0x247   : > { %5542 = vmatmul.mubr.msk.bf16.gmra.mrb[60].mxu0 %vm1520_vm11, %v7276_v3  ;;  %v2853_v0 = vrot.slane %v2851_v49, 5  ;;  %v2864_v27 = vor.u32 %v2863_v61, %v2859_v37  ;;  %v6241_v49 = vld [vmem:[#allocation2 + $0x54] sm:$0xff]  }
 0x248   : > { %5547 = vmatprep.mubr.msk.bf16.mxu0 %vm1520_vm11, %v6236_v14  ;;  %v5041_v14 = vrot.slane %v3308_v8, 9  ;;  %v3423_v8 = vrot.slane %v7469_v58, 5  ;;  %v3417_v58 = vsel %vm7522_vm2, %v5042_v46, %v3416_v4  ;;  %v3420_v20 = vsel %vm7522_vm2, %v3418_v12, %v3419_v56  ;;  %v6242_v4 = vld [vmem:[#allocation2 + $0x60] sm:$0xff]  }
 0x249   : > { %v7594_v50 = vcombine.low %v3417_v58, %v3420_v20  ;;  %v2865_v62 = vrot.slane %v2864_v27, 4  ;;  %v7637_v58 = vld [vmem:[#allocation2 + $0x4] sm:$0xf] }
 0x24a   : > { %v3425_v63 = vrot.slane %v3423_v8, 4  ;;  %v6245_v20 = vld [vmem:[#allocation2 + $0x84] sm:$0xff]   ;;  %v2183_v27 = vshrl.u32 %v7637_v58, 16 }
 0x24c   : > { %5632 = vmatmul.mubr.msk.bf16.gmra.mrb[0].mxu1 %vm1520_vm11, %v7304_v52  ;;  %v3427_v13 = vsel %vm7522_vm2, %v3425_v63, %v3426_v15  ;;  %v6244_v63 = vld [vmem:[#allocation2 + $0x78] sm:$0xff]   ;;  %v3583_v15 = vsel %vm1569_vm6, %v7433_v24, 0 }
 0x24d   : > { %5635 = vmatprep.mubr.msk.bf16.mxu1 %vm1520_vm11, %v7320_v10 }
 0x24f   : > { %5548 = vmatmul.mubr.msk.bf16.vlgmr.msra.gmra.mrb[32].mxu0 %vm1520_vm11, %v6237_v53  ;;  %v3424_v53 = vsel %vm7522_vm2, %v5043_v59, %v3423_v8  ;;  %v5084_v8 = vrot.slane %v3319_v31, 9 }
 0x250   : > { %5551 = vmatprep.mubr.msk.bf16.mxu0 %vm1520_vm11, %v6238_v57  ;;  %5580 = vmatpush3.bf16.msra.mxu0 %v6982_v25  ;;  %v3410_v25 = vsel %vm7522_vm2, %v5041_v14, %v3409_v38  ;;  %v2162_v38 = vld [vmem:[#allocation2 + $0xc8] sm:$0x1]  ;;  %v7601_v41 = vcombine.low %v3424_v53, %v3427_v13  ;;  %v2854_v14 = vor.u32 %v2853_v0, %v2850_v17  ;;  %v7631_v17 = vld [vmem:[#allocation9 + $0xa] sm:$0x3]  ;;  %v2112_v0 = vld [vmem:[#allocation2] sm:$0xf] }
 0x251   : > { %v7582_v6 = vcombine.low %v3410_v25, %v3413_v32  ;;  %v2867_v57 = vshll.u32 %v2162_v38, 16  ;;  %v3783_v25 = vrot.slane %v7539_v60, 5  ;;  %v3786_v12 = vrot.slane %v2162_v38, 5  ;;  %v6243_v60 = vld [vmem:[#allocation2 + $0x6c] sm:$0xff]  }
 0x252   : > { %v2855_v55 = vrot.slane %v2854_v14, 4  ;;  %v6246_v38 = vld [vmem:[#allocation2 + $0x90] sm:$0xff]   ;;  %v2170_v24 = vshrl.u32 %v2112_v0, 16  ;;  %v2173_v53 = vshll.u32 %v2112_v0, 16  ;;  %v2179_v13 = vshll.u32 %v7637_v58, 16 }
 0x253   : > { %v2869_v54 = vrot.slane %v2867_v57, 5  ;;  %v3785_v46 = vrot.slane %v3783_v25, 4  ;;  %v3784_v56 = vsel %vm7522_vm2, %v5084_v8, %v3783_v25  ;;  %v2185_v57 = vrot.slane %v2183_v27, 4 }
 0x254   : > { %5636 = vmatmul.mubr.msk.bf16.gmra.mrb[4].mxu1 %vm1520_vm11, %v7336_v45  ;;  %v2860_v61 = vsel %vm7244_vm14, %v2855_v55, %v2859_v37  ;;  %v2181_v14 = vrot.slane %v2179_v13, 5  ;;  %v3797_v48 = vsel %vm1569_vm6, %v7631_v17, 0  ;;  %v6248_v13 = vld [vmem:[#allocation2 + $0x68] sm:$0x1] }
 0x255   : > { %5639 = vmatprep.mubr.msk.bf16.mxu1 %vm1520_vm11, %v7353_v11  ;;  %v2870_v33 = vsel %vm7244_vm14, %v2865_v62, %v2869_v54  ;;  %v3787_v59 = vsel %vm7522_vm2, %v3785_v46, %v3786_v12  ;;  %v2114_v62 = vld [vmem:[#allocation2 + $0x8] sm:$0x1]  ;;  %v3433_v27 = vrot.slane %v6248_v13, 5  ;;  %v3317_v13 = vld [vmem:[#allocation2 + $0xa8] sm:$0xe] }
 0x256   : > { %v7615_v32 = vcombine.low %v2860_v61, %v2870_v33  ;;  %v7625_v37 = vcombine.low %v3784_v56, %v3787_v59  ;;  %v2186_v54 = vor.u32 %v2185_v57, %v2181_v14  ;;  %v2189_v33 = vshll.u32 %v2114_v62, 16  ;;  %v6234_v61 = vld [vmem:[#allocation2 + $0xcc] sm:$0xff]  }
 0x257   : > { %5552 = vmatmul.mubr.msk.bf16.gmra.mrb[36].mxu0 %vm1520_vm11, %v6239_v42  ;;  %v2172_v42 = vrot.slane %v2170_v24, 4  ;;  %v3377_v24 = vrot.slane %v2114_v62, 5  ;;  %v6250_v62 = vld [vmem:[#allocation2 + $0x7c] sm:$0xf] }
 0x258   : > { %5555 = vmatprep.mubr.msk.bf16.mxu0 %vm1520_vm11, %v6240_v29  ;;  %v2175_v29 = vrot.slane %v2173_v53, 5  ;;  %v2191_v31 = vrot.slane %v2189_v33, 5 }
 0x25a   : > { %v2176_v55 = vor.u32 %v2175_v29, %v2172_v42  ;;  %v6249_v42 = vld [vmem:[#allocation2 + $0x70] sm:$0xf] }
 0x25b   : > { %v3437_v29 = vrot.slane %v6249_v42, 5 }
 0x25c   : > { %5640 = vmatmul.mubr.msk.bf16.gmra.mrb[8].mxu1 %vm1520_vm11, %v7371_v21 }
 0x25d   : > { %5643 = vmatprep.mubr.msk.bf16.mxu1 %vm1520_vm11, %v7394_v39 }
 0x25f   : > { %5556 = vmatmul.mubr.msk.bf16.gmra.mrb[40].mxu0 %vm1520_vm11, %v6241_v49  ;;  %v2177_v49 = vrot.slane %v2176_v55, 4  ;;  %v3444_v55 = vrot.slane %v6250_v62, 5 }
 0x260   : > { %5559 = vmatprep.mubr.msk.bf16.mxu0 %vm1520_vm11, %v6242_v4  ;;  %v2187_v4 = vrot.slane %v2186_v54, 4 }
 0x264   : > { %5644 = vmatmul.mubr.msk.bf16.gmra.mrb[12].mxu1 %vm1520_vm11, %v7615_v32 }
 0x265   : > { %5649 = vmatprep.mubr.msk.bf16.mxu1 %vm1520_vm11, %v7426_v28 }
 0x267   : > { %5560 = vmatmul.mubr.msk.bf16.gmra.mrb[44].mxu0 %vm1520_vm11, %v6243_v60 }
 0x268   : > { %5563 = vmatprep.mubr.msk.bf16.mxu0 %vm1520_vm11, %v6244_v63 }
 0x26c   : > { %5650 = vmatmul.mubr.msk.bf16.vlgmr.msra.gmra.mrb[16].mxu1 %vm1520_vm11, %v7442_v5 }
 0x26d   : > { %5682 = vmatpush3.bf16.msra.mxu1 %v3583_v15  ;;  %5653 = vmatprep.mubr.msk.bf16.mxu1 %vm1520_vm11, %v7461_v1  ;;  %v3303_v15 = vld [vmem:[#allocation2] sm:$0xe] }
 0x26e   : > { %6083 = vmatprep.subr.msk.bf16.mxu1 %vm1569_vm6, %v7631_v17  ;;  %v3311_v17 = vld [vmem:[#allocation2 + $0x60] sm:$0xe] }
 0x26f   : > { %5564 = vmatmul.mubr.msk.bf16.gmra.mrb[48].mxu0 %vm1520_vm11, %v6245_v20 }
 0x270   : > { %5567 = vmatprep.mubr.msk.bf16.mxu0 %vm1520_vm11, %v6246_v38 }
 0x274   : > { %5654 = vmatmul.mubr.msk.bf16.gmra.mrb[20].mxu1 %vm1520_vm11, %v7482_v35 }
 0x275   : > { %5657 = vmatprep.mubr.msk.bf16.mxu1 %vm1520_vm11, %v7498_v26 }
 0x277   : > { %5568 = vmatmul.mubr.msk.bf16.gmra.mrb[52].mxu0 %vm1520_vm11, %v7248_v30  ;;  %v2182_v30 = vsel %vm7244_vm14, %v2177_v49, %v2181_v14  ;;  %v5044_v14 = vrot.slane %v3311_v17, 9  ;;  %v3439_v49 = vrot.slane %v3437_v29, 4 }
 0x278   : > { %5571 = vmatprep.mubr.msk.bf16.mxu0 %vm1520_vm11, %v7254_v7  ;;  %v2192_v7 = vsel %vm7244_vm14, %v2187_v4, %v2191_v31  ;;  %v3312_v4 = vld [vmem:[#allocation2 + $0x6c] sm:$0xe]  ;;  %v3446_v31 = vrot.slane %v3444_v55, 4 }
 0x27c   : > { %5658 = vmatmul.mubr.msk.bf16.gmra.mrb[24].mxu1 %vm1520_vm11, %v7511_v44 }
 0x27d   : > { %5661 = vmatprep.mubr.msk.bf16.mxu1 %vm1520_vm11, %v7270_v43  ;;  %v4970_v43 = vcombine.low %v2182_v30, %v2192_v7  ;;  %v6251_v30 = vld [vmem:[#allocation2 + $0x74] sm:$0x1] }
 0x27e   : > { %v3440_v7 = vrot.slane %v6251_v30, 5 }
 0x27f   : > { %5572 = vmatmul.mubr.msk.bf16.gmra.mrb[56].mxu0 %vm1520_vm11, %v7276_v3  ;;  %v2163_v3 = vld [vmem:[#allocation2 + $0xcc] sm:$0xf] }
 0x280   : > { %5575 = vmatprep.mubr.msk.bf16.mxu0 %vm1520_vm11, %v7282_v18  ;;  %v7671_v18 = vld [vmem:[#allocation2 + $0xd0] sm:$0xf]  ;;  %v3076_v25 = vshrl.u32 %v2163_v3, 16  ;;  %v3079_v8 = vshll.u32 %v2163_v3, 16 }
 0x281   : > { %v3089_v46 = vshrl.u32 %v7671_v18, 16 }
 0x282   : > { %v3081_v12 = vrot.slane %v3079_v8, 5  ;;  %v3441_v8 = vsel %vm7522_vm2, %v3439_v49, %v3440_v7  ;;  %v3318_v7 = vld [vmem:[#allocation2 + $0xb4] sm:$0xe] }
 0x283   : > { %v3091_v59 = vrot.slane %v3089_v46, 4 }
 0x284   : > { %5662 = vmatmul.mubr.msk.bf16.gmra.mrb[28].mxu1 %vm1520_vm11, %v7284_v23  ;;  %v3085_v23 = vshll.u32 %v7671_v18, 16 }
 0x285   : > { %5665 = vmatprep.mubr.msk.bf16.mxu1 %vm1520_vm11, %v7304_v52  ;;  %v3078_v52 = vrot.slane %v3076_v25, 4  ;;  %v5045_v25 = vrot.slane %v3312_v4, 9 }
 0x286   : > { %v3087_v56 = vrot.slane %v3085_v23, 5  ;;  %v6253_v23 = vld [vmem:[#allocation2 + $0x88] sm:$0xf] }
 0x287   : > { %5576 = vmatmul.mubr.msk.bf16.gmra.mrb[60].mxu0 %vm1520_vm11, %v6234_v61  ;;  %v3313_v61 = vld [vmem:[#allocation2 + $0x78] sm:$0xe]  ;;  %v3451_v46 = vrot.slane %v6253_v23, 5 }
 0x288   : > { %5581 = vmatprep.mubr.msk.bf16.mxu0 %vm1520_vm11, %v4970_v43  ;;  %v3092_v60 = vor.u32 %v3091_v59, %v3087_v56  ;;  %v6252_v43 = vld [vmem:[#allocation2 + $0x80] sm:$0x1]  ;;  %v3438_v59 = vsel %vm7522_vm2, %v5045_v25, %v3437_v29 }
 0x289   : > { %v3447_v3 = vrot.slane %v6252_v43, 5 }
 0x28a   : > { %v3093_v0 = vrot.slane %v3092_v60, 4 }
 0x28c   : > { %5666 = vmatmul.mubr.msk.bf16.gmra.mrb[0].mxu1 %vm1520_vm11, %v7320_v10  ;;  %v7683_v10 = vld [vmem:[#allocation2 + $0xd4] sm:$0x1] }
 0x28d   : > { %5669 = vmatprep.mubr.msk.bf16.mxu1 %vm1520_vm11, %v7336_v45  ;;  %v3082_v45 = vor.u32 %v3081_v12, %v3078_v52  ;;  %v3095_v63 = vshll.u32 %v7683_v10, 16  ;;  %v5046_v52 = vrot.slane %v3313_v61, 9  ;;  %v3448_v12 = vsel %vm7522_vm2, %v3446_v31, %v3447_v3  ;;  %v8191_v61 = vld [vmem:[#allocation23_spill] sm:$0xff] }
 0x28e   : > { %v3482_v43 = vrot.slane %v8191_v61, 5  ;;  %v5051_v3 = vrot.slane %v3318_v7, 9 }
 0x28f   : > { %5582 = vmatmul.mubr.msk.bf16.vlgmr.msra.gmra.mrb[32].mxu0 %vm1520_vm11, %v7409_v19  ;;  %v3374_v19 = vrot.slane %v7637_v58, 5  ;;  %v3097_v20 = vrot.slane %v3095_v63, 5  ;;  %v3445_v60 = vsel %vm7522_vm2, %v5046_v52, %v3444_v55  ;;  %v5050_v55 = vrot.slane %v3317_v13, 9 }
 0x290   : > { %5585 = vmatprep.mubr.msk.bf16.mxu0 %vm1520_vm11, %v7426_v28  ;;  %v3083_v28 = vrot.slane %v3082_v45, 4  ;;  %v7750_v45 = vcombine.low %v3438_v59, %v3441_v8  ;;  %v7754_v63 = vcombine.low %v3445_v60, %v3448_v12 }
 0x291   : > { %v3376_v38 = vrot.slane %v3374_v19, 4 }
 0x293   : > { %v3378_v58 = vsel %vm7522_vm2, %v3376_v38, %v3377_v24 }
 0x294   : > { %5670 = vmatmul.mubr.msk.bf16.gmra.mrb[4].mxu1 %vm1520_vm11, %v7353_v11  ;;  %v5036_v11 = vrot.slane %v3303_v15, 9  ;;  %v3314_v15 = vld [vmem:[#allocation2 + $0x84] sm:$0xe] }
 0x295   : > { %5673 = vmatprep.mubr.msk.bf16.mxu1 %vm1520_vm11, %v7371_v21  ;;  %v3088_v21 = vsel %vm7244_vm14, %v3083_v28, %v3087_v56  ;;  %v3458_v56 = vrot.slane %v7280_v16, 5  ;;  %v6254_v16 = vld [vmem:[#allocation2 + $0x8c] sm:$0x1]  ;;  %v5047_v24 = vrot.slane %v3314_v15, 9 }
 0x297   : > { %5586 = vmatmul.mubr.msk.bf16.gmra.mrb[36].mxu0 %vm1520_vm11, %v7442_v5  ;;  %v3098_v5 = vsel %vm7244_vm14, %v3093_v0, %v3097_v20  ;;  %v3460_v28 = vrot.slane %v3458_v56, 4  ;;  %v3454_v0 = vrot.slane %v6254_v16, 5  ;;  %v3315_v20 = vld [vmem:[#allocation2 + $0x90] sm:$0xe] }
 0x298   : > { %5589 = vmatprep.mubr.msk.bf16.mxu0 %vm1520_vm11, %v7461_v1  ;;  %v3375_v1 = vsel %vm7522_vm2, %v5036_v11, %v3374_v19  ;;  %v5019_v53 = vcombine.low %v3088_v21, %v3098_v5  ;;  %v3453_v19 = vrot.slane %v3451_v46, 4  ;;  %v6255_v11 = vld [vmem:[#allocation2 + $0x98] sm:$0x1]  ;;  %v3465_v5 = vrot.slane %v7302_v51, 5  ;;  %v3316_v51 = vld [vmem:[#allocation2 + $0x9c] sm:$0xe] }
 0x299   : > { %v3461_v38 = vrot.slane %v6255_v11, 5  ;;  %v5049_v29 = vrot.slane %v3316_v51, 9 }
 0x29a   : > { %v3455_v21 = vsel %vm7522_vm2, %v3453_v19, %v3454_v0 }
 0x29b   : > { %v3466_v49 = vsel %vm7522_vm2, %v5049_v29, %v3465_v5 }
 0x29c   : > { %5674 = vmatmul.mubr.msk.bf16.gmra.mrb[8].mxu1 %vm1520_vm11, %v7394_v39  ;;  %v5052_v39 = vcombine.low %v3375_v1, %v3378_v58  ;;  %v5048_v1 = vrot.slane %v3315_v20, 9  ;;  %v3462_v58 = vsel %vm7522_vm2, %v3460_v28, %v3461_v38  ;;  %v4000_v28 = vrot.slane %v7683_v10, 5 }
 0x29d   : > { %5677 = vmatprep.mubr.msk.bf16.mxu1 %vm1520_vm11, %v7615_v32  ;;  %v7717_v32 = vld [vmem:[#allocation9 + $0x10] sm:$0x3] }
 0x29f   : > { %5590 = vmatmul.mubr.msk.bf16.gmra.mrb[40].mxu0 %vm1520_vm11, %v7482_v35  ;;  %v6247_v35 = vld [vmem:[#allocation2 + $0x64] sm:$0xf] }
 0x2a0   : > { %5593 = vmatprep.mubr.msk.bf16.mxu0 %vm1520_vm11, %v7498_v26  ;;  %v3430_v26 = vrot.slane %v6247_v35, 5  ;;  %v3459_v35 = vsel %vm7522_vm2, %v5048_v1, %v3458_v56 }
 0x2a2   : > { %v3431_v54 = vsel %vm7522_vm2, %v5044_v14, %v3430_v26 }
 0x2a4   : > { %5678 = vmatmul.mubr.msk.bf16.gmra.mrb[12].mxu1 %vm1520_vm11, %v5019_v53  ;;  %v3472_v53 = vrot.slane %v7318_v9, 5  ;;  %v3468_v9 = vrot.slane %v7312_v40, 5 }
 0x2a5   : > { %5683 = vmatprep.mubr.msk.bf16.mxu1 %vm1520_vm11, %v5052_v39  ;;  %v3452_v39 = vsel %vm7522_vm2, %v5047_v24, %v3451_v46  ;;  %v4011_v46 = vsel %vm1569_vm6, %v7717_v32, 0 }
 0x2a6   : > { %v3474_v17 = vrot.slane %v3472_v53, 4  ;;  %v3473_v40 = vsel %vm7522_vm2, %v5050_v55, %v3472_v53 }
 0x2a7   : > { %5594 = vmatmul.mubr.msk.bf16.gmra.mrb[44].mxu0 %vm1520_vm11, %v7511_v44  ;;  %v3432_v44 = vrot.slane %v3430_v26, 4  ;;  %v7772_v26 = vcombine.low %v3459_v35, %v3462_v58 }
 0x2a9   : > { %v3434_v57 = vsel %vm7522_vm2, %v3432_v44, %v3433_v27  ;;  %v3467_v44 = vrot.slane %v3465_v5, 4  ;;  %v8189_v27 = vld [vmem:[#allocation21_spill] sm:$0xff] }
 0x2aa   : > { %v7737_v33 = vcombine.low %v3431_v54, %v3434_v57  ;;  %v3475_v42 = vrot.slane %v8189_v27, 5  ;;  %v8190_v57 = vld [vmem:[#allocation22_spill] sm:$0xff]  ;;  %v7904_v27 = vld [vmem:[#allocation11] ss:$0 sm:$0xff] }
 0x2ab   : > { %v3469_v14 = vsel %vm7522_vm2, %v3467_v44, %v3468_v9  ;;  %v3479_v62 = vrot.slane %v8190_v57, 5 }
 0x2ac   : > { %5684 = vmatmul.mubr.msk.bf16.vlgmr.msra.gmra.mrb[16].mxu1 %vm1520_vm11, %v7534_v36  ;;  %v3476_v54 = vsel %vm7522_vm2, %v3474_v17, %v3475_v42  ;;  %v5065_v4 = vcombine.low %v3466_v49, %v3469_v14 }
 0x2ad   : > { %5716 = vmatpush3.bf16.msra.mxu1 %v3797_v48  ;;  %5687 = vmatprep.mubr.msk.bf16.mxu1 %vm1520_vm11, %v7554_v2  ;;  %v7768_v48 = vcombine.low %v3452_v39, %v3455_v21  ;;  %v5066_v31 = vcombine.low %v3473_v40, %v3476_v54  ;;  %v3481_v30 = vrot.slane %v3479_v62, 4  ;;  %v3480_v8 = vsel %vm7522_vm2, %v5051_v3, %v3479_v62 }
 0x2ae   : > { %6084 = vmatprep.subr.msk.bf16.mxu1 %vm1569_vm6, %v7717_v32 }
 0x2af   : > { %v3483_v25 = vsel %vm7522_vm2, %v3481_v30, %v3482_v43 }
 0x2b0   : > { %v5067_v23 = vcombine.low %v3480_v8, %v3483_v25 }
 0x2b4   : > { %5688 = vmatmul.mubr.msk.bf16.gmra.mrb[20].mxu1 %vm1520_vm11, %v7569_v47 }
 0x2b5   : > { %5691 = vmatprep.mubr.msk.bf16.mxu1 %vm1520_vm11, %v7574_v22 }
 0x2bc   : > { %5692 = vmatmul.mubr.msk.bf16.gmra.mrb[24].mxu1 %vm1520_vm11, %v7582_v6 }
 0x2bd   : > { %5695 = vmatprep.mubr.msk.bf16.mxu1 %vm1520_vm11, %v7594_v50 }
 0x2c4   : > { %5696 = vmatmul.mubr.msk.bf16.gmra.mrb[28].mxu1 %vm1520_vm11, %v7601_v41 }
 0x2c5   : > { %5699 = vmatprep.mubr.msk.bf16.mxu1 %vm1520_vm11, %v7737_v33 }
 0x2cc   : > { %5700 = vmatmul.mubr.msk.bf16.gmra.mrb[0].mxu1 %vm1520_vm11, %v7750_v45 }
 0x2cd   : > { %5703 = vmatprep.mubr.msk.bf16.mxu1 %vm1520_vm11, %v7754_v63 }
 0x2d4   : > { %5704 = vmatmul.mubr.msk.bf16.gmra.mrb[4].mxu1 %vm1520_vm11, %v7768_v48 }
 0x2d5   : > { %5707 = vmatprep.mubr.msk.bf16.mxu1 %vm1520_vm11, %v7772_v26 }
 0x2dc   : > { %5708 = vmatmul.mubr.msk.bf16.gmra.mrb[8].mxu1 %vm1520_vm11, %v5065_v4 }
 0x2dd   : > { %5711 = vmatprep.mubr.msk.bf16.mxu1 %vm1520_vm11, %v5066_v31 }
 0x2e4   : > { %5712 = vmatmul.mubr.msk.bf16.gmra.mrb[12].mxu1 %vm1520_vm11, %v5067_v23 }
 0x2e5   : > { %5717 = vmatprep.mubr.msk.bf16.mxu1 %vm1520_vm11, %v7534_v36  ;;  %v4293_v36 = vld [vmem:[#allocation12] sm:$0x3] }
 0x2e6   : > { %6085 = vmatprep.subr.msk.bf16.mxu0 %vm1569_vm6, %v4293_v36  ;;  %v4350_v32 = vsel %vm1569_vm6, %v4293_v36, 0 }
 0x2e7   : > { %5784 = vmatpush3.bf16.msra.mxu0 %v4350_v32 }
 0x2ec   : > { %5718 = vmatmul.mubr.msk.bf16.vlgmr.msra.gmra.mrb[16].mxu1 %vm1520_vm11, %v7554_v2 }
 0x2ed   : > { %5750 = vmatpush3.bf16.msra.mxu1 %v4011_v46  ;;  %5721 = vmatprep.mubr.msk.bf16.mxu1 %vm1520_vm11, %v7569_v47 }
 0x2f4   : > { %5722 = vmatmul.mubr.msk.bf16.gmra.mrb[20].mxu1 %vm1520_vm11, %v7574_v22 }
 0x2f5   : > { %5725 = vmatprep.mubr.msk.bf16.mxu1 %vm1520_vm11, %v7582_v6 }
 0x2fc   : > { %5726 = vmatmul.mubr.msk.bf16.gmra.mrb[24].mxu1 %vm1520_vm11, %v7594_v50 }
 0x2fd   : > { %5729 = vmatprep.mubr.msk.bf16.mxu1 %vm1520_vm11, %v7601_v41 }
 0x304   : > { %5730 = vmatmul.mubr.msk.bf16.gmra.mrb[28].mxu1 %vm1520_vm11, %v7737_v33 }
 0x305   : > { %5733 = vmatprep.mubr.msk.bf16.mxu1 %vm1520_vm11, %v7750_v45 }
 0x30c   : > { %5734 = vmatmul.mubr.msk.bf16.gmra.mrb[0].mxu1 %vm1520_vm11, %v7754_v63 }
 0x30d   : > { %5737 = vmatprep.mubr.msk.bf16.mxu1 %vm1520_vm11, %v7768_v48 }
 0x314   : > { %5738 = vmatmul.mubr.msk.bf16.gmra.mrb[4].mxu1 %vm1520_vm11, %v7772_v26 }
 0x315   : > { %5741 = vmatprep.mubr.msk.bf16.mxu1 %vm1520_vm11, %v5065_v4 }
 0x31c   : > { %5742 = vmatmul.mubr.msk.bf16.gmra.mrb[8].mxu1 %vm1520_vm11, %v5066_v31 }
 0x31d   : > { %5745 = vmatprep.mubr.msk.bf16.mxu1 %vm1520_vm11, %v5067_v23 }
 0x324   : > { %5746 = vmatmul.mubr.msk.bf16.gmra.mrb[12].mxu1 %vm1520_vm11, %v7625_v37 }
 0x325   : > { %5751 = vmatprep.mubr.msk.bf16.mxu1 %vm1520_vm11, %v7554_v2 }
 0x32c   : > { %5752 = vmatmul.mubr.msk.bf16.vlgmr.msra.gmra.mrb[16].mxu1 %vm1520_vm11, %v7569_v47 }
 0x32d   : > { %5755 = vmatprep.mubr.msk.bf16.mxu1 %vm1520_vm11, %v7574_v22 }
 0x334   : > { %5756 = vmatmul.mubr.msk.bf16.gmra.mrb[20].mxu1 %vm1520_vm11, %v7582_v6 }
 0x335   : > { %5759 = vmatprep.mubr.msk.bf16.mxu1 %vm1520_vm11, %v7594_v50 }
 0x33c   : > { %5760 = vmatmul.mubr.msk.bf16.gmra.mrb[24].mxu1 %vm1520_vm11, %v7601_v41 }
 0x33d   : > { %5763 = vmatprep.mubr.msk.bf16.mxu1 %vm1520_vm11, %v7737_v33 }
 0x342   : > { %v7844_v52 = vpop.f32.mrb[48].mxu0 }
 0x343   : > { %v7846_v2 = vpop.f32.mrb[49].mxu0 }
 0x344   : > { %5764 = vmatmul.mubr.msk.bf16.gmra.mrb[28].mxu1 %vm1520_vm11, %v7750_v45  ;;  %v7850_v47 = vpop.f32.mrb[50].mxu0  ;;  %v3997_v45 = vrot.slane %v7671_v18, 5 }
 0x345   : > { %5767 = vmatprep.mubr.msk.bf16.mxu1 %vm1520_vm11, %v7754_v63  ;;  %v7854_v22 = vpop.f32.mrb[51].mxu0  ;;  %v3320_v63 = vld [vmem:[#allocation2 + $0xcc] sm:$0xe] }
 0x346   : > { %v5102_v19 = vrot.slane %v3320_v63, 9  ;;  %v3999_v15 = vrot.slane %v3997_v45, 4 }
 0x348   : > { %v3998_v18 = vsel %vm7522_vm2, %v5102_v19, %v3997_v45  ;;  %v4001_v11 = vsel %vm7522_vm2, %v3999_v15, %v4000_v28 }
 0x349   : > { %v5103_v10 = vcombine.low %v3998_v18, %v4001_v11 }
 0x34a   : > { %v7856_v6 = vpop.f32.mrb[52].mxu0 }
 0x34b   : > { %v7858_v50 = vpop.f32.mrb[53].mxu0 }
 0x34c   : > { %5768 = vmatmul.mubr.msk.bf16.gmra.mrb[0].mxu1 %vm1520_vm11, %v7768_v48  ;;  %v7862_v41 = vpop.f32.mrb[54].mxu0 }
 0x34d   : > { %5771 = vmatprep.mubr.msk.bf16.mxu1 %vm1520_vm11, %v7772_v26  ;;  %v7866_v33 = vpop.f32.mrb[55].mxu0 }
 0x352   : > { %v7868_v12 = vpop.f32.mrb[56].mxu0 }
 0x353   : > { %v7870_v56 = vpop.f32.mrb[57].mxu0 }
 0x354   : > { %5772 = vmatmul.mubr.msk.bf16.gmra.mrb[4].mxu1 %vm1520_vm11, %v5065_v4  ;;  %v7873_v59 = vpop.f32.mrb[58].mxu0 }
 0x355   : > { %5775 = vmatprep.mubr.msk.bf16.mxu1 %vm1520_vm11, %v5066_v31  ;;  %v7877_v60 = vpop.f32.mrb[59].mxu0 }
 0x35a   : > { %v7880_v16 = vpop.f32.mrb[60].mxu0 }
 0x35b   : > { %v7882_v0 = vpop.f32.mrb[61].mxu0 }
 0x35c   : > { %5776 = vmatmul.mubr.msk.bf16.gmra.mrb[8].mxu1 %vm1520_vm11, %v5067_v23  ;;  %v7885_v20 = vpop.f32.mrb[62].mxu0 }
 0x35d   : > { %5779 = vmatprep.mubr.msk.bf16.mxu1 %vm1520_vm11, %v7625_v37  ;;  %v7893_v38 = vpop.f32.mrb[63].mxu0 }
 0x362   : > { %v5583_v24 = vpop.f32.mrb[32].mxu0 }
 0x363   : > { %v2688_v21 = vpop.f32.mrb[33].mxu0 }
 0x364   : > { %5780 = vmatmul.mubr.msk.bf16.gmra.mrb[12].mxu1 %vm1520_vm11, %v5103_v10  ;;  %v5584_v5 = vpop.f32.mrb[34].mxu0 }
 0x365   : > { %v2691_v1 = vpop.f32.mrb[35].mxu0 }
 0x36a   : > { %v5587_v58 = vpop.f32.mrb[36].mxu0 }
 0x36b   : > { %v2704_v53 = vpop.f32.mrb[37].mxu0 }
 0x36c   : > { %v5588_v39 = vpop.f32.mrb[38].mxu0 }
 0x36d   : > { %v2707_v48 = vpop.f32.mrb[39].mxu0 }
 0x372   : > { %v5591_v37 = vpop.f32.mrb[40].mxu0 }
 0x373   : > { %v2720_v35 = vpop.f32.mrb[41].mxu0 }
 0x374   : > { %v5592_v26 = vpop.f32.mrb[42].mxu0 }
 0x375   : > { %v2723_v44 = vpop.f32.mrb[43].mxu0 }
 0x37a   : > { %v7896_v51 = vpop.f32.mrb[44].mxu0 }
 0x37b   : > { %v7898_v34 = vpop.f32.mrb[45].mxu0 }
 0x37c   : > { %v7900_v17 = vpop.f32.mrb[46].mxu0 }
 0x37d   : > { %v7902_v9 = vpop.f32.mrb[47].mxu0 }
 0x3ff   : > { %v5753_v13 = vpop.f32.mrb[16].mxu1 }
 0x400   : > { %v5819_v42 = vadd.f32 %v5753_v13, %v5583_v24  ;;  %v4047_v29 = vpop.f32.mrb[17].mxu1 }
 0x401   : > { %v5820_v14 = vadd.f32 %v4047_v29, %v2688_v21  ;;  %v5754_v57 = vpop.f32.mrb[18].mxu1 }
 0x402   : > { %v4215_v62 = vadd.f32 %v5819_v42, %v7904_v27  ;;  %v5821_v55 = vadd.f32 %v5754_v57, %v5584_v5  ;;  %v4050_v54 = vpop.f32.mrb[19].mxu1 }
 0x403   : > { %v4213_v49 = vadd.f32 %v5820_v14, %v7904_v27  ;;  %v5822_v4 = vadd.f32 %v4050_v54, %v2691_v1 }
 0x404   : > { %v4216_v40 = vadd.f32 %v5821_v55, %v7904_v27  ;;  %v4247_v30 = vmax.f32 %v4215_v62, 0.0 }
 0x405   : > { %v4214_v31 = vadd.f32 %v5822_v4, %v7904_v27  ;;  %v4245_v61 = vmax.f32 %v4213_v49, 0.0 }
 0x406   : > { %v4248_v7 = vmax.f32 %v4216_v40, 0.0 }
 0x407   : > { %v4246_v43 = vmax.f32 %v4214_v31, 0.0  ;;  %v5757_v3 = vpop.f32.mrb[20].mxu1 }
 0x408   : > { %v4278_v25 = vpack.c.bf16 %v4248_v7, %v4247_v30  ;;  %v5823_v8 = vadd.f32 %v5757_v3, %v5587_v58  ;;  %v4063_v23 = vpop.f32.mrb[21].mxu1 }
 0x409   : > { %v4277_v46 = vpack.c.bf16 %v4246_v43, %v4245_v61  ;;  %v5824_v36 = vadd.f32 %v4063_v23, %v2704_v53  ;;  %v5758_v32 = vpop.f32.mrb[22].mxu1 }
 0x40a   : > { %v4219_v45 = vadd.f32 %v5823_v8, %v7904_v27  ;;  %v5825_v63 = vadd.f32 %v5758_v32, %v5588_v39  ;;  %v4066_v19 = vpop.f32.mrb[23].mxu1 }
 0x40b   : > { %v4217_v15 = vadd.f32 %v5824_v36, %v7904_v27  ;;  %v5826_v28 = vadd.f32 %v4066_v19, %v2707_v48  ;;  %5785 = vmatprep.mubr.msk.bf16.mxu0 %vm1520_vm11, %v4277_v46 }
 0x40c   : > { %v4220_v18 = vadd.f32 %v5825_v63, %v7904_v27  ;;  %5786 = vmatmul.mubr.msk.bf16.vlgmr.msra.gmra.mrb[64].mxu0 %vm1520_vm11, %v4278_v25  ;;  %v4251_v10 = vmax.f32 %v4219_v45, 0.0 }
 0x40d   : > { %v4218_v11 = vadd.f32 %v5826_v28, %v7904_v27  ;;  %v4249_v21 = vmax.f32 %v4217_v15, 0.0 }
 0x40e   : > { %v4252_v24 = vmax.f32 %v4220_v18, 0.0 }
 0x40f   : > { %v4250_v5 = vmax.f32 %v4218_v11, 0.0  ;;  %v5761_v1 = vpop.f32.mrb[24].mxu1 }
 0x410   : > { %v4280_v58 = vpack.c.bf16 %v4252_v24, %v4251_v10  ;;  %v5827_v53 = vadd.f32 %v5761_v1, %v5591_v37  ;;  %v4079_v39 = vpop.f32.mrb[25].mxu1 }
 0x411   : > { %v4279_v13 = vpack.c.bf16 %v4250_v5, %v4249_v21  ;;  %v5828_v42 = vadd.f32 %v4079_v39, %v2720_v35  ;;  %v5762_v29 = vpop.f32.mrb[26].mxu1 }
 0x412   : > { %v4223_v48 = vadd.f32 %v5827_v53, %v7904_v27  ;;  %v5829_v14 = vadd.f32 %v5762_v29, %v5592_v26  ;;  %v4082_v57 = vpop.f32.mrb[27].mxu1 }
 0x413   : > { %v4221_v62 = vadd.f32 %v5828_v42, %v7904_v27  ;;  %v5830_v55 = vadd.f32 %v4082_v57, %v2723_v44  ;;  %5789 = vmatprep.mubr.msk.bf16.mxu0 %vm1520_vm11, %v4279_v13 }
 0x414   : > { %v4224_v54 = vadd.f32 %v5829_v14, %v7904_v27  ;;  %5790 = vmatmul.mubr.msk.bf16.gmra.mrb[68].mxu0 %vm1520_vm11, %v4280_v58  ;;  %v4255_v37 = vmax.f32 %v4223_v48, 0.0 }
 0x415   : > { %v4222_v49 = vadd.f32 %v5830_v55, %v7904_v27  ;;  %v4253_v40 = vmax.f32 %v4221_v62, 0.0 }
 0x416   : > { %v4256_v4 = vmax.f32 %v4224_v54, 0.0 }
 0x417   : > { %v4254_v35 = vmax.f32 %v4222_v49, 0.0  ;;  %v5765_v31 = vpop.f32.mrb[28].mxu1 }
 0x418   : > { %v4282_v30 = vpack.c.bf16 %v4256_v4, %v4255_v37  ;;  %v5831_v26 = vadd.f32 %v5765_v31, %v7896_v51  ;;  %v4095_v7 = vpop.f32.mrb[29].mxu1 }
 0x419   : > { %v4281_v61 = vpack.c.bf16 %v4254_v35, %v4253_v40  ;;  %v5832_v44 = vadd.f32 %v4095_v7, %v7898_v34  ;;  %v5766_v43 = vpop.f32.mrb[30].mxu1 }
 0x41a   : > { %v4227_v3 = vadd.f32 %v5831_v26, %v7904_v27  ;;  %v5833_v25 = vadd.f32 %v5766_v43, %v7900_v17  ;;  %v4098_v8 = vpop.f32.mrb[31].mxu1 }
 0x41b   : > { %v4225_v23 = vadd.f32 %v5832_v44, %v7904_v27  ;;  %v5834_v46 = vadd.f32 %v4098_v8, %v7902_v9  ;;  %5793 = vmatprep.mubr.msk.bf16.mxu0 %vm1520_vm11, %v4281_v61 }
 0x41c   : > { %v4228_v36 = vadd.f32 %v5833_v25, %v7904_v27  ;;  %5794 = vmatmul.mubr.msk.bf16.gmra.mrb[72].mxu0 %vm1520_vm11, %v4282_v30  ;;  %v4259_v32 = vmax.f32 %v4227_v3, 0.0 }
 0x41d   : > { %v4226_v51 = vadd.f32 %v5834_v46, %v7904_v27  ;;  %v4257_v45 = vmax.f32 %v4225_v23, 0.0 }
 0x41e   : > { %v4260_v34 = vmax.f32 %v4228_v36, 0.0 }
 0x41f   : > { %v4258_v63 = vmax.f32 %v4226_v51, 0.0  ;;  %v5769_v19 = vpop.f32.mrb[0].mxu1 }
 0x420   : > { %v4284_v15 = vpack.c.bf16 %v4260_v34, %v4259_v32  ;;  %v5835_v17 = vadd.f32 %v5769_v19, %v7844_v52  ;;  %v4111_v28 = vpop.f32.mrb[1].mxu1 }
 0x421   : > { %v4283_v18 = vpack.c.bf16 %v4258_v63, %v4257_v45  ;;  %v5836_v9 = vadd.f32 %v4111_v28, %v7846_v2  ;;  %v5770_v11 = vpop.f32.mrb[2].mxu1 }
 0x422   : > { %v4231_v10 = vadd.f32 %v5835_v17, %v7904_v27  ;;  %v5837_v24 = vadd.f32 %v5770_v11, %v7850_v47  ;;  %v4114_v21 = vpop.f32.mrb[3].mxu1 }
 0x423   : > { %v4229_v5 = vadd.f32 %v5836_v9, %v7904_v27  ;;  %v5838_v1 = vadd.f32 %v4114_v21, %v7854_v22  ;;  %5797 = vmatprep.mubr.msk.bf16.mxu0 %vm1520_vm11, %v4283_v18 }
 0x424   : > { %v4232_v58 = vadd.f32 %v5837_v24, %v7904_v27  ;;  %5798 = vmatmul.mubr.msk.bf16.gmra.mrb[76].mxu0 %vm1520_vm11, %v4284_v15  ;;  %v4263_v53 = vmax.f32 %v4231_v10, 0.0 }
 0x425   : > { %v4230_v52 = vadd.f32 %v5838_v1, %v7904_v27  ;;  %v4261_v39 = vmax.f32 %v4229_v5, 0.0 }
 0x426   : > { %v4264_v2 = vmax.f32 %v4232_v58, 0.0  ;;  %v5178_v58 = vld [vmem:[%s6850_s13] sm:$0xff]  }
 0x427   : > { %v4262_v13 = vmax.f32 %v4230_v52, 0.0  ;;  %v5773_v42 = vpop.f32.mrb[4].mxu1  ;;  %v7976_v52 = vld [vmem:[#allocation14] ss:$0 sm:$0xff] }
 0x428   : > { %v4286_v29 = vpack.c.bf16 %v4264_v2, %v4263_v53  ;;  %v5839_v47 = vadd.f32 %v5773_v42, %v7856_v6  ;;  %v4127_v48 = vpop.f32.mrb[5].mxu1 }
 0x429   : > { %v4285_v14 = vpack.c.bf16 %v4262_v13, %v4261_v39  ;;  %v5840_v22 = vadd.f32 %v4127_v48, %v7858_v50  ;;  %v5774_v57 = vpop.f32.mrb[6].mxu1  ;;  %v5179_v39 = vunpack.c.l.bf16 %v5178_v58  ;;  %v5180_v48 = vunpack.c.h.bf16 %v5178_v58 }
 0x42a   : > { %v4235_v62 = vadd.f32 %v5839_v47, %v7904_v27  ;;  %v5841_v55 = vadd.f32 %v5774_v57, %v7862_v41  ;;  %v4130_v54 = vpop.f32.mrb[7].mxu1 }
 0x42b   : > { %v4233_v49 = vadd.f32 %v5840_v22, %v7904_v27  ;;  %v5842_v37 = vadd.f32 %v4130_v54, %v7866_v33  ;;  %5801 = vmatprep.mubr.msk.bf16.mxu0 %vm1520_vm11, %v4285_v14  ;;  %v5243_v54 = vld [vmem:[%s6850_s13 + $0x18] sm:$0xff]  }
 0x42c   : > { %v4236_v4 = vadd.f32 %v5841_v55, %v7904_v27  ;;  %5802 = vmatmul.mubr.msk.bf16.gmra.mrb[80].mxu0 %vm1520_vm11, %v4286_v29  ;;  %v4267_v40 = vmax.f32 %v4235_v62, 0.0 }
 0x42d   : > { %v4234_v6 = vadd.f32 %v5842_v37, %v7904_v27  ;;  %v4265_v35 = vmax.f32 %v4233_v49, 0.0 }
 0x42e   : > { %v4268_v50 = vmax.f32 %v4236_v4, 0.0  ;;  %v5242_v4 = vld [vmem:[%s6850_s13 + $0x10] sm:$0xff]  }
 0x42f   : > { %v4266_v31 = vmax.f32 %v4234_v6, 0.0  ;;  %v5777_v30 = vpop.f32.mrb[8].mxu1 }
 0x430   : > { %v4288_v26 = vpack.c.bf16 %v4268_v50, %v4267_v40  ;;  %v5843_v41 = vadd.f32 %v5777_v30, %v7868_v12  ;;  %v4143_v7 = vpop.f32.mrb[9].mxu1 }
 0x431   : > { %v4287_v61 = vpack.c.bf16 %v4266_v31, %v4265_v35  ;;  %v5844_v33 = vadd.f32 %v4143_v7, %v7870_v56  ;;  %v5778_v44 = vpop.f32.mrb[10].mxu1  ;;  %v5191_v35 = vunpack.c.l.bf16 %v5243_v54 }
 0x432   : > { %v4239_v43 = vadd.f32 %v5843_v41, %v7904_v27  ;;  %v5845_v3 = vadd.f32 %v5778_v44, %v7873_v59  ;;  %v4146_v25 = vpop.f32.mrb[11].mxu1 }
 0x433   : > { %v4237_v8 = vadd.f32 %v5844_v33, %v7904_v27  ;;  %v5846_v23 = vadd.f32 %v4146_v25, %v7877_v60  ;;  %5805 = vmatprep.mubr.msk.bf16.mxu0 %vm1520_vm11, %v4287_v61  ;;  %v5192_v61 = vunpack.c.h.bf16 %v5243_v54 }
 0x434   : > { %v4240_v46 = vadd.f32 %v5845_v3, %v7904_v27  ;;  %5806 = vmatmul.mubr.msk.bf16.gmra.mrb[84].mxu0 %vm1520_vm11, %v4288_v26  ;;  %v4271_v36 = vmax.f32 %v4239_v43, 0.0  ;;  %v5187_v26 = vunpack.c.l.bf16 %v5242_v4  ;;  %v5188_v43 = vunpack.c.h.bf16 %v5242_v4  ;;  %v5249_v4 = vld [vmem:[%s6850_s13 + $0x48] sm:$0xff]  }
 0x435   : > { %v4238_v12 = vadd.f32 %v5846_v23, %v7904_v27  ;;  %v4269_v51 = vmax.f32 %v4237_v8, 0.0 }
 0x436   : > { %v4272_v56 = vmax.f32 %v4240_v46, 0.0 }
 0x437   : > { %v4270_v32 = vmax.f32 %v4238_v12, 0.0  ;;  %v5781_v34 = vpop.f32.mrb[12].mxu1  ;;  %v5245_v12 = vld [vmem:[%s6850_s13 + $0x28] sm:$0xff]  }
 0x438   : > { %v4290_v45 = vpack.c.bf16 %v4272_v56, %v4271_v36  ;;  %v5847_v59 = vadd.f32 %v5781_v34, %v7880_v16  ;;  %v4159_v63 = vpop.f32.mrb[13].mxu1 }
 0x439   : > { %v4289_v19 = vpack.c.bf16 %v4270_v32, %v4269_v51  ;;  %v5848_v60 = vadd.f32 %v4159_v63, %v7882_v0  ;;  %v5782_v15 = vpop.f32.mrb[14].mxu1  ;;  %v5244_v51 = vld [vmem:[%s6850_s13 + $0x20] sm:$0xff]  }
 0x43a   : > { %v4243_v17 = vadd.f32 %v5847_v59, %v7904_v27  ;;  %v5849_v28 = vadd.f32 %v5782_v15, %v7885_v20  ;;  %v4162_v18 = vpop.f32.mrb[15].mxu1  ;;  %v5199_v59 = vunpack.c.l.bf16 %v5245_v12 }
 0x43b   : > { %v4241_v9 = vadd.f32 %v5848_v60, %v7904_v27  ;;  %v5850_v11 = vadd.f32 %v4162_v18, %v7893_v38  ;;  %5809 = vmatprep.mubr.msk.bf16.mxu0 %vm1520_vm11, %v4289_v19  ;;  %v5241_v38 = vld [vmem:[%s6850_s13 + $0x8] sm:$0xff]   ;;  %v5195_v60 = vunpack.c.l.bf16 %v5244_v51 }
 0x43c   : > { %v4244_v16 = vadd.f32 %v5849_v28, %v7904_v27  ;;  %5810 = vmatmul.mubr.msk.bf16.gmra.mrb[88].mxu0 %vm1520_vm11, %v4290_v45  ;;  %v4275_v10 = vmax.f32 %v4243_v17, 0.0  ;;  %v5183_v53 = vunpack.c.l.bf16 %v5241_v38  ;;  %v5184_v42 = vunpack.c.h.bf16 %v5241_v38  ;;  %v5246_v38 = vld [vmem:[%s6850_s13 + $0x30] sm:$0xff]  }
 0x43d   : > { %v4242_v0 = vadd.f32 %v5850_v11, %v7904_v27  ;;  %v4273_v21 = vmax.f32 %v4241_v9, 0.0  ;;  %v5200_v28 = vunpack.c.h.bf16 %v5245_v12  ;;  %v5196_v11 = vunpack.c.h.bf16 %v5244_v51  ;;  %v5251_v51 = vld [vmem:[%s6850_s13 + $0x58] sm:$0xff]  }
 0x43e   : > { %v4276_v24 = vmax.f32 %v4244_v16, 0.0 }
 0x43f   : > { %v4274_v20 = vmax.f32 %v4242_v0, 0.0 }
 0x440   : > { %v4292_v5 = vpack.c.bf16 %v4276_v24, %v4275_v10 }
 0x441   : > { %v4291_v1 = vpack.c.bf16 %v4274_v20, %v4273_v21  ;;  %v5247_v20 = vld [vmem:[%s6850_s13 + $0x38] sm:$0xff]  }
 0x443   : > { %5813 = vmatprep.mubr.msk.bf16.mxu0 %vm1520_vm11, %v4291_v1 }
 0x444   : > { %5814 = vmatmul.mubr.msk.bf16.gmra.mrb[92].mxu0 %vm1520_vm11, %v4292_v5 }
 0x4df   : > { %v5787_v2 = vpop.f32.mrb[64].mxu0 }
 0x4e0   : > { %v4395_v27 = vadd.f32 %v5787_v2, %v7976_v52  ;;  %v4386_v13 = vpop.f32.mrb[65].mxu0 }
 0x4e1   : > { %v4387_v29 = vadd.f32 %v7976_v52, %v4386_v13  ;;  %v5788_v47 = vpop.f32.mrb[66].mxu0 }
 0x4e2   : > { %v4579_v14 = vadd.f32 %v5183_v53, %v4395_v27  ;;  %v4398_v22 = vadd.f32 %v5788_v47, %v7976_v52  ;;  %v4389_v57 = vpop.f32.mrb[67].mxu0 }
 0x4e3   : > { %v4577_v62 = vadd.f32 %v5179_v39, %v4387_v29  ;;  %v4390_v55 = vadd.f32 %v7976_v52, %v4389_v57  ;;  %v5207_v39 = vunpack.c.l.bf16 %v5247_v20  ;;  %v5204_v57 = vunpack.c.h.bf16 %v5246_v38 }
 0x4e4   : > { %v4611_v49 = vmax.f32 %v4579_v14, 0.0  ;;  %v4580_v37 = vadd.f32 %v5184_v42, %v4398_v22  ;;  %v5203_v42 = vunpack.c.l.bf16 %v5246_v38  ;;  %v5253_v38 = vld [vmem:[%s6850_s13 + $0x68] sm:$0xff]  }
 0x4e5   : > { %v4609_v6 = vmax.f32 %v4577_v62, 0.0  ;;  %v4578_v40 = vadd.f32 %v5180_v48, %v4390_v55  ;;  %v5208_v48 = vunpack.c.h.bf16 %v5247_v20 }
 0x4e6   : > { %4643 = vst.msk [vmem:[%s7985_s23 + $0x10] sm:$0xff] %vm504_vm0, %v4611_v49  ;;  %v4612_v50 = vmax.f32 %v4580_v37, 0.0 }
 0x4e7   : > { %4641 = vst.msk [vmem:[%s7985_s23] sm:$0xff] %vm504_vm0, %v4609_v6  ;;  %v4610_v31 = vmax.f32 %v4578_v40, 0.0  ;;  %v5791_v30 = vpop.f32.mrb[68].mxu0 }
 0x4e8   : > { %4644 = vst.msk [vmem:[%s7985_s23 + $0x18] sm:$0xff] %vm504_vm0, %v4612_v50  ;;  %v4411_v41 = vadd.f32 %v5791_v30, %v7976_v52  ;;  %v4402_v7 = vpop.f32.mrb[69].mxu0  ;;  %v5248_v50 = vld [vmem:[%s6850_s13 + $0x40] sm:$0xff]  }
 0x4e9   : > { %4642 = vst.msk [vmem:[%s7985_s23 + $0x8] sm:$0xff] %vm504_vm0, %v4610_v31  ;;  %v4403_v33 = vadd.f32 %v7976_v52, %v4402_v7  ;;  %v5792_v44 = vpop.f32.mrb[70].mxu0 }
 0x4ea   : > { %v4583_v3 = vadd.f32 %v5191_v35, %v4411_v41  ;;  %v4414_v25 = vadd.f32 %v5792_v44, %v7976_v52  ;;  %v4405_v8 = vpop.f32.mrb[71].mxu0 }
 0x4eb   : > { %v4581_v23 = vadd.f32 %v5187_v26, %v4403_v33  ;;  %v4406_v46 = vadd.f32 %v7976_v52, %v4405_v8  ;;  %v5215_v26 = vunpack.c.l.bf16 %v5249_v4  ;;  %v5212_v8 = vunpack.c.h.bf16 %v5248_v50 }
 0x4ec   : > { %v4615_v36 = vmax.f32 %v4583_v3, 0.0  ;;  %v4584_v56 = vadd.f32 %v5192_v61, %v4414_v25  ;;  %v5211_v61 = vunpack.c.l.bf16 %v5248_v50  ;;  %v5255_v50 = vld [vmem:[%s6850_s13 + $0x78] sm:$0xff]  }
 0x4ed   : > { %v4613_v32 = vmax.f32 %v4581_v23, 0.0  ;;  %v4582_v34 = vadd.f32 %v5188_v43, %v4406_v46  ;;  %v5216_v43 = vunpack.c.h.bf16 %v5249_v4 }
 0x4ee   : > { %4647 = vst.msk [vmem:[%s7985_s23 + $0x30] sm:$0xff] %vm504_vm0, %v4615_v36  ;;  %v4616_v45 = vmax.f32 %v4584_v56, 0.0 }
 0x4ef   : > { %4645 = vst.msk [vmem:[%s7985_s23 + $0x20] sm:$0xff] %vm504_vm0, %v4613_v32  ;;  %v4614_v63 = vmax.f32 %v4582_v34, 0.0  ;;  %v5795_v19 = vpop.f32.mrb[72].mxu0 }
 0x4f0   : > { %4648 = vst.msk [vmem:[%s7985_s23 + $0x38] sm:$0xff] %vm504_vm0, %v4616_v45  ;;  %v4427_v15 = vadd.f32 %v5795_v19, %v7976_v52  ;;  %v4418_v17 = vpop.f32.mrb[73].mxu0  ;;  %v5250_v45 = vld [vmem:[%s6850_s13 + $0x50] sm:$0xff]  }
 0x4f1   : > { %4646 = vst.msk [vmem:[%s7985_s23 + $0x28] sm:$0xff] %vm504_vm0, %v4614_v63  ;;  %v4419_v18 = vadd.f32 %v7976_v52, %v4418_v17  ;;  %v5796_v9 = vpop.f32.mrb[74].mxu0 }
 0x4f2   : > { %v4587_v16 = vadd.f32 %v5199_v59, %v4427_v15  ;;  %v4430_v0 = vadd.f32 %v5796_v9, %v7976_v52  ;;  %v4421_v10 = vpop.f32.mrb[75].mxu0 }
 0x4f3   : > { %v4585_v24 = vadd.f32 %v5195_v60, %v4419_v18  ;;  %v4422_v21 = vadd.f32 %v7976_v52, %v4421_v10  ;;  %v5223_v60 = vunpack.c.l.bf16 %v5251_v51  ;;  %v5220_v10 = vunpack.c.h.bf16 %v5250_v45 }
 0x4f4   : > { %v4619_v5 = vmax.f32 %v4587_v16, 0.0  ;;  %v4588_v1 = vadd.f32 %v5200_v28, %v4430_v0  ;;  %v5219_v28 = vunpack.c.l.bf16 %v5250_v45 }
 0x4f5   : > { %v4617_v58 = vmax.f32 %v4585_v24, 0.0  ;;  %v4586_v53 = vadd.f32 %v5196_v11, %v4422_v21  ;;  %v5224_v11 = vunpack.c.h.bf16 %v5251_v51 }
 0x4f6   : > { %4651 = vst.msk [vmem:[%s7985_s23 + $0x50] sm:$0xff] %vm504_vm0, %v4619_v5  ;;  %v4620_v2 = vmax.f32 %v4588_v1, 0.0 }
 0x4f7   : > { %4649 = vst.msk [vmem:[%s7985_s23 + $0x40] sm:$0xff] %vm504_vm0, %v4617_v58  ;;  %v4618_v27 = vmax.f32 %v4586_v53, 0.0  ;;  %v5799_v13 = vpop.f32.mrb[76].mxu0 }
 0x4f8   : > { %4652 = vst.msk [vmem:[%s7985_s23 + $0x58] sm:$0xff] %vm504_vm0, %v4620_v2  ;;  %v4443_v29 = vadd.f32 %v5799_v13, %v7976_v52  ;;  %v4434_v47 = vpop.f32.mrb[77].mxu0  ;;  %v5252_v2 = vld [vmem:[%s6850_s13 + $0x60] sm:$0xff]  }
 0x4f9   : > { %4650 = vst.msk [vmem:[%s7985_s23 + $0x48] sm:$0xff] %vm504_vm0, %v4618_v27  ;;  %v4435_v14 = vadd.f32 %v7976_v52, %v4434_v47  ;;  %v5800_v22 = vpop.f32.mrb[78].mxu0 }
 0x4fa   : > { %v4591_v62 = vadd.f32 %v5207_v39, %v4443_v29  ;;  %v4446_v55 = vadd.f32 %v5800_v22, %v7976_v52  ;;  %v4437_v54 = vpop.f32.mrb[79].mxu0 }
 0x4fb   : > { %v4589_v49 = vadd.f32 %v5203_v42, %v4435_v14  ;;  %v4438_v37 = vadd.f32 %v7976_v52, %v4437_v54  ;;  %v5231_v42 = vunpack.c.l.bf16 %v5253_v38  ;;  %v5228_v54 = vunpack.c.h.bf16 %v5252_v2 }
 0x4fc   : > { %v4623_v6 = vmax.f32 %v4591_v62, 0.0  ;;  %v4592_v40 = vadd.f32 %v5208_v48, %v4446_v55  ;;  %v5227_v48 = vunpack.c.l.bf16 %v5252_v2 }
 0x4fd   : > { %v4621_v35 = vmax.f32 %v4589_v49, 0.0  ;;  %v4590_v31 = vadd.f32 %v5204_v57, %v4438_v37  ;;  %v5232_v57 = vunpack.c.h.bf16 %v5253_v38 }
 0x4fe   : > { %4655 = vst.msk [vmem:[%s7985_s23 + $0x70] sm:$0xff] %vm504_vm0, %v4623_v6  ;;  %v4624_v30 = vmax.f32 %v4592_v40, 0.0 }
 0x4ff   : > { %4653 = vst.msk [vmem:[%s7985_s23 + $0x60] sm:$0xff] %vm504_vm0, %v4621_v35  ;;  %v4622_v41 = vmax.f32 %v4590_v31, 0.0  ;;  %v5803_v7 = vpop.f32.mrb[80].mxu0 }
 0x500   : > { %4656 = vst.msk [vmem:[%s7985_s23 + $0x78] sm:$0xff] %vm504_vm0, %v4624_v30  ;;  %v4459_v33 = vadd.f32 %v5803_v7, %v7976_v52  ;;  %v4450_v44 = vpop.f32.mrb[81].mxu0  ;;  %v5254_v30 = vld [vmem:[%s6850_s13 + $0x70] sm:$0xff]  }
 0x501   : > { %4654 = vst.msk [vmem:[%s7985_s23 + $0x68] sm:$0xff] %vm504_vm0, %v4622_v41  ;;  %v4451_v3 = vadd.f32 %v7976_v52, %v4450_v44  ;;  %v5804_v25 = vpop.f32.mrb[82].mxu0 }
 0x502   : > { %v4595_v23 = vadd.f32 %v5215_v26, %v4459_v33  ;;  %v4462_v46 = vadd.f32 %v5804_v25, %v7976_v52  ;;  %v4453_v12 = vpop.f32.mrb[83].mxu0 }
 0x503   : > { %v4593_v36 = vadd.f32 %v5211_v61, %v4451_v3  ;;  %v4454_v56 = vadd.f32 %v7976_v52, %v4453_v12  ;;  %v5239_v61 = vunpack.c.l.bf16 %v5255_v50  ;;  %v5236_v12 = vunpack.c.h.bf16 %v5254_v30 }
 0x504   : > { %v4627_v32 = vmax.f32 %v4595_v23, 0.0  ;;  %v4596_v34 = vadd.f32 %v5216_v43, %v4462_v46  ;;  %v5235_v43 = vunpack.c.l.bf16 %v5254_v30 }
 0x505   : > { %v4625_v59 = vmax.f32 %v4593_v36, 0.0  ;;  %v4594_v63 = vadd.f32 %v5212_v8, %v4454_v56  ;;  %v5240_v8 = vunpack.c.h.bf16 %v5255_v50 }
 0x506   : > { %4659 = vst.msk [vmem:[%s7985_s23 + $0x90] sm:$0xff] %vm504_vm0, %v4627_v32  ;;  %v4628_v19 = vmax.f32 %v4596_v34, 0.0 }
 0x507   : > { %4657 = vst.msk [vmem:[%s7985_s23 + $0x80] sm:$0xff] %vm504_vm0, %v4625_v59  ;;  %v4626_v15 = vmax.f32 %v4594_v63, 0.0  ;;  %v5807_v17 = vpop.f32.mrb[84].mxu0 }
 0x508   : > { %4660 = vst.msk [vmem:[%s7985_s23 + $0x98] sm:$0xff] %vm504_vm0, %v4628_v19  ;;  %v4475_v18 = vadd.f32 %v5807_v17, %v7976_v52  ;;  %v4466_v9 = vpop.f32.mrb[85].mxu0 }
 0x509   : > { %4658 = vst.msk [vmem:[%s7985_s23 + $0x88] sm:$0xff] %vm504_vm0, %v4626_v15  ;;  %v4467_v16 = vadd.f32 %v7976_v52, %v4466_v9  ;;  %v5808_v0 = vpop.f32.mrb[86].mxu0 }
 0x50a   : > { %v4599_v24 = vadd.f32 %v5223_v60, %v4475_v18  ;;  %v4478_v21 = vadd.f32 %v5808_v0, %v7976_v52  ;;  %v4469_v20 = vpop.f32.mrb[87].mxu0 }
 0x50b   : > { %v4597_v5 = vadd.f32 %v5219_v28, %v4467_v16  ;;  %v4470_v1 = vadd.f32 %v7976_v52, %v4469_v20 }
 0x50c   : > { %v4631_v58 = vmax.f32 %v4599_v24, 0.0  ;;  %v4600_v53 = vadd.f32 %v5224_v11, %v4478_v21 }
 0x50d   : > { %v4629_v39 = vmax.f32 %v4597_v5, 0.0  ;;  %v4598_v27 = vadd.f32 %v5220_v10, %v4470_v1 }
 0x50e   : > { %4663 = vst.msk [vmem:[%s7985_s23 + $0xb0] sm:$0xff] %vm504_vm0, %v4631_v58  ;;  %v4632_v13 = vmax.f32 %v4600_v53, 0.0 }
 0x50f   : > { %4661 = vst.msk [vmem:[%s7985_s23 + $0xa0] sm:$0xff] %vm504_vm0, %v4629_v39  ;;  %v4630_v29 = vmax.f32 %v4598_v27, 0.0  ;;  %v5811_v47 = vpop.f32.mrb[88].mxu0 }
 0x510   : > { %4664 = vst.msk [vmem:[%s7985_s23 + $0xb8] sm:$0xff] %vm504_vm0, %v4632_v13  ;;  %v4491_v14 = vadd.f32 %v5811_v47, %v7976_v52  ;;  %v4482_v22 = vpop.f32.mrb[89].mxu0 }
 0x511   : > { %4662 = vst.msk [vmem:[%s7985_s23 + $0xa8] sm:$0xff] %vm504_vm0, %v4630_v29  ;;  %v4483_v62 = vadd.f32 %v7976_v52, %v4482_v22  ;;  %v5812_v55 = vpop.f32.mrb[90].mxu0 }
 0x512   : > { %v4603_v49 = vadd.f32 %v5231_v42, %v4491_v14  ;;  %v4494_v37 = vadd.f32 %v5812_v55, %v7976_v52  ;;  %v4485_v4 = vpop.f32.mrb[91].mxu0 }
 0x513   : > { %v4601_v6 = vadd.f32 %v5227_v48, %v4483_v62  ;;  %v4486_v40 = vadd.f32 %v7976_v52, %v4485_v4 }
 0x514   : > { %v4635_v35 = vmax.f32 %v4603_v49, 0.0  ;;  %v4604_v31 = vadd.f32 %v5232_v57, %v4494_v37 }
 0x515   : > { %v4633_v26 = vmax.f32 %v4601_v6, 0.0  ;;  %v4602_v41 = vadd.f32 %v5228_v54, %v4486_v40 }
 0x516   : > { %4667 = vst.msk [vmem:[%s7985_s23 + $0xd0] sm:$0xff] %vm504_vm0, %v4635_v35  ;;  %v4636_v7 = vmax.f32 %v4604_v31, 0.0 }
 0x517   : > { %4665 = vst.msk [vmem:[%s7985_s23 + $0xc0] sm:$0xff] %vm504_vm0, %v4633_v26  ;;  %v4634_v33 = vmax.f32 %v4602_v41, 0.0  ;;  %v5815_v44 = vpop.f32.mrb[92].mxu0 }
 0x518   : > { %4668 = vst.msk [vmem:[%s7985_s23 + $0xd8] sm:$0xff] %vm504_vm0, %v4636_v7  ;;  %v4507_v3 = vadd.f32 %v5815_v44, %v7976_v52  ;;  %v4498_v25 = vpop.f32.mrb[93].mxu0 }
 0x519   : > { %4666 = vst.msk [vmem:[%s7985_s23 + $0xc8] sm:$0xff] %vm504_vm0, %v4634_v33  ;;  %v4499_v23 = vadd.f32 %v7976_v52, %v4498_v25  ;;  %v5816_v46 = vpop.f32.mrb[94].mxu0 }
 0x51a   : > { %v4607_v36 = vadd.f32 %v5239_v61, %v4507_v3  ;;  %v4510_v56 = vadd.f32 %v5816_v46, %v7976_v52  ;;  %v4501_v51 = vpop.f32.mrb[95].mxu0 }
 0x51b   : > { %v4605_v32 = vadd.f32 %v5235_v43, %v4499_v23  ;;  %v4502_v34 = vadd.f32 %v7976_v52, %v4501_v51 }
 0x51c   : > { %v4639_v45 = vmax.f32 %v4607_v36, 0.0  ;;  %v4608_v59 = vadd.f32 %v5240_v8, %v4510_v56 }
 0x51d   : > { %v4637_v63 = vmax.f32 %v4605_v32, 0.0  ;;  %v4606_v19 = vadd.f32 %v5236_v12, %v4502_v34 }
 0x51e   : > { %4671 = vst.msk [vmem:[%s7985_s23 + $0xf0] sm:$0xff] %vm504_vm0, %v4639_v45  ;;  %v4640_v60 = vmax.f32 %v4608_v59, 0.0 }
 0x51f   : > { %4669 = vst.msk [vmem:[%s7985_s23 + $0xe0] sm:$0xff] %vm504_vm0, %v4637_v63  ;;  %v4638_v52 = vmax.f32 %v4606_v19, 0.0 }
 0x520   : > { %4672 = vst.msk [vmem:[%s7985_s23 + $0xf8] sm:$0xff] %vm504_vm0, %v4640_v60 }
 0x521   : > { %4670 = vst.msk [vmem:[%s7985_s23 + $0xe8] sm:$0xff] %vm504_vm0, %v4638_v52 }
 0x522   : > { %6467 = shalt.err (!%p6464_p8)
}
 0x523   : > { %s6468_s29 = scalar_lea.hbm %s8090_s18, 4096  ;;  %s6472_s23 = scalar_lea.hbm %s8149_s7, 8192 }
 0x524   : > { %p6469_p7 = scmp.ne.s32.totalorder %s8090_s18, %s6468_s29  ;;  %p6473_p3 = scmp.lt.u32.totalorder %s8090_s18, %s8149_s7 }
 0x525   : > { %p6474_p0 = scmp.lt.u32.totalorder %s6472_s23, %s6468_s29  ;;  %p6476_p6 = scmp.lt.u32.totalorder %s6468_s29, %s8090_s18 }
 0x526   : > { %p6470_p9 = pnand %p6469_p7, %p8192_p5 }
 0x527   : > { %p6475_p2 = por %p6474_p0, %p6473_p3 }
 0x528   : > { %p6471_p4 = pneg %p6470_p9 }
 0x529   : > { %p6477_p10 = por %p6476_p6, %p6475_p2 }
 0x52b   : > { %p6478_p1 = pnand %p6477_p10, %p6471_p4 }
 0x52d   : > { %6481 = shalt.err (!%p6478_p1)
}
 0x52e   : > { %s6547_s15 = smov 128   ;;  %s6548_s16 = smov 8  }
 0x52f   : > { %6112 = dma.vmem_to_hbm [thread:$0]  (%p8192_p5), %s8092_s17, 4096, %s8090_s18, %s4674_s30, %s6547_s15, %s6547_s15, %s6548_s16  }
 0x530 PF: > { %s4702_s22 = sand.u32 1, %s6520_s24   ;;  %p8193_p11 = scmp.ne.s32.totalorder %s8164_s10, 0 }
 0x531   : > { %p8194_p12 = scmp.ge.s32.totalorder %s6532_s27, 2  ;;  %s4703_s14 = scalar_lea.sflag [#allocation5], %s4702_s22 }
 0x533   : > { %p6138_p13 = pnand %p8194_p12, %p8193_p11 }
 0x535   : > { %6515 = dma.done.wait (!%p6138_p13), %s4703_s14, 4096  }
 0x536   : > { %6517 = vsyncadd (!%p6138_p13), %s4703_s14, 4294963200  ;;  %p23_p8 = scmp.ge.s32.totalorder %s6764_s11, 4   ;;  %s8195_s24 = smov %s6524_s25 }
 0x537   : > { %s8196_s25 = smov %s6528_s26  ;;  %s8197_s26 = smov %s6775_s20 }
 0x538   : > { %s8198_s27 = smov %s6764_s11  ;;  %25 = sbr.rel (!%p23_p8) target bundleno = 8 (0x8), region = 127 }
 0x53f   :  { %4708 = vsyncpa [#allocation4], 1 }
 0x540   :  { %4710 = vsyncpa [#allocation4 + $0x1], 1 }
 0x541   :  { %4711 = vsyncpa [#allocation7], 1 }
 0x542   :  { %4712 = vsyncpa [#allocation10], 1 }
 0x543   :  { %4713 = vsyncpa [#allocation13], 1 }
 0x544   :  { %4714 = vsyncpa [#allocation5], 1 }
 0x545   :  { %4716 = vsyncpa [#allocation5 + $0x1], 1 }

</bundles_post_ra>
